<compile_context>
chip_gen: v5e
topology: v5e:2x2
jax: 0.10.0
libtpu: 0.0.40
codegen_flags: <defaults>
</compile_context>

<pallas_src>
import jax
import jax.numpy as jnp
from jax import lax
from jax.experimental import pallas as pl

# ----------------------------- model dims (small) ---------------------------
B = 2            # batch
BP = 8           # batch padded to the f32 sublane tile
C = 4            # image channels
HS = WS = 16     # image spatial
F = 128          # stand-in for EfficientNet feature dim (1280 in b0)
E = 128          # embed_size
HB = 128         # stand-in for BERT hidden (768)
HH = 128         # LSTM hidden_size
V = 256          # vocab_size (stand-in for 30522)
T = 8            # caption length
S = T + 1        # +1 for the prepended image feature token


def _dot(a, b):
    # single bf16 MXU pass, f32 accumulation
    return jnp.dot(a.astype(jnp.bfloat16), b.astype(jnp.bfloat16),
                   preferred_element_type=jnp.float32)


# ------------------------------ fused Pallas kernel --------------------------
def fused_captioning_kernel(
        img_ref, cap_ref,
        wb_ref, bb_ref, wfc_ref, bfc_ref,
        word_emb_ref, pt_ref, ln_g_ref, ln_b_ref, wt_ref, bt_ref,
        wih_ref, whh_ref, b_lstm_ref,
        wout_ref, bout_ref,
        out_ref):
    # ---- image features -----------------------------------------------------
    # TODO(synk): full EfficientNet-B0 conv backbone has no clean synthetic
    # equivalent; replaced with GAP + ReLU-MLP of matching output shape,
    # followed by the replaced `_fc` Linear(feat -> embed_size).
    pooled = jnp.mean(img_ref[...], axis=-1)                           # [BP, C]
    feat = jnp.maximum(_dot(pooled, wb_ref[...]) + bb_ref[...], 0.0)   # [BP, F]
    feats = _dot(feat, wfc_ref[...]) + bfc_ref[...]                    # [BP, E]

    # ---- BERT-style embeddings (time-major rows: row = t*BP + b) ------------
    cap = cap_ref[...]                                                 # [T*BP,1] i32
    vocab_iota = lax.broadcasted_iota(jnp.int32, (T * BP, V), 1)
    onehot = (vocab_iota == cap).astype(jnp.float32)                   # [T*BP, V]
    wg = _dot(onehot, word_emb_ref[...])                               # [T*BP, HB]
    x = wg + pt_ref[...]                                               # +pos +type
    mean = jnp.mean(x, axis=-1, keepdims=True)
    var = jnp.mean(jnp.square(x - mean), axis=-1, keepdims=True)
    xn = (x - mean) * lax.rsqrt(var + 1e-12)
    xn = xn * ln_g_ref[...] + ln_b_ref[...]
    emb = _dot(xn, wt_ref[...]) + bt_ref[...]                          # [T*BP, E]

    # ---- sequence (time-major, 8-row tile aligned); t=0 = image token -------
    seq = jnp.concatenate([feats, emb], axis=0)                        # [S*BP, E]

    # ---- LSTM: input projection hoisted out of the recurrence ---------------
    gx_all = _dot(seq, wih_ref[...]) + b_lstm_ref[...]                 # [S*BP, 4H]
    whh = whh_ref[...]                                                 # bf16, load once
    h = jnp.zeros((BP, HH), jnp.float32)
    c = jnp.zeros((BP, HH), jnp.float32)
    hs = []
    for t in range(S):                                                 # unrolled
        # gate order here is (i, f, o, g): one sigmoid over 3H, one tanh over H
        gates = gx_all[t * BP:(t + 1) * BP, :] + _dot(h, whh)          # [BP, 4H]
        sg = jax.nn.sigmoid(gates[:, :3 * HH])
        g_g = jnp.tanh(gates[:, 3 * HH:])
        i_g = sg[:, 0 * HH:1 * HH]
        f_g = sg[:, 1 * HH:2 * HH]
        o_g = sg[:, 2 * HH:3 * HH]
        c = f_g * c + i_g * g_g
        h = o_g * jnp.tanh(c)
        hs.append(h)

    hid_tm = jnp.concatenate(hs, axis=0)                               # [S*BP, HH]

    # ---- vocab projection + single lane-dense, tile-aligned store -----------
    logits_tm = _dot(hid_tm, wout_ref[...]) + bout_ref[...]            # [S*BP, V]
    out_ref[...] = logits_tm                                           # contiguous


# ------------------------------ host wrapper ---------------------------------
@jax.jit
def image_captioning_forward(images, captions, p):
    img = images.reshape(B, C, HS * WS)
    img = jnp.pad(img, ((0, BP - B), (0, 0), (0, 0)))               # [BP, C, H*W]
    cap = jnp.pad(captions.astype(jnp.int32), ((0, BP - B), (0, 0)))
    cap_tm = cap.T.reshape(T * BP, 1)                               # time-major ids

    logits_tm = pl.pallas_call(
        fused_captioning_kernel,
        out_shape=jax.ShapeDtypeStruct((S * BP, V), jnp.float32),
    )(img, cap_tm,
      p["wb_k"], p["bb"], p["wfc_k"], p["bfc"],
      p["word_emb_k"], p["pt_bias_tm"], p["ln_g"], p["ln_b"], p["wt_k"], p["bt"],
      p["wih_k"], p["whh_k"], p["b_lstm_k"],
      p["wout_k"], p["bout"])

    # time-major [S, BP, V] -> batch-first [B, S, V] (free reshape/transpose)
    return jnp.swapaxes(logits_tm.reshape(S, BP, V), 0, 1)[:B]


# ------------------------------ pure-JAX reference ---------------------------
def reference_forward(images, captions, p):
    pooled = images.reshape(B, C, -1).mean(-1)
    feat = jnp.maximum(pooled @ p["wb"] + p["bb"], 0.0)
    feats = feat @ p["wfc"] + p["bfc"]

    x = (jnp.take(p["word_emb"], captions, axis=0)
         + p["pos_emb"][None, :T] + p["type_emb"][0][None, None])
    mean = x.mean(-1, keepdims=True)
    var = ((x - mean) ** 2).mean(-1, keepdims=True)
    xn = (x - mean) / jnp.sqrt(var + 1e-12) * p["ln_g"] + p["ln_b"]
    emb = xn @ p["wt"] + p["bt"]

    seq = jnp.concatenate([feats[:, None, :], emb], axis=1)

    def step(carry, x_t):
        h, c = carry
        gates = x_t @ p["wih"] + h @ p["whh"] + p["b_lstm"]   # PyTorch i,f,g,o
        i = jax.nn.sigmoid(gates[:, :HH])
        f = jax.nn.sigmoid(gates[:, HH:2 * HH])
        g = jnp.tanh(gates[:, 2 * HH:3 * HH])
        o = jax.nn.sigmoid(gates[:, 3 * HH:])
        c = f * c + i * g
        h = o * jnp.tanh(c)
        return (h, c), h

    init = (jnp.zeros((B, HH), jnp.float32), jnp.zeros((B, HH), jnp.float32))
    _, hs = lax.scan(step, init, jnp.swapaxes(seq, 0, 1))
    hiddens = jnp.swapaxes(hs, 0, 1)
    return hiddens @ p["wout"] + p["bout"]


# ------------------------------ params / main --------------------------------
def make_params(key):
    ks = jax.random.split(key, 16)
    sc = 0.05

    def w(k, shape):
        # bf16-representable values so kernel (bf16 weights) and reference
        # (f32 weights, default-precision matmuls) see identical operands.
        v = sc * jax.random.normal(k, shape, jnp.float32)
        return v.astype(jnp.bfloat16).astype(jnp.float32)

    params = {
        # image backbone stand-in + replaced _fc
        "wb": w(ks[0], (C, F)), "bb": w(ks[1], (1, F)),
        "wfc": w(ks[2], (F, E)), "bfc": w(ks[3], (1, E)),
        # BERT embeddings stand-in
        "word_emb": w(ks[4], (V, HB)),
        "pos_emb": w(ks[5], (T, HB)),
        "type_emb": w(ks[6], (2, HB)),
        "ln_g": jnp.ones((1, HB), jnp.float32),
        "ln_b": jnp.zeros((1, HB), jnp.float32),
        # linear_transform
        "wt": w(ks[7], (HB, E)), "bt": w(ks[8], (1, E)),
        # LSTM (PyTorch gate order i,f,g,o; b = b_ih + b_hh folded together)
        "wih": w(ks[9], (E, 4 * HH)),
        "whh": w(ks[10], (HH, 4 * HH)),
        "b_lstm": w(ks[11], (1, 4 * HH)),
        # final linear
        "wout": w(ks[12], (HH, V)), "bout": w(ks[13], (1, V)),
    }

    # --- kernel-layout copies (computed once, not per forward) --------------
    # gate column permutation: PyTorch (i,f,g,o) -> kernel (i,f,o,g)
    idx = jnp.arange(HH)
    gate_perm = jnp.concatenate([idx, HH + idx, 3 * HH + idx, 2 * HH + idx])
    params["wih_k"] = params["wih"][:, gate_perm].astype(jnp.bfloat16)
    params["whh_k"] = params["whh"][:, gate_perm].astype(jnp.bfloat16)
    params["b_lstm_k"] = params["b_lstm"][:, gate_perm]                # f32 bias
    params["wb_k"] = params["wb"].astype(jnp.bfloat16)
    params["wfc_k"] = params["wfc"].astype(jnp.bfloat16)
    params["word_emb_k"] = params["word_emb"].astype(jnp.bfloat16)
    params["wt_k"] = params["wt"].astype(jnp.bfloat16)
    params["wout_k"] = params["wout"].astype(jnp.bfloat16)
    # constant (pos + token-type) additive bias, pre-expanded to the kernel's
    # padded time-major row order (row t*BP + b -> pos[t] + type[0]).
    params["pt_bias_tm"] = jnp.repeat(
        params["pos_emb"][:T] + params["type_emb"][0][None, :], BP, axis=0)
    return params


if __name__ == "__main__":
    key = jax.random.PRNGKey(0)
    kp, ki, kc = jax.random.split(key, 3)
    params = make_params(kp)

    images = jax.random.normal(ki, (B, C, HS, WS), jnp.float32)   # NCHW
    captions = jax.random.randint(kc, (B, T), 0, V, jnp.int32)

    out = jax.block_until_ready(
        image_captioning_forward(images, captions, params))
    assert out.shape == (B, S, V) and out.dtype == jnp.float32

    ref = jax.block_until_ready(reference_forward(images, captions, params))
    # bf16 single-pass MXU matmuls -> tolerance loosened vs the f32-"highest" build
    if not jnp.allclose(out, ref, rtol=2e-2, atol=2e-2):
        err = float(jnp.max(jnp.abs(out - ref)))
        raise AssertionError(
            f"Pallas output does not match JAX reference (max abs err {err})")

    print("KERNEL_OK")
</pallas_src>

<mosaic_0001>
module attributes {stable_mosaic.version = 11 : i64} {
  func.func @fused_captioning_kernel(%arg0: memref<8x4x256xf32, #tpu.memory_space<vmem>>, %arg1: memref<64x1xi32, #tpu.memory_space<vmem>>, %arg2: memref<4x128xbf16, #tpu.memory_space<vmem>>, %arg3: memref<1x128xf32, #tpu.memory_space<vmem>>, %arg4: memref<128x128xbf16, #tpu.memory_space<vmem>>, %arg5: memref<1x128xf32, #tpu.memory_space<vmem>>, %arg6: memref<256x128xbf16, #tpu.memory_space<vmem>>, %arg7: memref<64x128xf32, #tpu.memory_space<vmem>>, %arg8: memref<1x128xf32, #tpu.memory_space<vmem>>, %arg9: memref<1x128xf32, #tpu.memory_space<vmem>>, %arg10: memref<128x128xbf16, #tpu.memory_space<vmem>>, %arg11: memref<1x128xf32, #tpu.memory_space<vmem>>, %arg12: memref<128x512xbf16, #tpu.memory_space<vmem>>, %arg13: memref<128x512xbf16, #tpu.memory_space<vmem>>, %arg14: memref<1x512xf32, #tpu.memory_space<vmem>>, %arg15: memref<128x256xbf16, #tpu.memory_space<vmem>>, %arg16: memref<1x256xf32, #tpu.memory_space<vmem>>, %arg17: memref<72x256xf32, #tpu.memory_space<vmem>>) attributes {dimension_semantics = [], scalar_prefetch = 0 : i64, scratch_operands = 0 : i64, tpu.core_type = #tpu.core_type<tc>} {
    %c0 = arith.constant 0 : index
    %c0_0 = arith.constant 0 : index
    %c0_1 = arith.constant 0 : index
    %0 = vector.load %arg0[%c0, %c0_0, %c0_1] : memref<8x4x256xf32, #tpu.memory_space<vmem>>, vector<8x4x256xf32>
    %cst = arith.constant dense<0.000000e+00> : vector<8x4xf32>
    %1 = vector.multi_reduction <add>, %0, %cst [2] : vector<8x4x256xf32> to vector<8x4xf32>
    %cst_2 = arith.constant 2.560000e+02 : f32
    %2 = vector.broadcast %cst_2 : f32 to vector<8x4xf32>
    %3 = arith.divf %1, %2 : vector<8x4xf32>
    %c0_3 = arith.constant 0 : index
    %c0_4 = arith.constant 0 : index
    %4 = vector.load %arg2[%c0_3, %c0_4] : memref<4x128xbf16, #tpu.memory_space<vmem>>, vector<4x128xbf16>
    %5 = arith.truncf %3 : vector<8x4xf32> to vector<8x4xbf16>
    %cst_5 = arith.constant dense<0.000000e+00> : vector<8x128xf32>
    %6 = tpu.matmul %5, %4, %cst_5 {dimension_numbers = #tpu.dot_dimension_numbers<[1], [0], [0], [1], [0, 0, 1, 1], [], []>} : vector<8x4xbf16>, vector<4x128xbf16>, vector<8x128xf32> -> vector<8x128xf32>
    %c0_6 = arith.constant 0 : index
    %c0_7 = arith.constant 0 : index
    %7 = vector.load %arg3[%c0_6, %c0_7] : memref<1x128xf32, #tpu.memory_space<vmem>>, vector<1x128xf32>
    %8 = vector.broadcast %7 : vector<1x128xf32> to vector<8x128xf32>
    %9 = arith.addf %6, %8 : vector<8x128xf32>
    %cst_8 = arith.constant 0.000000e+00 : f32
    %10 = vector.broadcast %cst_8 : f32 to vector<8x128xf32>
    %11 = arith.maximumf %9, %10 : vector<8x128xf32>
    %c0_9 = arith.constant 0 : index
    %c0_10 = arith.constant 0 : index
    %12 = vector.load %arg4[%c0_9, %c0_10] : memref<128x128xbf16, #tpu.memory_space<vmem>>, vector<128x128xbf16>
    %13 = arith.truncf %11 : vector<8x128xf32> to vector<8x128xbf16>
    %cst_11 = arith.constant dense<0.000000e+00> : vector<8x128xf32>
    %14 = tpu.matmul %13, %12, %cst_11 {dimension_numbers = #tpu.dot_dimension_numbers<[1], [0], [0], [1], [0, 0, 1, 1], [], []>} : vector<8x128xbf16>, vector<128x128xbf16>, vector<8x128xf32> -> vector<8x128xf32>
    %c0_12 = arith.constant 0 : index
    %c0_13 = arith.constant 0 : index
    %15 = vector.load %arg5[%c0_12, %c0_13] : memref<1x128xf32, #tpu.memory_space<vmem>>, vector<1x128xf32>
    %16 = vector.broadcast %15 : vector<1x128xf32> to vector<8x128xf32>
    %17 = arith.addf %14, %16 : vector<8x128xf32>
    %c0_14 = arith.constant 0 : index
    %c0_15 = arith.constant 0 : index
    %18 = vector.load %arg1[%c0_14, %c0_15] : memref<64x1xi32, #tpu.memory_space<vmem>>, vector<64x1xi32>
    %19 = tpu.iota {dimensions = array<i32: 1>} : vector<64x256xi32>
    %20 = vector.broadcast %18 : vector<64x1xi32> to vector<64x256xi32>
    %21 = arith.cmpi eq, %19, %20 : vector<64x256xi32>
    %22 = arith.extui %21 : vector<64x256xi1> to vector<64x256xi32>
    %23 = arith.sitofp %22 : vector<64x256xi32> to vector<64x256xf32>
    %c0_16 = arith.constant 0 : index
    %c0_17 = arith.constant 0 : index
    %24 = vector.load %arg6[%c0_16, %c0_17] : memref<256x128xbf16, #tpu.memory_space<vmem>>, vector<256x128xbf16>
    %25 = arith.truncf %23 : vector<64x256xf32> to vector<64x256xbf16>
    %cst_18 = arith.constant dense<0.000000e+00> : vector<64x128xf32>
    %26 = tpu.matmul %25, %24, %cst_18 {dimension_numbers = #tpu.dot_dimension_numbers<[1], [0], [0], [1], [0, 0, 1, 1], [], []>} : vector<64x256xbf16>, vector<256x128xbf16>, vector<64x128xf32> -> vector<64x128xf32>
    %c0_19 = arith.constant 0 : index
    %c0_20 = arith.constant 0 : index
    %27 = vector.load %arg7[%c0_19, %c0_20] : memref<64x128xf32, #tpu.memory_space<vmem>>, vector<64x128xf32>
    %28 = arith.addf %26, %27 : vector<64x128xf32>
    %cst_21 = arith.constant dense<0.000000e+00> : vector<64xf32>
    %29 = vector.multi_reduction <add>, %28, %cst_21 [1] : vector<64x128xf32> to vector<64xf32>
    %30 = vector.shape_cast %29 : vector<64xf32> to vector<64x1xf32>
    %cst_22 = arith.constant 1.280000e+02 : f32
    %31 = vector.broadcast %cst_22 : f32 to vector<64x1xf32>
    %32 = arith.divf %30, %31 : vector<64x1xf32>
    %33 = vector.broadcast %32 : vector<64x1xf32> to vector<64x128xf32>
    %34 = arith.subf %28, %33 : vector<64x128xf32>
    %35 = arith.mulf %34, %34 : vector<64x128xf32>
    %cst_23 = arith.constant dense<0.000000e+00> : vector<64xf32>
    %36 = vector.multi_reduction <add>, %35, %cst_23 [1] : vector<64x128xf32> to vector<64xf32>
    %37 = vector.shape_cast %36 : vector<64xf32> to vector<64x1xf32>
    %cst_24 = arith.constant 1.280000e+02 : f32
    %38 = vector.broadcast %cst_24 : f32 to vector<64x1xf32>
    %39 = arith.divf %37, %38 : vector<64x1xf32>
    %40 = vector.broadcast %32 : vector<64x1xf32> to vector<64x128xf32>
    %41 = arith.subf %28, %40 : vector<64x128xf32>
    %cst_25 = arith.constant 9.99999996E-13 : f32
    %42 = vector.broadcast %cst_25 : f32 to vector<64x1xf32>
    %43 = arith.addf %39, %42 : vector<64x1xf32>
    %44 = math.rsqrt %43 : vector<64x1xf32>
    %45 = vector.broadcast %44 : vector<64x1xf32> to vector<64x128xf32>
    %46 = arith.mulf %41, %45 : vector<64x128xf32>
    %c0_26 = arith.constant 0 : index
    %c0_27 = arith.constant 0 : index
    %47 = vector.load %arg8[%c0_26, %c0_27] : memref<1x128xf32, #tpu.memory_space<vmem>>, vector<1x128xf32>
    %48 = vector.broadcast %47 : vector<1x128xf32> to vector<64x128xf32>
    %49 = arith.mulf %46, %48 : vector<64x128xf32>
    %c0_28 = arith.constant 0 : index
    %c0_29 = arith.constant 0 : index
    %50 = vector.load %arg9[%c0_28, %c0_29] : memref<1x128xf32, #tpu.memory_space<vmem>>, vector<1x128xf32>
    %51 = vector.broadcast %50 : vector<1x128xf32> to vector<64x128xf32>
    %52 = arith.addf %49, %51 : vector<64x128xf32>
    %c0_30 = arith.constant 0 : index
    %c0_31 = arith.constant 0 : index
    %53 = vector.load %arg10[%c0_30, %c0_31] : memref<128x128xbf16, #tpu.memory_space<vmem>>, vector<128x128xbf16>
    %54 = arith.truncf %52 : vector<64x128xf32> to vector<64x128xbf16>
    %cst_32 = arith.constant dense<0.000000e+00> : vector<64x128xf32>
    %55 = tpu.matmul %54, %53, %cst_32 {dimension_numbers = #tpu.dot_dimension_numbers<[1], [0], [0], [1], [0, 0, 1, 1], [], []>} : vector<64x128xbf16>, vector<128x128xbf16>, vector<64x128xf32> -> vector<64x128xf32>
    %c0_33 = arith.constant 0 : index
    %c0_34 = arith.constant 0 : index
    %56 = vector.load %arg11[%c0_33, %c0_34] : memref<1x128xf32, #tpu.memory_space<vmem>>, vector<1x128xf32>
    %57 = vector.broadcast %56 : vector<1x128xf32> to vector<64x128xf32>
    %58 = arith.addf %55, %57 : vector<64x128xf32>
    %59 = tpu.concatenate %17, %58 in 0 : vector<8x128xf32>, vector<64x128xf32> -> vector<72x128xf32>
    %c0_35 = arith.constant 0 : index
    %c0_36 = arith.constant 0 : index
    %60 = vector.load %arg12[%c0_35, %c0_36] : memref<128x512xbf16, #tpu.memory_space<vmem>>, vector<128x512xbf16>
    %61 = arith.truncf %59 : vector<72x128xf32> to vector<72x128xbf16>
    %cst_37 = arith.constant dense<0.000000e+00> : vector<72x512xf32>
    %62 = tpu.matmul %61, %60, %cst_37 {dimension_numbers = #tpu.dot_dimension_numbers<[1], [0], [0], [1], [0, 0, 1, 1], [], []>} : vector<72x128xbf16>, vector<128x512xbf16>, vector<72x512xf32> -> vector<72x512xf32>
    %c0_38 = arith.constant 0 : index
    %c0_39 = arith.constant 0 : index
    %63 = vector.load %arg14[%c0_38, %c0_39] : memref<1x512xf32, #tpu.memory_space<vmem>>, vector<1x512xf32>
    %64 = vector.broadcast %63 : vector<1x512xf32> to vector<72x512xf32>
    %65 = arith.addf %62, %64 : vector<72x512xf32>
    %c0_40 = arith.constant 0 : index
    %c0_41 = arith.constant 0 : index
    %66 = vector.load %arg13[%c0_40, %c0_41] : memref<128x512xbf16, #tpu.memory_space<vmem>>, vector<128x512xbf16>
    %cst_42 = arith.constant 0.000000e+00 : f32
    %67 = vector.broadcast %cst_42 : f32 to vector<8x128xf32>
    %cst_43 = arith.constant 0.000000e+00 : f32
    %68 = vector.broadcast %cst_43 : f32 to vector<8x128xf32>
    %69 = vector.extract_strided_slice %65 {offsets = [0, 0], sizes = [8, 512], strides = [1, 1]} : vector<72x512xf32> to vector<8x512xf32>
    %70 = arith.truncf %67 : vector<8x128xf32> to vector<8x128xbf16>
    %cst_44 = arith.constant dense<0.000000e+00> : vector<8x512xf32>
    %71 = tpu.matmul %70, %66, %cst_44 {dimension_numbers = #tpu.dot_dimension_numbers<[1], [0], [0], [1], [0, 0, 1, 1], [], []>} : vector<8x128xbf16>, vector<128x512xbf16>, vector<8x512xf32> -> vector<8x512xf32>
    %72 = arith.addf %69, %71 : vector<8x512xf32>
    %73 = vector.extract_strided_slice %72 {offsets = [0, 0], sizes = [8, 384], strides = [1, 1]} : vector<8x512xf32> to vector<8x384xf32>
    %74 = arith.negf %73 : vector<8x384xf32>
    %75 = math.exp %74 : vector<8x384xf32>
    %cst_45 = arith.constant 1.000000e+00 : f32
    %76 = vector.broadcast %cst_45 : f32 to vector<8x384xf32>
    %77 = arith.addf %76, %75 : vector<8x384xf32>
    %78 = arith.divf %76, %77 : vector<8x384xf32>
    %79 = vector.extract_strided_slice %72 {offsets = [0, 384], sizes = [8, 128], strides = [1, 1]} : vector<8x512xf32> to vector<8x128xf32>
    %80 = math.tanh %79 : vector<8x128xf32>
    %81 = vector.extract_strided_slice %78 {offsets = [0, 0], sizes = [8, 128], strides = [1, 1]} : vector<8x384xf32> to vector<8x128xf32>
    %82 = vector.extract_strided_slice %78 {offsets = [0, 128], sizes = [8, 128], strides = [1, 1]} : vector<8x384xf32> to vector<8x128xf32>
    %83 = vector.extract_strided_slice %78 {offsets = [0, 256], sizes = [8, 128], strides = [1, 1]} : vector<8x384xf32> to vector<8x128xf32>
    %84 = arith.mulf %82, %68 : vector<8x128xf32>
    %85 = arith.mulf %81, %80 : vector<8x128xf32>
    %86 = arith.addf %84, %85 : vector<8x128xf32>
    %87 = math.tanh %86 : vector<8x128xf32>
    %88 = arith.mulf %83, %87 : vector<8x128xf32>
    %89 = vector.extract_strided_slice %65 {offsets = [8, 0], sizes = [8, 512], strides = [1, 1]} : vector<72x512xf32> to vector<8x512xf32>
    %90 = arith.truncf %88 : vector<8x128xf32> to vector<8x128xbf16>
    %cst_46 = arith.constant dense<0.000000e+00> : vector<8x512xf32>
    %91 = tpu.matmul %90, %66, %cst_46 {dimension_numbers = #tpu.dot_dimension_numbers<[1], [0], [0], [1], [0, 0, 1, 1], [], []>} : vector<8x128xbf16>, vector<128x512xbf16>, vector<8x512xf32> -> vector<8x512xf32>
    %92 = arith.addf %89, %91 : vector<8x512xf32>
    %93 = vector.extract_strided_slice %92 {offsets = [0, 0], sizes = [8, 384], strides = [1, 1]} : vector<8x512xf32> to vector<8x384xf32>
    %94 = arith.negf %93 : vector<8x384xf32>
    %95 = math.exp %94 : vector<8x384xf32>
    %cst_47 = arith.constant 1.000000e+00 : f32
    %96 = vector.broadcast %cst_47 : f32 to vector<8x384xf32>
    %97 = arith.addf %96, %95 : vector<8x384xf32>
    %98 = arith.divf %96, %97 : vector<8x384xf32>
    %99 = vector.extract_strided_slice %92 {offsets = [0, 384], sizes = [8, 128], strides = [1, 1]} : vector<8x512xf32> to vector<8x128xf32>
    %100 = math.tanh %99 : vector<8x128xf32>
    %101 = vector.extract_strided_slice %98 {offsets = [0, 0], sizes = [8, 128], strides = [1, 1]} : vector<8x384xf32> to vector<8x128xf32>
    %102 = vector.extract_strided_slice %98 {offsets = [0, 128], sizes = [8, 128], strides = [1, 1]} : vector<8x384xf32> to vector<8x128xf32>
    %103 = vector.extract_strided_slice %98 {offsets = [0, 256], sizes = [8, 128], strides = [1, 1]} : vector<8x384xf32> to vector<8x128xf32>
    %104 = arith.mulf %102, %86 : vector<8x128xf32>
    %105 = arith.mulf %101, %100 : vector<8x128xf32>
    %106 = arith.addf %104, %105 : vector<8x128xf32>
    %107 = math.tanh %106 : vector<8x128xf32>
    %108 = arith.mulf %103, %107 : vector<8x128xf32>
    %109 = vector.extract_strided_slice %65 {offsets = [16, 0], sizes = [8, 512], strides = [1, 1]} : vector<72x512xf32> to vector<8x512xf32>
    %110 = arith.truncf %108 : vector<8x128xf32> to vector<8x128xbf16>
    %cst_48 = arith.constant dense<0.000000e+00> : vector<8x512xf32>
    %111 = tpu.matmul %110, %66, %cst_48 {dimension_numbers = #tpu.dot_dimension_numbers<[1], [0], [0], [1], [0, 0, 1, 1], [], []>} : vector<8x128xbf16>, vector<128x512xbf16>, vector<8x512xf32> -> vector<8x512xf32>
    %112 = arith.addf %109, %111 : vector<8x512xf32>
    %113 = vector.extract_strided_slice %112 {offsets = [0, 0], sizes = [8, 384], strides = [1, 1]} : vector<8x512xf32> to vector<8x384xf32>
    %114 = arith.negf %113 : vector<8x384xf32>
    %115 = math.exp %114 : vector<8x384xf32>
    %cst_49 = arith.constant 1.000000e+00 : f32
    %116 = vector.broadcast %cst_49 : f32 to vector<8x384xf32>
    %117 = arith.addf %116, %115 : vector<8x384xf32>
    %118 = arith.divf %116, %117 : vector<8x384xf32>
    %119 = vector.extract_strided_slice %112 {offsets = [0, 384], sizes = [8, 128], strides = [1, 1]} : vector<8x512xf32> to vector<8x128xf32>
    %120 = math.tanh %119 : vector<8x128xf32>
    %121 = vector.extract_strided_slice %118 {offsets = [0, 0], sizes = [8, 128], strides = [1, 1]} : vector<8x384xf32> to vector<8x128xf32>
    %122 = vector.extract_strided_slice %118 {offsets = [0, 128], sizes = [8, 128], strides = [1, 1]} : vector<8x384xf32> to vector<8x128xf32>
    %123 = vector.extract_strided_slice %118 {offsets = [0, 256], sizes = [8, 128], strides = [1, 1]} : vector<8x384xf32> to vector<8x128xf32>
    %124 = arith.mulf %122, %106 : vector<8x128xf32>
    %125 = arith.mulf %121, %120 : vector<8x128xf32>
    %126 = arith.addf %124, %125 : vector<8x128xf32>
    %127 = math.tanh %126 : vector<8x128xf32>
    %128 = arith.mulf %123, %127 : vector<8x128xf32>
    %129 = vector.extract_strided_slice %65 {offsets = [24, 0], sizes = [8, 512], strides = [1, 1]} : vector<72x512xf32> to vector<8x512xf32>
    %130 = arith.truncf %128 : vector<8x128xf32> to vector<8x128xbf16>
    %cst_50 = arith.constant dense<0.000000e+00> : vector<8x512xf32>
    %131 = tpu.matmul %130, %66, %cst_50 {dimension_numbers = #tpu.dot_dimension_numbers<[1], [0], [0], [1], [0, 0, 1, 1], [], []>} : vector<8x128xbf16>, vector<128x512xbf16>, vector<8x512xf32> -> vector<8x512xf32>
    %132 = arith.addf %129, %131 : vector<8x512xf32>
    %133 = vector.extract_strided_slice %132 {offsets = [0, 0], sizes = [8, 384], strides = [1, 1]} : vector<8x512xf32> to vector<8x384xf32>
    %134 = arith.negf %133 : vector<8x384xf32>
    %135 = math.exp %134 : vector<8x384xf32>
    %cst_51 = arith.constant 1.000000e+00 : f32
    %136 = vector.broadcast %cst_51 : f32 to vector<8x384xf32>
    %137 = arith.addf %136, %135 : vector<8x384xf32>
    %138 = arith.divf %136, %137 : vector<8x384xf32>
    %139 = vector.extract_strided_slice %132 {offsets = [0, 384], sizes = [8, 128], strides = [1, 1]} : vector<8x512xf32> to vector<8x128xf32>
    %140 = math.tanh %139 : vector<8x128xf32>
    %141 = vector.extract_strided_slice %138 {offsets = [0, 0], sizes = [8, 128], strides = [1, 1]} : vector<8x384xf32> to vector<8x128xf32>
    %142 = vector.extract_strided_slice %138 {offsets = [0, 128], sizes = [8, 128], strides = [1, 1]} : vector<8x384xf32> to vector<8x128xf32>
    %143 = vector.extract_strided_slice %138 {offsets = [0, 256], sizes = [8, 128], strides = [1, 1]} : vector<8x384xf32> to vector<8x128xf32>
    %144 = arith.mulf %142, %126 : vector<8x128xf32>
    %145 = arith.mulf %141, %140 : vector<8x128xf32>
    %146 = arith.addf %144, %145 : vector<8x128xf32>
    %147 = math.tanh %146 : vector<8x128xf32>
    %148 = arith.mulf %143, %147 : vector<8x128xf32>
    %149 = vector.extract_strided_slice %65 {offsets = [32, 0], sizes = [8, 512], strides = [1, 1]} : vector<72x512xf32> to vector<8x512xf32>
    %150 = arith.truncf %148 : vector<8x128xf32> to vector<8x128xbf16>
    %cst_52 = arith.constant dense<0.000000e+00> : vector<8x512xf32>
    %151 = tpu.matmul %150, %66, %cst_52 {dimension_numbers = #tpu.dot_dimension_numbers<[1], [0], [0], [1], [0, 0, 1, 1], [], []>} : vector<8x128xbf16>, vector<128x512xbf16>, vector<8x512xf32> -> vector<8x512xf32>
    %152 = arith.addf %149, %151 : vector<8x512xf32>
    %153 = vector.extract_strided_slice %152 {offsets = [0, 0], sizes = [8, 384], strides = [1, 1]} : vector<8x512xf32> to vector<8x384xf32>
    %154 = arith.negf %153 : vector<8x384xf32>
    %155 = math.exp %154 : vector<8x384xf32>
    %cst_53 = arith.constant 1.000000e+00 : f32
    %156 = vector.broadcast %cst_53 : f32 to vector<8x384xf32>
    %157 = arith.addf %156, %155 : vector<8x384xf32>
    %158 = arith.divf %156, %157 : vector<8x384xf32>
    %159 = vector.extract_strided_slice %152 {offsets = [0, 384], sizes = [8, 128], strides = [1, 1]} : vector<8x512xf32> to vector<8x128xf32>
    %160 = math.tanh %159 : vector<8x128xf32>
    %161 = vector.extract_strided_slice %158 {offsets = [0, 0], sizes = [8, 128], strides = [1, 1]} : vector<8x384xf32> to vector<8x128xf32>
    %162 = vector.extract_strided_slice %158 {offsets = [0, 128], sizes = [8, 128], strides = [1, 1]} : vector<8x384xf32> to vector<8x128xf32>
    %163 = vector.extract_strided_slice %158 {offsets = [0, 256], sizes = [8, 128], strides = [1, 1]} : vector<8x384xf32> to vector<8x128xf32>
    %164 = arith.mulf %162, %146 : vector<8x128xf32>
    %165 = arith.mulf %161, %160 : vector<8x128xf32>
    %166 = arith.addf %164, %165 : vector<8x128xf32>
    %167 = math.tanh %166 : vector<8x128xf32>
    %168 = arith.mulf %163, %167 : vector<8x128xf32>
    %169 = vector.extract_strided_slice %65 {offsets = [40, 0], sizes = [8, 512], strides = [1, 1]} : vector<72x512xf32> to vector<8x512xf32>
    %170 = arith.truncf %168 : vector<8x128xf32> to vector<8x128xbf16>
    %cst_54 = arith.constant dense<0.000000e+00> : vector<8x512xf32>
    %171 = tpu.matmul %170, %66, %cst_54 {dimension_numbers = #tpu.dot_dimension_numbers<[1], [0], [0], [1], [0, 0, 1, 1], [], []>} : vector<8x128xbf16>, vector<128x512xbf16>, vector<8x512xf32> -> vector<8x512xf32>
    %172 = arith.addf %169, %171 : vector<8x512xf32>
    %173 = vector.extract_strided_slice %172 {offsets = [0, 0], sizes = [8, 384], strides = [1, 1]} : vector<8x512xf32> to vector<8x384xf32>
    %174 = arith.negf %173 : vector<8x384xf32>
    %175 = math.exp %174 : vector<8x384xf32>
    %cst_55 = arith.constant 1.000000e+00 : f32
    %176 = vector.broadcast %cst_55 : f32 to vector<8x384xf32>
    %177 = arith.addf %176, %175 : vector<8x384xf32>
    %178 = arith.divf %176, %177 : vector<8x384xf32>
    %179 = vector.extract_strided_slice %172 {offsets = [0, 384], sizes = [8, 128], strides = [1, 1]} : vector<8x512xf32> to vector<8x128xf32>
    %180 = math.tanh %179 : vector<8x128xf32>
    %181 = vector.extract_strided_slice %178 {offsets = [0, 0], sizes = [8, 128], strides = [1, 1]} : vector<8x384xf32> to vector<8x128xf32>
    %182 = vector.extract_strided_slice %178 {offsets = [0, 128], sizes = [8, 128], strides = [1, 1]} : vector<8x384xf32> to vector<8x128xf32>
    %183 = vector.extract_strided_slice %178 {offsets = [0, 256], sizes = [8, 128], strides = [1, 1]} : vector<8x384xf32> to vector<8x128xf32>
    %184 = arith.mulf %182, %166 : vector<8x128xf32>
    %185 = arith.mulf %181, %180 : vector<8x128xf32>
    %186 = arith.addf %184, %185 : vector<8x128xf32>
    %187 = math.tanh %186 : vector<8x128xf32>
    %188 = arith.mulf %183, %187 : vector<8x128xf32>
    %189 = vector.extract_strided_slice %65 {offsets = [48, 0], sizes = [8, 512], strides = [1, 1]} : vector<72x512xf32> to vector<8x512xf32>
    %190 = arith.truncf %188 : vector<8x128xf32> to vector<8x128xbf16>
    %cst_56 = arith.constant dense<0.000000e+00> : vector<8x512xf32>
    %191 = tpu.matmul %190, %66, %cst_56 {dimension_numbers = #tpu.dot_dimension_numbers<[1], [0], [0], [1], [0, 0, 1, 1], [], []>} : vector<8x128xbf16>, vector<128x512xbf16>, vector<8x512xf32> -> vector<8x512xf32>
    %192 = arith.addf %189, %191 : vector<8x512xf32>
    %193 = vector.extract_strided_slice %192 {offsets = [0, 0], sizes = [8, 384], strides = [1, 1]} : vector<8x512xf32> to vector<8x384xf32>
    %194 = arith.negf %193 : vector<8x384xf32>
    %195 = math.exp %194 : vector<8x384xf32>
    %cst_57 = arith.constant 1.000000e+00 : f32
    %196 = vector.broadcast %cst_57 : f32 to vector<8x384xf32>
    %197 = arith.addf %196, %195 : vector<8x384xf32>
    %198 = arith.divf %196, %197 : vector<8x384xf32>
    %199 = vector.extract_strided_slice %192 {offsets = [0, 384], sizes = [8, 128], strides = [1, 1]} : vector<8x512xf32> to vector<8x128xf32>
    %200 = math.tanh %199 : vector<8x128xf32>
    %201 = vector.extract_strided_slice %198 {offsets = [0, 0], sizes = [8, 128], strides = [1, 1]} : vector<8x384xf32> to vector<8x128xf32>
    %202 = vector.extract_strided_slice %198 {offsets = [0, 128], sizes = [8, 128], strides = [1, 1]} : vector<8x384xf32> to vector<8x128xf32>
    %203 = vector.extract_strided_slice %198 {offsets = [0, 256], sizes = [8, 128], strides = [1, 1]} : vector<8x384xf32> to vector<8x128xf32>
    %204 = arith.mulf %202, %186 : vector<8x128xf32>
    %205 = arith.mulf %201, %200 : vector<8x128xf32>
    %206 = arith.addf %204, %205 : vector<8x128xf32>
    %207 = math.tanh %206 : vector<8x128xf32>
    %208 = arith.mulf %203, %207 : vector<8x128xf32>
    %209 = vector.extract_strided_slice %65 {offsets = [56, 0], sizes = [8, 512], strides = [1, 1]} : vector<72x512xf32> to vector<8x512xf32>
    %210 = arith.truncf %208 : vector<8x128xf32> to vector<8x128xbf16>
    %cst_58 = arith.constant dense<0.000000e+00> : vector<8x512xf32>
    %211 = tpu.matmul %210, %66, %cst_58 {dimension_numbers = #tpu.dot_dimension_numbers<[1], [0], [0], [1], [0, 0, 1, 1], [], []>} : vector<8x128xbf16>, vector<128x512xbf16>, vector<8x512xf32> -> vector<8x512xf32>
    %212 = arith.addf %209, %211 : vector<8x512xf32>
    %213 = vector.extract_strided_slice %212 {offsets = [0, 0], sizes = [8, 384], strides = [1, 1]} : vector<8x512xf32> to vector<8x384xf32>
    %214 = arith.negf %213 : vector<8x384xf32>
    %215 = math.exp %214 : vector<8x384xf32>
    %cst_59 = arith.constant 1.000000e+00 : f32
    %216 = vector.broadcast %cst_59 : f32 to vector<8x384xf32>
    %217 = arith.addf %216, %215 : vector<8x384xf32>
    %218 = arith.divf %216, %217 : vector<8x384xf32>
    %219 = vector.extract_strided_slice %212 {offsets = [0, 384], sizes = [8, 128], strides = [1, 1]} : vector<8x512xf32> to vector<8x128xf32>
    %220 = math.tanh %219 : vector<8x128xf32>
    %221 = vector.extract_strided_slice %218 {offsets = [0, 0], sizes = [8, 128], strides = [1, 1]} : vector<8x384xf32> to vector<8x128xf32>
    %222 = vector.extract_strided_slice %218 {offsets = [0, 128], sizes = [8, 128], strides = [1, 1]} : vector<8x384xf32> to vector<8x128xf32>
    %223 = vector.extract_strided_slice %218 {offsets = [0, 256], sizes = [8, 128], strides = [1, 1]} : vector<8x384xf32> to vector<8x128xf32>
    %224 = arith.mulf %222, %206 : vector<8x128xf32>
    %225 = arith.mulf %221, %220 : vector<8x128xf32>
    %226 = arith.addf %224, %225 : vector<8x128xf32>
    %227 = math.tanh %226 : vector<8x128xf32>
    %228 = arith.mulf %223, %227 : vector<8x128xf32>
    %229 = vector.extract_strided_slice %65 {offsets = [64, 0], sizes = [8, 512], strides = [1, 1]} : vector<72x512xf32> to vector<8x512xf32>
    %230 = arith.truncf %228 : vector<8x128xf32> to vector<8x128xbf16>
    %cst_60 = arith.constant dense<0.000000e+00> : vector<8x512xf32>
    %231 = tpu.matmul %230, %66, %cst_60 {dimension_numbers = #tpu.dot_dimension_numbers<[1], [0], [0], [1], [0, 0, 1, 1], [], []>} : vector<8x128xbf16>, vector<128x512xbf16>, vector<8x512xf32> -> vector<8x512xf32>
    %232 = arith.addf %229, %231 : vector<8x512xf32>
    %233 = vector.extract_strided_slice %232 {offsets = [0, 0], sizes = [8, 384], strides = [1, 1]} : vector<8x512xf32> to vector<8x384xf32>
    %234 = arith.negf %233 : vector<8x384xf32>
    %235 = math.exp %234 : vector<8x384xf32>
    %cst_61 = arith.constant 1.000000e+00 : f32
    %236 = vector.broadcast %cst_61 : f32 to vector<8x384xf32>
    %237 = arith.addf %236, %235 : vector<8x384xf32>
    %238 = arith.divf %236, %237 : vector<8x384xf32>
    %239 = vector.extract_strided_slice %232 {offsets = [0, 384], sizes = [8, 128], strides = [1, 1]} : vector<8x512xf32> to vector<8x128xf32>
    %240 = math.tanh %239 : vector<8x128xf32>
    %241 = vector.extract_strided_slice %238 {offsets = [0, 0], sizes = [8, 128], strides = [1, 1]} : vector<8x384xf32> to vector<8x128xf32>
    %242 = vector.extract_strided_slice %238 {offsets = [0, 128], sizes = [8, 128], strides = [1, 1]} : vector<8x384xf32> to vector<8x128xf32>
    %243 = vector.extract_strided_slice %238 {offsets = [0, 256], sizes = [8, 128], strides = [1, 1]} : vector<8x384xf32> to vector<8x128xf32>
    %244 = arith.mulf %242, %226 : vector<8x128xf32>
    %245 = arith.mulf %241, %240 : vector<8x128xf32>
    %246 = arith.addf %244, %245 : vector<8x128xf32>
    %247 = math.tanh %246 : vector<8x128xf32>
    %248 = arith.mulf %243, %247 : vector<8x128xf32>
    %249 = tpu.concatenate %88, %108, %128, %148, %168, %188, %208, %228, %248 in 0 : vector<8x128xf32>, vector<8x128xf32>, vector<8x128xf32>, vector<8x128xf32>, vector<8x128xf32>, vector<8x128xf32>, vector<8x128xf32>, vector<8x128xf32>, vector<8x128xf32> -> vector<72x128xf32>
    %c0_62 = arith.constant 0 : index
    %c0_63 = arith.constant 0 : index
    %250 = vector.load %arg15[%c0_62, %c0_63] : memref<128x256xbf16, #tpu.memory_space<vmem>>, vector<128x256xbf16>
    %251 = arith.truncf %249 : vector<72x128xf32> to vector<72x128xbf16>
    %cst_64 = arith.constant dense<0.000000e+00> : vector<72x256xf32>
    %252 = tpu.matmul %251, %250, %cst_64 {dimension_numbers = #tpu.dot_dimension_numbers<[1], [0], [0], [1], [0, 0, 1, 1], [], []>} : vector<72x128xbf16>, vector<128x256xbf16>, vector<72x256xf32> -> vector<72x256xf32>
    %c0_65 = arith.constant 0 : index
    %c0_66 = arith.constant 0 : index
    %253 = vector.load %arg16[%c0_65, %c0_66] : memref<1x256xf32, #tpu.memory_space<vmem>>, vector<1x256xf32>
    %254 = vector.broadcast %253 : vector<1x256xf32> to vector<72x256xf32>
    %255 = arith.addf %252, %254 : vector<72x256xf32>
    %c0_67 = arith.constant 0 : index
    %c0_68 = arith.constant 0 : index
    %256 = vector.load %arg17[%c0_67, %c0_68] : memref<72x256xf32, #tpu.memory_space<vmem>>, vector<72x256xf32>
    tpu.vector_store %arg17[%c0_67, %c0_68], %255 {strides = array<i32>} : memref<72x256xf32, #tpu.memory_space<vmem>>, vector<72x256xf32>,
    return
  }
}

</mosaic_0001>

<bundles_post_ra>
// kernel: image_captioning_forward.1
= control target key start
LH: loop header
LB: loop body
LE: loop exit
PB: predicated region body
PF: predicated region fallthrough
CT: control target
= control target key end

     0   :  { %s5058_s0 = inlined_call_operand.vmem [shape: f32[8,4,256], index: 0, kind: input, shape index: {}]   ;;  %s5059_s1 = inlined_call_operand.vmem [shape: s32[64,1], index: 1, kind: input, shape index: {}]   ;;  %s5060_s2 = inlined_call_operand.vmem [shape: bf16[4,128], index: 2, kind: input, shape index: {}]   ;;  %s5061_s3 = inlined_call_operand.vmem [shape: f32[1,128], index: 3, kind: input, shape index: {}]   ;;  %s5062_s4 = inlined_call_operand.vmem [shape: bf16[128,128], index: 4, kind: input, shape index: {}]   ;;  %s5063_s5 = inlined_call_operand.vmem [shape: f32[1,128], index: 5, kind: input, shape index: {}]   ;;  %s5064_s6 = inlined_call_operand.hbm [shape: bf16[256,128], index: 6, kind: input, shape index: {}]   ;;  %s5065_s7 = inlined_call_operand.hbm [shape: f32[64,128], index: 7, kind: input, shape index: {}]   ;;  %s5066_s8 = inlined_call_operand.vmem [shape: f32[1,128], index: 8, kind: input, shape index: {}]   ;;  %s5067_s9 = inlined_call_operand.vmem [shape: f32[1,128], index: 9, kind: input, shape index: {}]   ;;  %s5068_s10 = inlined_call_operand.hbm [shape: bf16[128,128], index: 10, kind: input, shape index: {}]   ;;  %s5069_s11 = inlined_call_operand.vmem [shape: f32[1,128], index: 11, kind: input, shape index: {}]   ;;  %s5070_s12 = inlined_call_operand.vmem [shape: bf16[128,512], index: 12, kind: input, shape index: {}]   ;;  %s5071_s13 = inlined_call_operand.hbm [shape: bf16[128,512], index: 13, kind: input, shape index: {}]   ;;  %s5072_s14 = inlined_call_operand.vmem [shape: f32[1,512], index: 14, kind: input, shape index: {}]   ;;  %s5073_s15 = inlined_call_operand.hbm [shape: bf16[128,256], index: 15, kind: input, shape index: {}]   ;;  %s5074_s16 = inlined_call_operand.vmem [shape: f32[1,256], index: 16, kind: input, shape index: {}]   ;;  %s5075_s17 = inlined_call_operand.vmem [shape: f32[72,256], index: 17, kind: output, shape index: {}]  }
   0x1   :  { %5083 = sst [smem:[#allocation40_spill]] %s5058_s0 }
   0x2   :  { %5084 = sst [smem:[#allocation41_spill]] %s5059_s1 }
   0x3   :  { %22 = vsyncpa [#allocation3], 0 }
   0x4   :  { %23 = vsyncpa [#allocation5], 0  ;;  %s54_s26 = sshll.u32 %s5065_s7, 4  ;;  %s55_s26 = int_to_ptr.hbm [resolvable:$true] %s54_s26 }
   0x5   :  { %24 = vsyncpa [#allocation8], 0  ;;  %s3740_s27 = smov [#allocation4]   ;;  %s88_s30 = sshll.u32 %s5071_s13, 4  ;;  %s89_s30 = int_to_ptr.hbm [resolvable:$true] %s88_s30 }
   0x6   :  { %s56_s28 = sshll.u32 %s3740_s27, 4  ;;  %s5078_s18 = smov 128   ;;  %s57_s28 = int_to_ptr.vmem [resolvable:$true] %s56_s28 }
   0x7   :  { %s5079_s19 = smov 8   ;;  %s3743_s1 = smov [#allocation7]  }
   0x8   :  { %62 = dma.hbm_to_vmem [thread:$0]  %s55_s26, 1024, %s57_s28, [#allocation5], %s5078_s18, %s5078_s18, %s5079_s19  }
   0x9   :  { %s90_s20 = sshll.u32 %s3743_s1, 4  ;;  %s3744_s7 = smov 256   ;;  %s91_s20 = int_to_ptr.vmem [resolvable:$true] %s90_s20 }
   0xa   :  { %s3745_s21 = smov 16   ;;  %s41_s24 = sshll.u32 %s5064_s6, 4  ;;  %s42_s24 = int_to_ptr.hbm [resolvable:$true] %s41_s24 }
   0xb   :  { %96 = dma.hbm_to_vmem [thread:$0]  %s89_s30, 4096, %s91_s20, [#allocation8], %s3744_s7, %s3744_s7, %s3745_s21  }
   0xc   :  { %s3746_s25 = smov [#allocation2]   ;;  %s71_s0 = sshll.u32 %s5068_s10, 4  ;;  %s72_s0 = int_to_ptr.hbm [resolvable:$true] %s71_s0 }
   0xd   :  { %s43_s13 = sshll.u32 %s3746_s25, 4  ;;  %s3747_s26 = smov 64   ;;  %s44_s13 = int_to_ptr.vmem [resolvable:$true] %s43_s13 }
   0xe   :  { %s3748_s28 = smov 4   ;;  %s3749_s1 = smov [#allocation6]  }
   0xf   :  { %49 = dma.hbm_to_vmem [thread:$0]  %s42_s24, 2048, %s44_s13, [#allocation3], %s3747_s26, %s3747_s26, %s3748_s28  }
  0x10   :  { %s73_s18 = sshll.u32 %s3749_s1, 4  ;;  %s103_s20 = sshll.u32 %s5073_s15, 4  ;;  %s74_s18 = int_to_ptr.vmem [resolvable:$true] %s73_s18  ;;  %s104_s20 = int_to_ptr.hbm [resolvable:$true] %s103_s20 }
  0x11   :  { %79 = dma.hbm_to_vmem [thread:$0]  %s72_s0, 1024, %s74_s18, [#allocation5], %s3747_s26, %s3747_s26, %s3748_s28  }
  0x12   :  { %s3750_s6 = smov [#allocation9]   ;;  %s5085_s21 = smov 8  }
  0x13   :  { %s105_s7 = sshll.u32 %s3750_s6, 4  ;;  %s5086_s22 = smov 128   ;;  %s106_s7 = int_to_ptr.vmem [resolvable:$true] %s105_s7 }
  0x14   :  { %111 = dma.hbm_to_vmem [thread:$0]  %s104_s20, 2048, %s106_s7, [#allocation8], %s5086_s22, %s5086_s22, %s5085_s21  }
  0x15   :  { %3734 = dma.done.wait [#allocation3], 2048  }
  0x16   :  { %3735 = vsyncadd [#allocation3], 4294965248 }
  0x17   :  { %3736 = dma.done.wait [#allocation5], 2048  }
  0x18   :  { %3737 = vsyncadd [#allocation5], 4294965248 }
  0x19   :  { %3738 = dma.done.wait [#allocation8], 6144  }
  0x1a   :  { %3739 = vsyncadd [#allocation8], 4294961152  ;;  %v3751_v0 = vmov 0   ;;  %s5087_s18 = sld [smem:[#allocation41_spill]]  ;;  %v3314_v4 = vld [vmem:[#allocation2 + $0x38] sm:$0xff]  ;;  %v3313_v6 = vld [vmem:[#allocation2 + $0x30] sm:$0xff]  ;;  %v279_v25 = vlaneseq }
  0x1b   :  { %3443 = vset.pattern.permute.xlu1 %v3751_v0  ;;  %3442 = vset.pattern.permute.xlu0 %v3751_v0  ;;  %v3322_v5 = vld [vmem:[#allocation2 + $0x78] sm:$0xff]  ;;  %v3321_v9 = vld [vmem:[#allocation2 + $0x70] sm:$0xff]  ;;  %v3312_v11 = vld [vmem:[#allocation2 + $0x28] sm:$0xff]  ;;  %v3752_v30 = vmov 1.0|1.0   ;;  %s5088_s22 = sld [smem:[#allocation40_spill]] }
  0x1c   :  { %3444 = vset.pattern.permute.xlu2 %v3751_v0  ;;  %633 = vmatpush.bf16.msra.mxu2 %v3314_v4  ;;  %v3320_v12 = vld [vmem:[#allocation2 + $0x68] sm:$0xff]  ;;  %v3311_v13 = vld [vmem:[#allocation2 + $0x20] sm:$0xff]  ;;  %v3310_v17 = vld [vmem:[#allocation2 + $0x18] sm:$0xff]  ;;  %v3893_v27 = vand.u32 127, %v279_v25  ;;  %vm194_vm12 = vcmask 1043456  }
  0x1d   :  { %662 = vmatpush.bf16.msra.mxu3 %v3322_v5  ;;  %v3319_v16 = vld [vmem:[#allocation2 + $0x60] sm:$0xff]  ;;  %v3318_v18 = vld [vmem:[#allocation2 + $0x58] sm:$0xff]  ;;  %v3309_v19 = vld [vmem:[#allocation2 + $0x10] sm:$0xff] }
  0x1e   :  { %v3317_v20 = vld [vmem:[#allocation2 + $0x50] sm:$0xff]  ;;  %v3308_v21 = vld [vmem:[#allocation2 + $0x8] sm:$0xff]  ;;  %v3307_v23 = vld [vmem:[#allocation2] sm:$0xff]  ;;  %v416_v28 = vadd.s32 128, %v3893_v27 }
  0x1f   :  { %v3316_v22 = vld [vmem:[#allocation2 + $0x48] sm:$0xff]  ;;  %v3315_v24 = vld [vmem:[#allocation2 + $0x40] sm:$0xff] }
  0x20   :  { %v410_v1 = vld [vmem:[%s5087_s18 + $0x10] sm:$0xff]  ;;  %v408_v2 = vld [vmem:[%s5087_s18] sm:$0xff]  ;;  %v411_v7 = vld [vmem:[%s5087_s18 + $0x18] sm:$0xff]  ;;  %634 = vmatpush.bf16.msra.mxu2 %v3313_v6 }
  0x21   :  { %424 = vperm.xlu1 %3443, %v410_v1   ;;  %418 = vperm.xlu0 %3442, %v408_v2   ;;  %v412_v3 = vld [vmem:[%s5087_s18 + $0x20] sm:$0xff]  ;;  %v409_v8 = vld [vmem:[%s5087_s18 + $0x8] sm:$0xff]  ;;  %v415_v14 = vld [vmem:[%s5087_s18 + $0x38] sm:$0xff] }
  0x22   :  { %430 = vperm.xlu2 %3444, %v412_v3   ;;  %v413_v10 = vld [vmem:[%s5087_s18 + $0x28] sm:$0xff]  ;;  %663 = vmatpush.bf16.msra.mxu3 %v3321_v9  ;;  %v414_v15 = vld [vmem:[%s5087_s18 + $0x30] sm:$0xff]  ;;  %v135_v34 = vld [vmem:[%s5088_s22] sm:$0xff] }
  0x23   :  { %v136_v35 = vld [vmem:[%s5088_s22 + $0x8] sm:$0xff]  ;;  %151 = vst [vmem:[#allocation1] ss:$2 sm:$0xff] %v135_v34  ;;  %v139_v36 = vld [vmem:[%s5088_s22 + $0x20] sm:$0xff]  ;;  %v137_v51 = vld [vmem:[%s5088_s22 + $0x10] sm:$0xff] }
  0x24   :  { %635 = vmatpush.bf16.msra.mxu2 %v3312_v11  ;;  %155 = vst [vmem:[#allocation1 + $0x10] ss:$2 sm:$0xff] %v136_v35  ;;  %v140_v37 = vld [vmem:[%s5088_s22 + $0x28] sm:$0xff]  ;;  %v138_v52 = vld [vmem:[%s5088_s22 + $0x18] sm:$0xff]  ;;  %v141_v58 = vld [vmem:[%s5088_s22 + $0x30] sm:$0xff] }
  0x25   :  { %159 = vst [vmem:[#allocation1 + $0x20] ss:$2 sm:$0xff] %v137_v51  ;;  %v142_v59 = vld [vmem:[%s5088_s22 + $0x38] sm:$0xff] }
  0x26   :  { %664 = vmatpush.bf16.msra.mxu3 %v3320_v12  ;;  %163 = vst [vmem:[#allocation1 + $0x30] ss:$2 sm:$0xff] %v138_v52  ;;  %v531_v35 = vld [vmem:[#allocation4 + $0x10] sm:$0xff] }
  0x28   :  { %636 = vmatpush.bf16.msra.mxu2 %v3311_v13 }
  0x29   :  { %427 = vperm.xlu1 %3443, %v411_v7   ;;  %421 = vperm.xlu0 %3442, %v409_v8  }
  0x2a   :  { %433 = vperm.xlu2 %3444, %v413_v10   ;;  %665 = vmatpush.bf16.msra.mxu3 %v3319_v16  ;;  %v152_v39 = vld.sshfl [vmem:[#allocation1] sm:$0xff pattern:$0x75316420]  ;;  %v153_v40 = vld.sshfl [vmem:[#allocation1 + $0x8] sm:$0xff pattern:$0x75316420] }
  0x2b   :  { %v195_v41 = vsel %vm194_vm12, %v152_v39, 0.0  ;;  %v196_v42 = vsel %vm194_vm12, %v153_v40, 0.0  ;;  %166 = vst [vmem:[#allocation1] ss:$2 sm:$0xff] %v139_v36  ;;  %v532_v36 = vld [vmem:[#allocation4 + $0x18] sm:$0xff] }
  0x2c   :  { %637 = vmatpush.bf16.msra.mxu2 %v3310_v17  ;;  %v197_v43 = vadd.f32 %v196_v42, %v195_v41  ;;  %v156_v44 = vld.sshfl [vmem:[#allocation1 + $0x10] sm:$0xff pattern:$0x75316420]  ;;  %v157_v45 = vld.sshfl [vmem:[#allocation1 + $0x18] sm:$0xff pattern:$0x75316420] }
  0x2d   :  { %v200_v46 = vsel %vm194_vm12, %v156_v44, 0.0  ;;  %v201_v47 = vsel %vm194_vm12, %v157_v45, 0.0  ;;  %169 = vst [vmem:[#allocation1 + $0x10] ss:$2 sm:$0xff] %v140_v37  ;;  %v529_v17 = vld [vmem:[#allocation4] sm:$0xff] }
  0x2e   :  { %666 = vmatpush.bf16.msra.mxu3 %v3318_v18  ;;  %v202_v48 = vadd.f32 %v201_v47, %v200_v46  ;;  %v160_v53 = vld.sshfl [vmem:[#allocation1 + $0x20] sm:$0xff pattern:$0x75316420]  ;;  %v161_v54 = vld.sshfl [vmem:[#allocation1 + $0x28] sm:$0xff pattern:$0x75316420] }
  0x2f   :  { %v205_v55 = vsel %vm194_vm12, %v160_v53, 0.0  ;;  %v206_v56 = vsel %vm194_vm12, %v161_v54, 0.0  ;;  %172 = vst [vmem:[#allocation1 + $0x20] ss:$2 sm:$0xff] %v141_v58  ;;  %v535_v53 = vld [vmem:[#allocation4 + $0x30] sm:$0xff]  ;;  %v536_v58 = vld [vmem:[#allocation4 + $0x38] sm:$0xff] }
  0x30   :  { %638 = vmatpush.bf16.msra.mxu2 %v3309_v19  ;;  %v207_v57 = vadd.f32 %v206_v56, %v205_v55  ;;  %v164_v60 = vld.sshfl [vmem:[#allocation1 + $0x30] sm:$0xff pattern:$0x75316420]  ;;  %v165_v61 = vld.sshfl [vmem:[#allocation1 + $0x38] sm:$0xff pattern:$0x75316420] }
  0x31   :  { %439 = vperm.xlu1 %3443, %v415_v14   ;;  %436 = vperm.xlu0 %3442, %v414_v15   ;;  %v210_v62 = vsel %vm194_vm12, %v164_v60, 0.0  ;;  %175 = vst [vmem:[#allocation1 + $0x30] ss:$2 sm:$0xff] %v142_v59  ;;  %v211_v63 = vsel %vm194_vm12, %v165_v61, 0.0 }
  0x32   :  { %667 = vmatpush.bf16.msra.mxu3 %v3317_v20  ;;  %v167_v1 = vld.sshfl [vmem:[#allocation1] sm:$0xff pattern:$0x75316420]  ;;  %v212_v2 = vadd.f32 %v211_v63, %v210_v62  ;;  %v168_v3 = vld.sshfl [vmem:[#allocation1 + $0x8] sm:$0xff pattern:$0x75316420] }
  0x33   :  { %v215_v4 = vsel %vm194_vm12, %v167_v1, 0.0  ;;  %v216_v5 = vsel %vm194_vm12, %v168_v3, 0.0  ;;  %v3753_v63 = vmov 256.0   ;;  %v3754_v1 = vmov 128.0  }
  0x34   :  { %639 = vmatpush.bf16.msra.mxu2 %v3308_v21  ;;  %v217_v6 = vadd.f32 %v216_v5, %v215_v4  ;;  %3450 = vrcp.f32 %v3753_v63 }
  0x35   :  { %3452 = vrcp.f32 %v3754_v1 }
  0x36   :  { %668 = vmatpush.bf16.msra.mxu3 %v3316_v22  ;;  %v173_v7 = vld.sshfl [vmem:[#allocation1 + $0x20] sm:$0xff pattern:$0x75316420]  ;;  %v174_v8 = vld.sshfl [vmem:[#allocation1 + $0x28] sm:$0xff pattern:$0x75316420] }
  0x37   :  { %v225_v9 = vsel %vm194_vm12, %v173_v7, 0.0  ;;  %v226_v10 = vsel %vm194_vm12, %v174_v8, 0.0  ;;  %v530_v22 = vld [vmem:[#allocation4 + $0x8] sm:$0xff] }
  0x38   :  { %640 = vmatpush.bf16.msra.mxu2 %v3307_v23  ;;  %v227_v11 = vadd.f32 %v226_v10, %v225_v9  ;;  %v176_v12 = vld.sshfl [vmem:[#allocation1 + $0x30] sm:$0xff pattern:$0x75316420]  ;;  %v177_v13 = vld.sshfl [vmem:[#allocation1 + $0x38] sm:$0xff pattern:$0x75316420] }
  0x39   :  { %v230_v14 = vsel %vm194_vm12, %v176_v12, 0.0  ;;  %v231_v15 = vsel %vm194_vm12, %v177_v13, 0.0 }
  0x3a   :  { %669 = vmatpush.bf16.msra.mxu3 %v3315_v24  ;;  %v232_v16 = vadd.f32 %v231_v15, %v230_v14  ;;  %v250_v15 = vld [vmem:[%s5060_s2] sm:$0x3] }
  0x53   :  { %198 = vadd.xlane.f32.xlu2 %v197_v43  ;;  %v533_v43 = vld [vmem:[#allocation4 + $0x20] sm:$0xff] }
  0x5b   :  { %203 = vadd.xlane.f32.xlu0 %v202_v48  ;;  %208 = vadd.xlane.f32.xlu1 %v207_v57  ;;  %v534_v48 = vld [vmem:[#allocation4 + $0x28] sm:$0xff] }
  0x63   :  { %213 = vadd.xlane.f32.xlu0 %v212_v2  ;;  %218 = vadd.xlane.f32.xlu1 %v217_v6  ;;  %v3451_v2 = vpop.eup %3450 }
  0x64   :  { %v3453_v3 = vpop.eup %3452  ;;  %v236_v4 = vmul.f32 256.0, %v3451_v2 }
  0x65   :  { %v708_v5 = vmul.f32 128.0, %v3453_v3 }
  0x66   :  { %v237_v6 = vsub.f32 1.0, %v236_v4 }
  0x67   :  { %v709_v7 = vsub.f32 1.0, %v708_v5 }
  0x68   :  { %v238_v8 = vmul.f32 %v3451_v2, %v237_v6 }
  0x69   :  { %v710_v12 = vmul.f32 %v3453_v3, %v709_v7 }
  0x6a   :  { %v239_v13 = vadd.f32 %v3451_v2, %v238_v8 }
  0x6b   :  { %228 = vadd.xlane.f32.xlu0 %v227_v11  ;;  %233 = vadd.xlane.f32.xlu1 %v232_v16  ;;  %v711_v14 = vadd.f32 %v3453_v3, %v710_v12 }
  0x7c   :  { %v431_v33 = vpop.permute.xlu2 %430 }
  0x7d   :  { %vm449_vm13 = vcmp.eq.s32.totalorder %v3893_v27, %v431_v33  ;;  %vm450_vm15 = vcmp.eq.s32.totalorder %v416_v28, %v431_v33 }
  0x84   :  { %v434_v38 = vpop.permute.xlu2 %433 }
  0x85   :  { %vm451_vm14 = vcmp.eq.s32.totalorder %v3893_v27, %v434_v38 }
  0x93   :  { %v419_v26 = vpop.permute.xlu0 %418  ;;  %v425_v31 = vpop.permute.xlu1 %424 }
  0x94   :  { %vm441_vm0 = vcmp.eq.s32.totalorder %v3893_v27, %v419_v26  ;;  %vm442_vm3 = vcmp.eq.s32.totalorder %v416_v28, %v419_v26  ;;  %vm445_vm6 = vcmp.eq.s32.totalorder %v3893_v27, %v425_v31  ;;  %vm446_vm8 = vcmp.eq.s32.totalorder %v416_v28, %v425_v31 }
  0x9b   :  { %v422_v29 = vpop.permute.xlu0 %421  ;;  %v428_v32 = vpop.permute.xlu1 %427 }
  0x9c   :  { %vm443_vm1 = vcmp.eq.s32.totalorder %v3893_v27, %v422_v29  ;;  %vm444_vm2 = vcmp.eq.s32.totalorder %v416_v28, %v422_v29  ;;  %vm447_vm7 = vcmp.eq.s32.totalorder %v3893_v27, %v428_v32  ;;  %vm448_vm9 = vcmp.eq.s32.totalorder %v416_v28, %v428_v32  ;;  %v171_v29 = vld.sshfl [vmem:[#allocation1 + $0x18] sm:$0xff pattern:$0x75316420] }
  0x9d   :  { %vm2904_vm4 = vmpackc.low %vm443_vm1, %vm441_vm0  ;;  %vm452_vm0 = vcmp.eq.s32.totalorder %v416_v28, %v434_v38  ;;  %v221_v31 = vsel %vm194_vm12, %v171_v29, 0.0 }
  0x9e   :  { %2905 = vmatmul.msk.bf16.vlgmr.msra.gmra.mxu2 %vm2904_vm4, %v3752_v30  ;;  %vm2912_vm5 = vmpackc.low %vm444_vm2, %vm442_vm3 }
  0x9f   :  { %2913 = vmatmul.msk.bf16.vlgmr.msra.gmra.mxu3 %vm2912_vm5, %v3752_v30  ;;  %vm2906_vm10 = vmpackc.low %vm447_vm7, %vm445_vm6 }
  0xa0   :  { %vm2914_vm11 = vmpackc.low %vm448_vm9, %vm446_vm8  ;;  %vm240_vm9 = vweird.f32 %v3451_v2 }
  0xa1   :  { %vm2908_vm1 = vmpackc.low %vm451_vm14, %vm449_vm13  ;;  %vm291_vm13 = vcmask 1042434   ;;  %vm293_vm14 = vcmask 1043459  }
  0xa2   :  { %vm2916_vm2 = vmpackc.low %vm452_vm0, %vm450_vm15  ;;  %vm295_vm15 = vcmask 1044484   ;;  %vm297_vm0 = vcmask 1045509  }
  0xa3   :  { %v440_v49 = vpop.permute.xlu1 %439  ;;  %v437_v50 = vpop.permute.xlu0 %436 }
  0xa4   :  { %vm455_vm3 = vcmp.eq.s32.totalorder %v3893_v27, %v440_v49  ;;  %vm453_vm4 = vcmp.eq.s32.totalorder %v3893_v27, %v437_v50  ;;  %vm456_vm5 = vcmp.eq.s32.totalorder %v416_v28, %v440_v49  ;;  %vm454_vm6 = vcmp.eq.s32.totalorder %v416_v28, %v437_v50  ;;  %v170_v28 = vld.sshfl [vmem:[#allocation1 + $0x10] sm:$0xff pattern:$0x75316420] }
  0xa5   :  { %vm2910_vm7 = vmpackc.low %vm455_vm3, %vm453_vm4  ;;  %vm304_vm3 = vcmask 31744  }
  0xa6   :  { %vm2918_vm8 = vmpackc.low %vm456_vm5, %vm454_vm6 }
  0xae   :  { %2907 = vmatmul.msk.bf16.gmra.mxu2 %vm2906_vm10, %v3752_v30  ;;  %vm308_vm10 = vcmask 1041408  }
  0xaf   :  { %2915 = vmatmul.msk.bf16.gmra.mxu3 %vm2914_vm11, %v3752_v30  ;;  %vm712_vm11 = vweird.f32 %v3453_v3  ;;  %v310_v16 = vsel %vm308_vm10, %v250_v15, 0 }
  0xb0   :  { %319 = vmatpush.bf16.msra.mxu0 %v310_v16 }
  0xbe   :  { %2909 = vmatmul.msk.bf16.gmra.mxu2 %vm2908_vm1, %v3752_v30  ;;  %vm299_vm1 = vcmask 1046534  }
  0xbf   :  { %2917 = vmatmul.msk.bf16.gmra.mxu3 %vm2916_vm2, %v3752_v30  ;;  %vm301_vm2 = vcmask 1047559  }
  0xc6   :  { %v199_v10 = vpop.xlane.xlu2 %198 }
  0xce   :  { %2911 = vmatmul.msk.bf16.gmra.mxu2 %vm2910_vm7, %v3752_v30  ;;  %v204_v9 = vpop.xlane.xlu0 %203  ;;  %v209_v11 = vpop.xlane.xlu1 %208 }
  0xcf   :  { %2919 = vmatmul.msk.bf16.gmra.mxu3 %vm2918_vm8, %v3752_v30  ;;  %v220_v30 = vsel %vm194_vm12, %v170_v28, 0.0  ;;  %vm289_vm12 = vcmask 1041409  }
  0xd0   :  { %v222_v34 = vadd.f32 %v221_v31, %v220_v30 }
 0x121   :  { %v642_v18 = vpop.f32.mrf.mxu2 }
 0x122   :  { %v643_v19 = vadd.f32 %v642_v18, %v529_v17  ;;  %v671_v20 = vpop.f32.mrf.mxu3  ;;  %v241_v17 = vsel %vm240_vm9, %v3451_v2, %v239_v13  ;;  %v3971_v18 = vsel %vm712_vm11, %v3453_v3, %v711_v14 }
 0x123   :  { %v244_v28 = vmul.f32 %v241_v17, %v209_v11 }
 0x124   :  { %v3942_v21 = vadd.f32 %v671_v20, %v643_v19  ;;  %v242_v19 = vmul.f32 %v241_v17, %v199_v10  ;;  %v243_v20 = vmul.f32 %v241_v17, %v204_v9 }
 0x126   :  { %691 = vadd.xlane.f32.xlu2 %v3942_v21  ;;  %v251_v29 = vpack.c.bf16 %v242_v19, %v242_v19  ;;  %v252_v30 = vpack.c.bf16 %v243_v20, %v243_v20 }
 0x129   :  { %v644_v23 = vpop.f32.mrf.mxu2 }
 0x12a   :  { %v645_v24 = vadd.f32 %v644_v23, %v530_v22  ;;  %v673_v25 = vpop.f32.mrf.mxu3  ;;  %v214_v22 = vpop.xlane.xlu0 %213 }
 0x12c   :  { %v3945_v26 = vadd.f32 %v673_v25, %v645_v24  ;;  %v219_v24 = vpop.xlane.xlu1 %218 }
 0x12e   :  { %693 = vadd.xlane.f32.xlu2 %v3945_v26 }
 0x131   :  { %v647_v32 = vpop.f32.mrf.mxu2 }
 0x132   :  { %v676_v33 = vpop.f32.mrf.mxu3  ;;  %v648_v37 = vadd.f32 %v647_v32, %v531_v35  ;;  %v245_v32 = vmul.f32 %v241_v17, %v214_v22  ;;  %v271_v35 = vunpack.c.l.b16 %v251_v29 }
 0x134   :  { %v3950_v41 = vadd.f32 %v676_v33, %v648_v37  ;;  %v229_v37 = vpop.xlane.xlu0 %228 }
 0x136   :  { %223 = vadd.xlane.f32.xlu2 %v222_v34  ;;  %v253_v34 = vpack.c.bf16 %v244_v28, %v244_v28 }
 0x139   :  { %v649_v38 = vpop.f32.mrf.mxu2 }
 0x13a   :  { %v650_v39 = vadd.f32 %v649_v38, %v532_v36  ;;  %v678_v40 = vpop.f32.mrf.mxu3  ;;  %v272_v36 = vunpack.c.l.b16 %v252_v30  ;;  %v246_v38 = vmul.f32 %v241_v17, %v219_v24 }
 0x13c   :  { %v3952_v42 = vadd.f32 %v678_v40, %v650_v39  ;;  %v234_v40 = vpop.xlane.xlu1 %233 }
 0x13e   :  { %697 = vadd.xlane.f32.xlu0 %v3952_v42  ;;  %695 = vadd.xlane.f32.xlu2 %v3950_v41 }
 0x141   :  { %v652_v44 = vpop.f32.mrf.mxu2 }
 0x142   :  { %v653_v45 = vadd.f32 %v652_v44, %v533_v43  ;;  %v681_v46 = vpop.f32.mrf.mxu3  ;;  %v254_v43 = vpack.c.bf16 %v245_v32, %v245_v32 }
 0x144   :  { %v3956_v47 = vadd.f32 %v681_v46, %v653_v45  ;;  %v273_v45 = vunpack.c.l.b16 %v253_v34  ;;  %v248_v46 = vmul.f32 %v241_v17, %v229_v37 }
 0x146   :  { %699 = vadd.xlane.f32.xlu1 %v3956_v47 }
 0x149   :  { %v654_v49 = vpop.f32.mrf.mxu2 }
 0x14a   :  { %v655_v50 = vadd.f32 %v654_v49, %v534_v48  ;;  %v683_v51 = vpop.f32.mrf.mxu3  ;;  %v282_v48 = vperm.slane %v272_v36, %v3893_v27 }
 0x14c   :  { %v3959_v52 = vadd.f32 %v683_v51, %v655_v50  ;;  %v249_v50 = vmul.f32 %v241_v17, %v234_v40  ;;  %v255_v51 = vpack.c.bf16 %v246_v38, %v246_v38  ;;  %v3330_v40 = vld [vmem:[#allocation6 + $0x38] sm:$0xff] }
 0x14d   :  { %3411 = vmatpush.bf16.msrb.mxu3 %v3330_v40  ;;  %954 = vmatpush.bf16.msrb.mxu0 %v3330_v40 }
 0x14e   :  { %701 = vadd.xlane.f32.xlu2 %v3959_v52 }
 0x151   :  { %v657_v54 = vpop.f32.mrf.mxu2 }
 0x152   :  { %v658_v55 = vadd.f32 %v657_v54, %v535_v53  ;;  %v686_v56 = vpop.f32.mrf.mxu3  ;;  %v274_v53 = vunpack.c.l.b16 %v254_v43  ;;  %v3329_v43 = vld [vmem:[#allocation6 + $0x30] sm:$0xff] }
 0x153   :  { %955 = vmatpush.bf16.msrb.mxu0 %v3329_v43  ;;  %3412 = vmatpush.bf16.msrb.mxu3 %v3329_v43 }
 0x154   :  { %v3962_v57 = vadd.f32 %v686_v56, %v658_v55  ;;  %v283_v55 = vperm.slane %v273_v45, %v3893_v27  ;;  %v257_v56 = vpack.c.bf16 %v248_v46, %v248_v46  ;;  %v284_v63 = vperm.slane %v274_v53, %v3893_v27  ;;  %v3304_v45 = vld [vmem:[%s5062_s4 + $0x28] sm:$0xff]  ;;  %v3301_v53 = vld [vmem:[%s5062_s4 + $0x10] sm:$0xff] }
 0x155   :  { %v3327_v46 = vld [vmem:[#allocation6 + $0x20] sm:$0xff] }
 0x156   :  { %703 = vadd.xlane.f32.xlu0 %v3962_v57  ;;  %v277_v2 = vunpack.c.l.b16 %v257_v56  ;;  %v3300_v56 = vld [vmem:[%s5062_s4 + $0x8] sm:$0xff] }
 0x158   :  { %v287_v8 = vperm.slane %v277_v2, %v3893_v27 }
 0x159   :  { %v659_v59 = vpop.f32.mrf.mxu2 }
 0x15a   :  { %v660_v60 = vadd.f32 %v659_v59, %v536_v58  ;;  %v688_v61 = vpop.f32.mrf.mxu3  ;;  %v258_v59 = vpack.c.bf16 %v249_v50, %v249_v50  ;;  %v3302_v50 = vld [vmem:[%s5062_s4 + $0x18] sm:$0xff] }
 0x15c   :  { %v3965_v62 = vadd.f32 %v688_v61, %v660_v60  ;;  %v275_v60 = vunpack.c.l.b16 %v255_v51  ;;  %v278_v4 = vunpack.c.l.b16 %v258_v59  ;;  %v3325_v51 = vld [vmem:[#allocation6 + $0x10] sm:$0xff] }
 0x15e   :  { %705 = vadd.xlane.f32.xlu1 %v3965_v62  ;;  %v285_v5 = vperm.slane %v275_v60, %v3893_v27  ;;  %v288_v10 = vperm.slane %v278_v4, %v3893_v27  ;;  %v3323_v60 = vld [vmem:[#allocation6] sm:$0xff] }
 0x199   :  { %v692_v23 = vpop.xlane.xlu2 %691 }
 0x19a   :  { %v714_v25 = vmul.f32 %v3971_v18, %v692_v23 }
 0x19c   :  { %v3975_v31 = vsub.f32 %v3942_v21, %v714_v25  ;;  %v281_v21 = vperm.slane %v271_v35, %v3893_v27 }
 0x19e   :  { %v730_v33 = vmul.f32 %v3975_v31, %v3975_v31  ;;  %v290_v58 = vsel %vm289_vm12, %v282_v48, %v281_v21  ;;  %v3303_v21 = vld [vmem:[%s5062_s4 + $0x20] sm:$0xff] }
 0x19f   :  { %v292_v1 = vsel %vm291_vm13, %v283_v55, %v290_v58  ;;  %v3326_v48 = vld [vmem:[#allocation6 + $0x18] sm:$0xff] }
 0x1a0   :  { %738 = vadd.xlane.f32.xlu2 %v730_v33  ;;  %v294_v6 = vsel %vm293_vm14, %v284_v63, %v292_v1 }
 0x1a1   :  { %v694_v39 = vpop.xlane.xlu2 %693  ;;  %v296_v11 = vsel %vm295_vm15, %v285_v5, %v294_v6 }
 0x1a2   :  { %v715_v44 = vmul.f32 %v3971_v18, %v694_v39 }
 0x1a4   :  { %v3983_v49 = vsub.f32 %v3945_v26, %v715_v44  ;;  %v3305_v44 = vld [vmem:[%s5062_s4 + $0x30] sm:$0xff] }
 0x1a6   :  { %v731_v54 = vmul.f32 %v3983_v49, %v3983_v49 }
 0x1a8   :  { %740 = vadd.xlane.f32.xlu0 %v731_v54  ;;  %v3324_v54 = vld [vmem:[#allocation6 + $0x8] sm:$0xff] }
 0x1a9   :  { %v224_v61 = vpop.xlane.xlu2 %223 }
 0x1aa   :  { %v247_v26 = vmul.f32 %v241_v17, %v224_v61  ;;  %v3299_v61 = vld [vmem:[%s5062_s4] sm:$0xff] }
 0x1ac   :  { %v256_v3 = vpack.c.bf16 %v247_v26, %v247_v26 }
 0x1ae   :  { %v276_v7 = vunpack.c.l.b16 %v256_v3 }
 0x1b0   :  { %v286_v9 = vperm.slane %v276_v7, %v3893_v27 }
 0x1b1   :  { %v698_v12 = vpop.xlane.xlu0 %697  ;;  %v696_v13 = vpop.xlane.xlu2 %695 }
 0x1b2   :  { %v298_v14 = vsel %vm297_vm0, %v286_v9, %v296_v11  ;;  %v717_v15 = vmul.f32 %v3971_v18, %v698_v12  ;;  %v716_v16 = vmul.f32 %v3971_v18, %v696_v13 }
 0x1b3   :  { %v300_v17 = vsel %vm299_vm1, %v287_v8, %v298_v14 }
 0x1b4   :  { %v3996_v19 = vsub.f32 %v3952_v42, %v717_v15  ;;  %v3999_v20 = vsub.f32 %v3950_v41, %v716_v16  ;;  %v302_v22 = vsel %vm301_vm2, %v288_v10, %v300_v17 }
 0x1b5   :  { %v303_v27 = vpack.c.b16 %v302_v22, %v302_v22 }
 0x1b6   :  { %v733_v23 = vmul.f32 %v3996_v19, %v3996_v19  ;;  %v732_v24 = vmul.f32 %v3999_v20, %v3999_v20 }
 0x1b7   :  { %2791 = vmatmul.msk.bf16.vlgmr.msra.gmra.mxu0 %vm304_vm3, %v303_v27 }
 0x1b8   :  { %744 = vadd.xlane.f32.xlu2 %v733_v23  ;;  %742 = vadd.xlane.f32.xlu1 %v732_v24 }
 0x1b9   :  { %v700_v25 = vpop.xlane.xlu1 %699 }
 0x1ba   :  { %v718_v28 = vmul.f32 %v3971_v18, %v700_v25  ;;  %v4061_v25 = vld [vmem:[%s5066_s8] ss:$0 sm:$0xff] }
 0x1bc   :  { %v4007_v42 = vsub.f32 %v3956_v47, %v718_v28 }
 0x1be   :  { %v734_v41 = vmul.f32 %v4007_v42, %v4007_v42 }
 0x1c0   :  { %746 = vadd.xlane.f32.xlu0 %v734_v41  ;;  %v3445_v41 = vld [vmem:[%s5061_s3] ss:$0 sm:$0xff] }
 0x1c1   :  { %v702_v29 = vpop.xlane.xlu2 %701 }
 0x1c2   :  { %v719_v30 = vmul.f32 %v3971_v18, %v702_v29 }
 0x1c4   :  { %v4013_v32 = vsub.f32 %v3959_v52, %v719_v30 }
 0x1c6   :  { %v735_v33 = vmul.f32 %v4013_v32, %v4013_v32 }
 0x1c8   :  { %748 = vadd.xlane.f32.xlu1 %v735_v33  ;;  %v4071_v33 = vld [vmem:[%s5067_s9] ss:$0 sm:$0xff] }
 0x1c9   :  { %v704_v34 = vpop.xlane.xlu0 %703 }
 0x1ca   :  { %v720_v35 = vmul.f32 %v3971_v18, %v704_v34 }
 0x1cc   :  { %v4019_v47 = vsub.f32 %v3962_v57, %v720_v35  ;;  %v3306_v57 = vld [vmem:[%s5062_s4 + $0x38] sm:$0xff] }
 0x1cd   :  { %395 = vmatpush.bf16.msra.mxu1 %v3306_v57 }
 0x1ce   :  { %v736_v36 = vmul.f32 %v4019_v47, %v4019_v47 }
 0x1d0   :  { %750 = vadd.xlane.f32.xlu2 %v736_v36 }
 0x1d1   :  { %v706_v37 = vpop.xlane.xlu1 %705  ;;  %396 = vmatpush.bf16.msra.mxu1 %v3305_v44 }
 0x1d2   :  { %v721_v38 = vmul.f32 %v3971_v18, %v706_v37 }
 0x1d4   :  { %v4025_v52 = vsub.f32 %v3965_v62, %v721_v38  ;;  %v3328_v62 = vld [vmem:[#allocation6 + $0x28] sm:$0xff] }
 0x1d5   :  { %956 = vmatpush.bf16.msrb.mxu0 %v3328_v62  ;;  %3413 = vmatpush.bf16.msrb.mxu3 %v3328_v62 }
 0x1d6   :  { %v737_v39 = vmul.f32 %v4025_v52, %v4025_v52  ;;  %397 = vmatpush.bf16.msra.mxu1 %v3304_v45 }
 0x1d8   :  { %752 = vadd.xlane.f32.xlu0 %v737_v39 }
 0x1d9   :  { %957 = vmatpush.bf16.msrb.mxu0 %v3327_v46  ;;  %3414 = vmatpush.bf16.msrb.mxu3 %v3327_v46 }
 0x1da   :  { %398 = vmatpush.bf16.msra.mxu1 %v3303_v21 }
 0x1dd   :  { %958 = vmatpush.bf16.msrb.mxu0 %v3326_v48  ;;  %3415 = vmatpush.bf16.msrb.mxu3 %v3326_v48 }
 0x1de   :  { %399 = vmatpush.bf16.msra.mxu1 %v3302_v50 }
 0x1e1   :  { %959 = vmatpush.bf16.msrb.mxu0 %v3325_v51  ;;  %3416 = vmatpush.bf16.msrb.mxu3 %v3325_v51 }
 0x1e2   :  { %400 = vmatpush.bf16.msra.mxu1 %v3301_v53 }
 0x1e5   :  { %960 = vmatpush.bf16.msrb.mxu0 %v3324_v54  ;;  %3417 = vmatpush.bf16.msrb.mxu3 %v3324_v54 }
 0x1e6   :  { %401 = vmatpush.bf16.msra.mxu1 %v3300_v56 }
 0x1e9   :  { %961 = vmatpush.bf16.msrb.mxu0 %v3323_v60  ;;  %3418 = vmatpush.bf16.msrb.mxu3 %v3323_v60 }
 0x1ea   :  { %402 = vmatpush.bf16.msra.mxu1 %v3299_v61 }
 0x213   :  { %v739_v55 = vpop.xlane.xlu2 %738 }
 0x214   :  { %v754_v58 = vmul.f32 %v739_v55, %v3971_v18 }
 0x216   :  { %v762_v59 = vadd.f32 1e-12, %v754_v58 }
 0x218   :  { %3454 = vrsqrt.f32 %v762_v59  ;;  %vm776_vm5 = vweird.f32 %v762_v59 }
 0x21b   :  { %v741_v63 = vpop.xlane.xlu0 %740 }
 0x21c   :  { %v755_v26 = vmul.f32 %v741_v63, %v3971_v18 }
 0x21e   :  { %v3455_v1 = vpop.eup %3454  ;;  %v763_v2 = vadd.f32 1e-12, %v755_v26 }
 0x21f   :  { %v771_v3 = vmul.f32 %v3455_v1, %v762_v59  ;;  %vm777_vm4 = vweird.f32 %v3455_v1 }
 0x220   :  { %3456 = vrsqrt.f32 %v763_v2  ;;  %vm778_vm6 = vmor %vm776_vm5, %vm777_vm4  ;;  %vm786_vm8 = vweird.f32 %v763_v2 }
 0x221   :  { %v772_v4 = vmul.f32 %v3455_v1, %v771_v3 }
 0x223   :  { %v773_v5 = vmul.f32 0.5, %v772_v4 }
 0x225   :  { %v774_v6 = vsub.f32 1.5, %v773_v5 }
 0x226   :  { %v3457_v7 = vpop.eup %3456 }
 0x227   :  { %v781_v8 = vmul.f32 %v3457_v7, %v763_v2  ;;  %v775_v9 = vmul.f32 %v3455_v1, %v774_v6  ;;  %vm787_vm7 = vweird.f32 %v3457_v7 }
 0x228   :  { %vm788_vm9 = vmor %vm786_vm8, %vm787_vm7 }
 0x229   :  { %v782_v10 = vmul.f32 %v3457_v7, %v781_v8  ;;  %v779_v14 = vsel %vm778_vm6, %v3455_v1, %v775_v9 }
 0x22a   :  { %v850_v23 = vmul.f32 %v779_v14, %v3975_v31 }
 0x22b   :  { %v783_v11 = vmul.f32 0.5, %v782_v10  ;;  %v745_v12 = vpop.xlane.xlu2 %744  ;;  %v743_v13 = vpop.xlane.xlu1 %742 }
 0x22c   :  { %v757_v15 = vmul.f32 %v745_v12, %v3971_v18  ;;  %v756_v16 = vmul.f32 %v743_v13, %v3971_v18  ;;  %v862_v31 = vmul.f32 %v4061_v25, %v850_v23  ;;  %v3361_v23 = vld [vmem:[%s5070_s12 + $0xec] sm:$0xf0] }
 0x22d   :  { %v784_v17 = vsub.f32 1.5, %v783_v11 }
 0x22e   :  { %v765_v22 = vadd.f32 1e-12, %v757_v15  ;;  %v764_v27 = vadd.f32 1e-12, %v756_v16  ;;  %v874_v44 = vadd.f32 %v4071_v33, %v862_v31  ;;  %v3362_v31 = vld [vmem:[%s5070_s12 + $0xf4] sm:$0xf0] }
 0x22f   :  { %v785_v24 = vmul.f32 %v3457_v7, %v784_v17 }
 0x230   :  { %3458 = vrsqrt.f32 %v765_v22  ;;  %vm806_vm12 = vweird.f32 %v765_v22  ;;  %vm796_vm14 = vweird.f32 %v764_v27 }
 0x231   :  { %v789_v28 = vsel %vm788_vm9, %v3457_v7, %v785_v24  ;;  %3460 = vrsqrt.f32 %v764_v27  ;;  %v3074_v24 = vld [vmem:[%s5070_s12 + $0xe8] sm:$0xf] }
 0x232   :  { %v851_v29 = vmul.f32 %v789_v28, %v3983_v49 }
 0x233   :  { %v747_v30 = vpop.xlane.xlu0 %746 }
 0x234   :  { %v758_v34 = vmul.f32 %v747_v30, %v3971_v18  ;;  %v321_v35 = vpop.f32.mrf.mxu0  ;;  %v863_v36 = vmul.f32 %v4061_v25, %v851_v29 }
 0x235   :  { %v322_v37 = vadd.f32 %v3445_v41, %v321_v35 }
 0x236   :  { %v3459_v38 = vpop.eup %3458  ;;  %v766_v39 = vadd.f32 1e-12, %v758_v34  ;;  %v875_v40 = vadd.f32 %v4071_v33, %v863_v36  ;;  %v3360_v34 = vld [vmem:[%s5070_s12 + $0xec] sm:$0xf]  ;;  %v3075_v36 = vor.u32 %v3362_v31, %v3074_v24  ;;  %v3010_v24 = vld [vmem:[%s5070_s12 + $0x68] sm:$0xf] }
 0x237   :  { %v3461_v57 = vpop.eup %3460  ;;  %v801_v49 = vmul.f32 %v3459_v38, %v765_v22  ;;  %v325_v43 = vmax.f32 %v322_v37, 0.0  ;;  %vm807_vm10 = vweird.f32 %v3459_v38  ;;  %v3076_v37 = vld [vmem:[%s5070_s12 + $0xf8] sm:$0xf0] }
 0x238   :  { %v791_v62 = vmul.f32 %v3461_v57, %v764_v27  ;;  %3462 = vrsqrt.f32 %v766_v39  ;;  %v898_v46 = vpack.c.bf16 %v875_v40, %v874_v44  ;;  %vm797_vm11 = vweird.f32 %v3461_v57  ;;  %vm808_vm13 = vmor %vm806_vm12, %vm807_vm10  ;;  %v3066_v27 = vld [vmem:[%s5070_s12 + $0xe0] sm:$0xf]  ;;  %1256 = vmatpush.bf16.msra.mxu3 %v3075_v36 }
 0x239   :  { %v802_v45 = vmul.f32 %v3459_v38, %v801_v49  ;;  %v342_v21 = vpack.c.bf16 %v325_v43, %v325_v43  ;;  %vm798_vm15 = vmor %vm796_vm14, %vm797_vm11  ;;  %vm816_vm1 = vweird.f32 %v766_v39  ;;  %v3067_v30 = vor.u32 %v3361_v23, %v3066_v27  ;;  %v3358_v43 = vld [vmem:[%s5070_s12 + $0xd4] sm:$0xf0]  ;;  %v2986_v36 = vld [vmem:[%s5070_s12 + $0x40] sm:$0xf] }
 0x23a   :  { %v792_v48 = vmul.f32 %v3461_v57, %v791_v62  ;;  %962 = vmatmul.bf16.vlgmr.msrb.gmra.mxu0 %v898_v46 }
 0x23b   :  { %v803_v50 = vmul.f32 0.5, %v802_v45  ;;  %403 = vmatmul.bf16.vlgmr.msra.gmra.mxu1 %v342_v21  ;;  %v749_v51 = vpop.xlane.xlu1 %748  ;;  %3419 = vmatpush.bf16.msrb.mxu2 %v3067_v30  ;;  %v3356_v21 = vld [vmem:[%s5070_s12 + $0xcc] sm:$0xf] }
 0x23c   :  { %v793_v53 = vmul.f32 0.5, %v792_v48  ;;  %v759_v54 = vmul.f32 %v749_v51, %v3971_v18  ;;  %v323_v55 = vpop.f32.mrf.mxu0  ;;  %1190 = vmatpush.bf16.msrb.mxu1 %v3067_v30  ;;  %v3060_v48 = vld [vmem:[%s5070_s12 + $0xd8] sm:$0xf0] }
 0x23d   :  { %v804_v56 = vsub.f32 1.5, %v803_v50  ;;  %v3042_v55 = vld [vmem:[%s5070_s12 + $0xa8] sm:$0xf]  ;;  %v3012_v30 = vld [vmem:[%s5070_s12 + $0x78] sm:$0xf0] }
 0x23e   :  { %v3463_v58 = vpop.eup %3462  ;;  %v794_v59 = vsub.f32 1.5, %v793_v53  ;;  %v4078_v60 = vadd.f32 1e-12, %v759_v54  ;;  %v3034_v53 = vld [vmem:[%s5070_s12 + $0xa0] sm:$0xf] }
 0x23f   :  { %v805_v61 = vmul.f32 %v3459_v38, %v804_v56  ;;  %v811_v63 = vmul.f32 %v3463_v58, %v766_v39  ;;  %vm817_vm0 = vweird.f32 %v3463_v58  ;;  %v3357_v39 = vld [vmem:[%s5070_s12 + $0xcc] sm:$0xf0]  ;;  %v3354_v56 = vld [vmem:[%s5070_s12 + $0xb4] sm:$0xf0] }
 0x240   :  { %v795_v26 = vmul.f32 %v3461_v57, %v794_v59  ;;  %3464 = vrsqrt.f32 %v4078_v60  ;;  %vm4092_vm2 = vmor %vm816_vm1, %vm817_vm0  ;;  %vm826_vm4 = vweird.f32 %v4078_v60  ;;  %v3353_v54 = vld [vmem:[%s5070_s12 + $0xac] sm:$0xf0] }
 0x241   :  { %v812_v1 = vmul.f32 %v3463_v58, %v811_v63  ;;  %v809_v2 = vsel %vm808_vm13, %v3459_v38, %v805_v61  ;;  %v3050_v38 = vld [vmem:[%s5070_s12 + $0xc0] sm:$0xf]  ;;  %v3035_v61 = vor.u32 %v3353_v54, %v3034_v53  ;;  %v3044_v63 = vld [vmem:[%s5070_s12 + $0xb8] sm:$0xf0]  ;;  %v3336_v53 = vld [vmem:[%s5070_s12 + $0x2c] sm:$0xf] }
 0x242   :  { %v799_v3 = vsel %vm798_vm15, %v3461_v57, %v795_v26  ;;  %v853_v4 = vmul.f32 %v809_v2, %v3996_v19  ;;  %v3079_v57 = vor.u32 %v3360_v34, %v3076_v37  ;;  %v3051_v49 = vor.u32 %v3357_v39, %v3050_v38  ;;  %v3341_v37 = vld [vmem:[%s5070_s12 + $0x4c] sm:$0xf0]  ;;  %v2980_v54 = vld [vmem:[%s5070_s12 + $0x38] sm:$0xf0] }
 0x243   :  { %v813_v5 = vmul.f32 0.5, %v812_v1  ;;  %v751_v6 = vpop.xlane.xlu2 %750  ;;  %v852_v7 = vmul.f32 %v799_v3, %v3999_v20  ;;  %v3043_v2 = vor.u32 %v3354_v56, %v3042_v55  ;;  %v3018_v3 = vld [vmem:[%s5070_s12 + $0x80] sm:$0xf]  ;;  %v3345_v20 = vld [vmem:[%s5070_s12 + $0x6c] sm:$0xf0] }
 0x244   :  { %v760_v8 = vmul.f32 %v751_v6, %v3971_v18  ;;  %v865_v9 = vmul.f32 %v4061_v25, %v853_v4  ;;  %1289 = vmatpush.bf16.msra.mxu0 %v3079_v57  ;;  %1191 = vmatpush.bf16.msrb.mxu1 %v3051_v49  ;;  %v3349_v4 = vld [vmem:[%s5070_s12 + $0x8c] sm:$0xf0]  ;;  %v2994_v57 = vld [vmem:[%s5070_s12 + $0x48] sm:$0xf] }
 0x245   :  { %v814_v10 = vsub.f32 1.5, %v813_v5  ;;  %v864_v11 = vmul.f32 %v4061_v25, %v852_v7  ;;  %3420 = vmatpush.bf16.msrb.mxu2 %v3051_v49  ;;  %v3026_v7 = vld [vmem:[%s5070_s12 + $0x88] sm:$0xf]  ;;  %v3342_v49 = vld [vmem:[%s5070_s12 + $0x54] sm:$0xf0] }
 0x246   :  { %v3465_v12 = vpop.eup %3464  ;;  %v4086_v13 = vadd.f32 1e-12, %v760_v8  ;;  %v877_v14 = vadd.f32 %v4071_v33, %v865_v9  ;;  %v3350_v8 = vld [vmem:[%s5070_s12 + $0x94] sm:$0xf0]  ;;  %v3348_v9 = vld [vmem:[%s5070_s12 + $0x8c] sm:$0xf] }
 0x247   :  { %v815_v15 = vmul.f32 %v3463_v58, %v814_v10  ;;  %v821_v19 = vmul.f32 %v3465_v12, %v4078_v60  ;;  %v876_v16 = vadd.f32 %v4071_v33, %v864_v11  ;;  %vm827_vm3 = vweird.f32 %v3465_v12  ;;  %v3028_v10 = vld [vmem:[%s5070_s12 + $0x98] sm:$0xf0] }
 0x248   :  { %3466 = vrsqrt.f32 %v4086_v13  ;;  %vm828_vm5 = vmor %vm826_vm4, %vm827_vm3  ;;  %1192 = vmatpush.bf16.msrb.mxu1 %v3035_v61  ;;  %v3027_v27 = vor.u32 %v3350_v8, %v3026_v7  ;;  %v3031_v23 = vor.u32 %v3348_v9, %v3028_v10  ;;  %vm836_vm7 = vweird.f32 %v4086_v13  ;;  %v2964_v7 = vld [vmem:[%s5070_s12 + $0x18] sm:$0xf0]  ;;  %v3194_v8 = vld [vmem:[#allocation7 + $0xe0] sm:$0xf] }
 0x249   :  { %v822_v17 = vmul.f32 %v3465_v12, %v821_v19  ;;  %v899_v22 = vpack.c.bf16 %v877_v14, %v876_v16  ;;  %v819_v28 = vsel %vm4092_vm2, %v3463_v58, %v815_v15  ;;  %v3352_v58 = vld [vmem:[%s5070_s12 + $0xac] sm:$0xf]  ;;  %3421 = vmatpush.bf16.msrb.mxu2 %v3035_v61  ;;  %v3002_v16 = vld [vmem:[%s5070_s12 + $0x60] sm:$0xf]  ;;  %v2983_v61 = vor.u32 %v3336_v53, %v2980_v54  ;;  %v3393_v9 = vld [vmem:[#allocation7 + $0xec] sm:$0xf0] }
 0x24a   :  { %v854_v62 = vmul.f32 %v819_v28, %v4007_v42  ;;  %v3063_v42 = vor.u32 %v3356_v21, %v3060_v48  ;;  %v3047_v6 = vor.u32 %v3352_v58, %v3044_v63  ;;  %v3003_v34 = vor.u32 %v3345_v20, %v3002_v16  ;;  %v2970_v21 = vld [vmem:[%s5070_s12 + $0x20] sm:$0xf]  ;;  %v3337_v48 = vld [vmem:[%s5070_s12 + $0x2c] sm:$0xf0]  ;;  %v3146_v20 = vld [vmem:[#allocation7 + $0x80] sm:$0xf] }
 0x24b   :  { %v823_v41 = vmul.f32 0.5, %v822_v17  ;;  %967 = vmatmul.bf16.gmra.mxu0 %v899_v22  ;;  %v753_v29 = vpop.xlane.xlu0 %752  ;;  %v2971_v56 = vor.u32 %v3337_v48, %v2970_v21  ;;  %v4279_v10 = vor.u32 %v3393_v9, %v3194_v8  ;;  %v3355_v48 = vld [vmem:[%s5070_s12 + $0xc4] sm:$0xf]  ;;  %v3387_v9 = vld [vmem:[#allocation7 + $0xc4] sm:$0xf] }
 0x24c   :  { %v761_v35 = vmul.f32 %v753_v29, %v3971_v18  ;;  %v3058_v18 = vld [vmem:[%s5070_s12 + $0xc8] sm:$0xf]  ;;  %v866_v1 = vmul.f32 %v4061_v25, %v854_v62  ;;  %1290 = vmatpush.bf16.msra.mxu0 %v3063_v42  ;;  %v3344_v29 = vld [vmem:[%s5070_s12 + $0x6c] sm:$0xf]  ;;  %v2987_v62 = vor.u32 %v3341_v37, %v2986_v36  ;;  %v3365_v36 = vld [vmem:[#allocation7 + $0xc] sm:$0xf0] }
 0x24d   :  { %v824_v40 = vsub.f32 1.5, %v823_v41  ;;  %v3059_v46 = vor.u32 %v3358_v43, %v3058_v18  ;;  %v3346_v41 = vld [vmem:[%s5070_s12 + $0x74] sm:$0xf0]  ;;  %v3340_v18 = vld [vmem:[%s5070_s12 + $0x4c] sm:$0xf] }
 0x24e   :  { %v4129_v44 = vpop.eup %3466  ;;  %v4132_v45 = vadd.f32 1e-12, %v761_v35  ;;  %v878_v15 = vadd.f32 %v4071_v33, %v866_v1  ;;  %v3011_v39 = vor.u32 %v3346_v41, %v3010_v24  ;;  %v2996_v43 = vld [vmem:[%s5070_s12 + $0x58] sm:$0xf0]  ;;  %v3373_v41 = vld [vmem:[#allocation7 + $0x4c] sm:$0xf0] }
 0x24f   :  { %v825_v50 = vmul.f32 %v3465_v12, %v824_v40  ;;  %v831_v51 = vmul.f32 %v4129_v44, %v4086_v13  ;;  %1257 = vmatpush.bf16.msra.mxu3 %v3059_v46  ;;  %vm837_vm6 = vweird.f32 %v4129_v44  ;;  %v3015_v40 = vor.u32 %v3344_v29, %v3012_v30  ;;  %v3098_v30 = vld [vmem:[#allocation7 + $0x20] sm:$0xf]  ;;  %v4308_v37 = vld [vmem:[%s5069_s11] ss:$0 sm:$0xff]  ;;  %v3351_v54 = vld [vmem:[%s5070_s12 + $0xa4] sm:$0xf] }
 0x250   :  { %3468 = vrsqrt.f32 %v4132_v45  ;;  %1291 = vmatpush.bf16.msra.mxu0 %v3047_v6  ;;  %vm4211_vm8 = vmor %vm836_vm7, %vm837_vm6  ;;  %vm846_vm10 = vweird.f32 %v4132_v45  ;;  %v2999_v42 = vor.u32 %v3340_v18, %v2996_v43  ;;  %v3082_v35 = vld [vmem:[#allocation7] sm:$0xf] }
 0x251   :  { %v829_v59 = vsel %vm828_vm5, %v3465_v12, %v825_v50  ;;  %v832_v60 = vmul.f32 %v4129_v44, %v831_v51  ;;  %v3019_v12 = vor.u32 %v3349_v4, %v3018_v3  ;;  %v2995_v51 = vor.u32 %v3342_v49, %v2994_v57  ;;  %v3333_v3 = vld [vmem:[%s5070_s12 + $0xc] sm:$0xf0] }
 0x252   :  { %v855_v26 = vmul.f32 %v829_v59, %v4013_v32 }
 0x253   :  { %v833_v5 = vmul.f32 0.5, %v832_v60  ;;  %1258 = vmatpush.bf16.msra.mxu3 %v3043_v2  ;;  %1193 = vmatpush.bf16.msrb.mxu1 %v3019_v12 }
 0x254   :  { %v867_v32 = vmul.f32 %v4061_v25, %v855_v26  ;;  %3422 = vmatpush.bf16.msrb.mxu2 %v3019_v12  ;;  %1292 = vmatpush.bf16.msra.mxu0 %v3031_v23  ;;  %v3389_v12 = vld [vmem:[#allocation7 + $0xcc] sm:$0xf0] }
 0x255   :  { %v834_v11 = vsub.f32 1.5, %v833_v5  ;;  %v3332_v5 = vld [vmem:[%s5070_s12 + $0xc] sm:$0xf]  ;;  %v3377_v23 = vld [vmem:[#allocation7 + $0x6c] sm:$0xf0] }
 0x256   :  { %v3469_v14 = vpop.eup %3468  ;;  %v879_v19 = vadd.f32 %v4071_v33, %v867_v32  ;;  %v2967_v32 = vor.u32 %v3332_v5, %v2964_v7  ;;  %v3196_v5 = vld [vmem:[#allocation7 + $0xf0] sm:$0xf0]  ;;  %v3172_v7 = vld [vmem:[#allocation7 + $0xb8] sm:$0xf0] }
 0x257   :  { %v835_v17 = vmul.f32 %v4129_v44, %v834_v11  ;;  %v841_v22 = vmul.f32 %v3469_v14, %v4132_v45  ;;  %1259 = vmatpush.bf16.msra.mxu3 %v3027_v27  ;;  %vm847_vm9 = vweird.f32 %v3469_v14  ;;  %1194 = vmatpush.bf16.msrb.mxu1 %v3003_v34  ;;  %v2978_v45 = vld [vmem:[%s5070_s12 + $0x28] sm:$0xf] }
 0x258   :  { %v900_v28 = vpack.c.bf16 %v879_v19, %v878_v15  ;;  %3423 = vmatpush.bf16.msrb.mxu2 %v3003_v34  ;;  %vm848_vm11 = vmor %vm846_vm10, %vm847_vm9  ;;  %1293 = vmatpush.bf16.msra.mxu0 %v3015_v40  ;;  %v3178_v11 = vld [vmem:[#allocation7 + $0xc0] sm:$0xf]  ;;  %v3385_v19 = vld [vmem:[#allocation7 + $0xac] sm:$0xf0] }
 0x259   :  { %v842_v31 = vmul.f32 %v3469_v14, %v841_v22  ;;  %v839_v38 = vsel %vm4211_vm8, %v4129_v44, %v835_v17  ;;  %v3162_v15 = vld [vmem:[#allocation7 + $0xa0] sm:$0xf]  ;;  %v3381_v17 = vld [vmem:[#allocation7 + $0x8c] sm:$0xf0] }
 0x25a   :  { %972 = vmatmul.bf16.vlgmr.msrb.gmra.mxu3 %v900_v28  ;;  %v856_v46 = vmul.f32 %v839_v38, %v4019_v47  ;;  %v3338_v47 = vld [vmem:[%s5070_s12 + $0x34] sm:$0xf0]  ;;  %v4286_v16 = vor.u32 %v3385_v19, %v3162_v15  ;;  %v4291_v22 = vor.u32 %v3381_v17, %v3146_v20  ;;  %v3130_v27 = vld [vmem:[#allocation7 + $0x60] sm:$0xf]  ;;  %v4314_v38 = vor.u32 %v3365_v36, %v3082_v35  ;;  %v3156_v19 = vld [vmem:[#allocation7 + $0x98] sm:$0xf0] }
 0x25b   :  { %v843_v13 = vmul.f32 0.5, %v842_v31  ;;  %1260 = vmatpush.bf16.msra.mxu3 %v3011_v39  ;;  %1195 = vmatpush.bf16.msrb.mxu1 %v2987_v62  ;;  %v2979_v60 = vor.u32 %v3338_v47, %v2978_v45  ;;  %v4295_v24 = vor.u32 %v3377_v23, %v3130_v27  ;;  %v3114_v28 = vld [vmem:[#allocation7 + $0x40] sm:$0xf]  ;;  %v3369_v31 = vld [vmem:[#allocation7 + $0x2c] sm:$0xf0] }
 0x25c   :  { %3424 = vmatpush.bf16.msrb.mxu2 %v2987_v62  ;;  %v868_v59 = vmul.f32 %v4061_v25, %v856_v46  ;;  %1294 = vmatpush.bf16.msra.mxu0 %v2999_v42  ;;  %v4299_v29 = vor.u32 %v3373_v41, %v3114_v28  ;;  %v4302_v34 = vor.u32 %v3369_v31, %v3098_v30  ;;  %v3359_v62 = vld [vmem:[%s5070_s12 + $0xe4] sm:$0xf]  ;;  %v3068_v46 = vld [vmem:[%s5070_s12 + $0xf0] sm:$0xf0]  ;;  %v3383_v36 = vld [vmem:[#allocation7 + $0xa4] sm:$0xf] }
 0x25d   :  { %v844_v44 = vsub.f32 1.5, %v843_v13  ;;  %v3449_v13 = vld [vmem:[%s5063_s5] ss:$0 sm:$0xff]  ;;  %v3071_v21 = vor.u32 %v3359_v62, %v3068_v46  ;;  %v3339_v20 = vld [vmem:[%s5070_s12 + $0x44] sm:$0xf] }
 0x25e   :  { %v880_v26 = vadd.f32 %v4071_v33, %v868_v59  ;;  %v3204_v59 = vld [vmem:[#allocation7 + $0xf8] sm:$0xf0]  ;;  %v2988_v17 = vld [vmem:[%s5070_s12 + $0x50] sm:$0xf0]  ;;  %v3379_v62 = vld [vmem:[#allocation7 + $0x84] sm:$0xf] }
 0x25f   :  { %v845_v50 = vmul.f32 %v3469_v14, %v844_v44  ;;  %1261 = vmatpush.bf16.msra.mxu3 %v2995_v51  ;;  %1196 = vmatpush.bf16.msrb.mxu1 %v2971_v56  ;;  %v2991_v28 = vor.u32 %v3339_v20, %v2988_v17  ;;  %v3363_v17 = vld [vmem:[#allocation7 + $0x4] sm:$0xf] }
 0x260   :  { %3425 = vmatpush.bf16.msrb.mxu2 %v2971_v56  ;;  %1295 = vmatpush.bf16.msra.mxu0 %v2983_v61  ;;  %v3347_v61 = vld [vmem:[%s5070_s12 + $0x84] sm:$0xf] }
 0x261   :  { %v849_v55 = vsel %vm848_vm11, %v3469_v14, %v845_v50  ;;  %v4283_v14 = vor.u32 %v3389_v12, %v3178_v11  ;;  %v3052_v50 = vld [vmem:[%s5070_s12 + $0xd0] sm:$0xf0]  ;;  %v3180_v11 = vld [vmem:[#allocation7 + $0xd0] sm:$0xf0] }
 0x262   :  { %v857_v58 = vmul.f32 %v849_v55, %v4025_v52  ;;  %v2954_v52 = vld [vmem:[%s5070_s12] sm:$0xf]  ;;  %v3055_v51 = vor.u32 %v3355_v48, %v3052_v50  ;;  %v3036_v55 = vld [vmem:[%s5070_s12 + $0xb0] sm:$0xf0]  ;;  %v4388_v27 = vor.u32 %v3387_v9, %v3180_v11  ;;  %v3124_v50 = vld [vmem:[#allocation7 + $0x58] sm:$0xf0] }
 0x263   :  { %1262 = vmatpush.bf16.msra.mxu3 %v2979_v60  ;;  %v2955_v4 = vor.u32 %v3333_v3, %v2954_v52  ;;  %v3039_v56 = vor.u32 %v3351_v54, %v3036_v55  ;;  %v3343_v3 = vld [vmem:[%s5070_s12 + $0x64] sm:$0xf]  ;;  %v3380_v12 = vld [vmem:[#allocation7 + $0x8c] sm:$0xf]  ;;  %v3132_v54 = vld [vmem:[#allocation7 + $0x70] sm:$0xf0] }
 0x264   :  { %v869_v63 = vmul.f32 %v4061_v25, %v857_v58  ;;  %v2962_v25 = vld [vmem:[%s5070_s12 + $0x8] sm:$0xf]  ;;  %1296 = vmatpush.bf16.msra.mxu0 %v2967_v32  ;;  %v3392_v58 = vld [vmem:[#allocation7 + $0xec] sm:$0xf]  ;;  %v4390_v23 = vor.u32 %v3380_v12, %v3156_v19  ;;  %v3367_v11 = vld [vmem:[#allocation7 + $0x24] sm:$0xf] }
 0x265   :  { %1197 = vmatpush.bf16.msrb.mxu1 %v2955_v4  ;;  %3426 = vmatpush.bf16.msrb.mxu2 %v2955_v4  ;;  %v4355_v60 = vor.u32 %v3392_v58, %v3204_v59  ;;  %v3004_v4 = vld [vmem:[%s5070_s12 + $0x70] sm:$0xf0]  ;;  %v3331_v58 = vld [vmem:[%s5070_s12 + $0x4] sm:$0xf]  ;;  %v3100_v12 = vld [vmem:[#allocation7 + $0x30] sm:$0xf0] }
 0x266   :  { %v881_v1 = vadd.f32 %v4071_v33, %v869_v63  ;;  %v3334_v33 = vld [vmem:[%s5070_s12 + $0x14] sm:$0xf0]  ;;  %v3020_v63 = vld [vmem:[%s5070_s12 + $0x90] sm:$0xf0]  ;;  %v3394_v19 = vld [vmem:[#allocation7 + $0xf4] sm:$0xf0]  ;;  %v4444_v20 = vor.u32 %v3367_v11, %v3100_v12 }
 0x267   :  { %v2963_v6 = vor.u32 %v3334_v33, %v2962_v25  ;;  %v3391_v25 = vld [vmem:[#allocation7 + $0xe4] sm:$0xf]  ;;  %v3007_v33 = vor.u32 %v3343_v3, %v3004_v4  ;;  %v3372_v48 = vld [vmem:[#allocation7 + $0x4c] sm:$0xf]  ;;  %v3092_v4 = vld [vmem:[#allocation7 + $0x18] sm:$0xf0] }
 0x268   :  { %v901_v2 = vpack.c.bf16 %v881_v1, %v880_v26  ;;  %1634 = vmatpush.bf16.msrb.mxu0 %v4279_v10  ;;  %v3023_v26 = vor.u32 %v3347_v61, %v3020_v63  ;;  %v3388_v1 = vld [vmem:[#allocation7 + $0xcc] sm:$0xf]  ;;  %v4375_v32 = vor.u32 %v3391_v25, %v3196_v5 }
 0x269   :  { %1263 = vmatpush.bf16.msra.mxu3 %v2963_v6  ;;  %1514 = vmatpush.bf16.msra.mxu1 %v4279_v10  ;;  %v3384_v6 = vld [vmem:[#allocation7 + $0xac] sm:$0xf] }
 0x26a   :  { %977 = vmatmul.bf16.gmra.mxu3 %v901_v2  ;;  %1223 = vmatpush.bf16.msra.mxu2 %v3071_v21  ;;  %v3188_v2 = vld [vmem:[#allocation7 + $0xd8] sm:$0xf0]  ;;  %v4377_v8 = vor.u32 %v3384_v6, %v3172_v7  ;;  %v3148_v21 = vld [vmem:[#allocation7 + $0x90] sm:$0xf0]  ;;  %v3368_v55 = vld [vmem:[#allocation7 + $0x2c] sm:$0xf] }
 0x26b   :  { %v4365_v52 = vor.u32 %v3388_v1, %v3188_v2  ;;  %v2956_v59 = vld [vmem:[%s5070_s12 + $0x10] sm:$0xf0]  ;;  %v3371_v1 = vld [vmem:[#allocation7 + $0x44] sm:$0xf]  ;;  %v3116_v2 = vld [vmem:[#allocation7 + $0x50] sm:$0xf0] }
 0x26c   :  { %1635 = vmatpush.bf16.msrb.mxu0 %v4283_v14  ;;  %v2959_v61 = vor.u32 %v3331_v58, %v2956_v59  ;;  %v3364_v3 = vld [vmem:[#allocation7 + $0xc] sm:$0xf]  ;;  %v4431_v25 = vor.u32 %v3371_v1, %v3116_v2  ;;  %v3090_v59 = vld [vmem:[#allocation7 + $0x8] sm:$0xf] }
 0x26d   :  { %1515 = vmatpush.bf16.msra.mxu1 %v4283_v14  ;;  %1553 = vmatpush.bf16.msrb.mxu3 %v4355_v60  ;;  %v4434_v5 = vor.u32 %v3364_v3, %v3092_v4 }
 0x26e   :  { %1224 = vmatpush.bf16.msra.mxu2 %v3055_v51 }
 0x270   :  { %1636 = vmatpush.bf16.msrb.mxu0 %v4286_v16 }
 0x271   :  { %1516 = vmatpush.bf16.msra.mxu1 %v4286_v16  ;;  %1554 = vmatpush.bf16.msrb.mxu3 %v4365_v52 }
 0x272   :  { %1225 = vmatpush.bf16.msra.mxu2 %v3039_v56  ;;  %v3108_v56 = vld [vmem:[#allocation7 + $0x38] sm:$0xf0] }
 0x274   :  { %1637 = vmatpush.bf16.msrb.mxu0 %v4291_v22 }
 0x275   :  { %1517 = vmatpush.bf16.msra.mxu1 %v4291_v22  ;;  %1555 = vmatpush.bf16.msrb.mxu3 %v4377_v8 }
 0x276   :  { %1226 = vmatpush.bf16.msra.mxu2 %v3023_v26  ;;  %v4428_v26 = vor.u32 %v3368_v55, %v3108_v56  ;;  %v3106_v56 = vld [vmem:[#allocation7 + $0x28] sm:$0xf] }
 0x278   :  { %1638 = vmatpush.bf16.msrb.mxu0 %v4295_v24 }
 0x279   :  { %1518 = vmatpush.bf16.msra.mxu1 %v4295_v24  ;;  %1556 = vmatpush.bf16.msrb.mxu3 %v4390_v23 }
 0x27a   :  { %1227 = vmatpush.bf16.msra.mxu2 %v3007_v33 }
 0x27c   :  { %1639 = vmatpush.bf16.msrb.mxu0 %v4299_v29 }
 0x27d   :  { %1519 = vmatpush.bf16.msra.mxu1 %v4299_v29 }
 0x27e   :  { %1228 = vmatpush.bf16.msra.mxu2 %v2991_v28 }
 0x280   :  { %1640 = vmatpush.bf16.msrb.mxu0 %v4302_v34 }
 0x281   :  { %1520 = vmatpush.bf16.msra.mxu1 %v4302_v34 }
 0x284   :  { %1641 = vmatpush.bf16.msrb.mxu0 %v4314_v38 }
 0x285   :  { %1521 = vmatpush.bf16.msra.mxu1 %v4314_v38 }
 0x2b7   :  { %v963_v39 = vpop.f32.mrf.mxu0 }
 0x2b8   :  { %v404_v40 = vpop.f32.mrf.mxu1  ;;  %v964_v57 = vadd.f32 %v4308_v37, %v963_v39  ;;  %v3376_v39 = vld [vmem:[#allocation7 + $0x6c] sm:$0xf] }
 0x2b9   :  { %v405_v49 = vadd.f32 %v3449_v13, %v404_v40  ;;  %v3164_v13 = vld [vmem:[#allocation7 + $0xb0] sm:$0xf0] }
 0x2ba   :  { %v4401_v40 = vor.u32 %v3383_v36, %v3164_v13 }
 0x2bb   :  { %v4318_v18 = vpack.c.bf16 %v964_v57, %v405_v49  ;;  %v3140_v57 = vld [vmem:[#allocation7 + $0x78] sm:$0xf0] }
 0x2bc   :  { %v4404_v49 = vor.u32 %v3376_v39, %v3140_v57 }
 0x2bd   :  { %1198 = vmatmul.bf16.vlgmr.msrb.gmra.mxu1 %v4318_v18  ;;  %1264 = vmatmul.bf16.vlgmr.msra.gmra.mxu3 %v4318_v18 }
 0x2be   :  { %1297 = vmatmul.bf16.vlgmr.msra.gmra.mxu0 %v4318_v18  ;;  %1527 = vmatpush.bf16.msrb.mxu1 %v4375_v32 }
 0x2bf   :  { %1754 = vmatpush.bf16.msra.mxu0 %v4279_v10  ;;  %v965_v43 = vpop.f32.mrf.mxu0  ;;  %1557 = vmatpush.bf16.msrb.mxu3 %v4404_v49 }
 0x2c0   :  { %v406_v44 = vpop.f32.mrf.mxu1  ;;  %v966_v45 = vadd.f32 %v4308_v37, %v965_v43  ;;  %v3335_v43 = vld [vmem:[%s5070_s12 + $0x24] sm:$0xf] }
 0x2c1   :  { %v2972_v44 = vld [vmem:[%s5070_s12 + $0x30] sm:$0xf0] }
 0x2c2   :  { %1528 = vmatpush.bf16.msrb.mxu1 %v4388_v27  ;;  %v2975_v46 = vor.u32 %v3335_v43, %v2972_v44  ;;  %v3170_v44 = vld [vmem:[#allocation7 + $0xa8] sm:$0xf] }
 0x2c3   :  { %1755 = vmatpush.bf16.msra.mxu0 %v4283_v14 }
 0x2c4   :  { %1229 = vmatpush.bf16.msra.mxu2 %v2975_v46  ;;  %v3154_v46 = vld [vmem:[#allocation7 + $0x88] sm:$0xf] }
 0x2c6   :  { %1529 = vmatpush.bf16.msrb.mxu1 %v4401_v40 }
 0x2c7   :  { %1756 = vmatpush.bf16.msra.mxu0 %v4286_v16 }
 0x2c8   :  { %v968_v42 = vpop.f32.mrf.mxu0  ;;  %1230 = vmatpush.bf16.msra.mxu2 %v2959_v61  ;;  %v3366_v61 = vld [vmem:[#allocation7 + $0x14] sm:$0xf0] }
 0x2c9   :  { %v969_v47 = vadd.f32 %v4308_v37, %v968_v42  ;;  %v4414_v42 = vor.u32 %v3379_v62, %v3148_v21  ;;  %v3386_v62 = vld [vmem:[#allocation7 + $0xb4] sm:$0xf0]  ;;  %v4515_v2 = vor.u32 %v3366_v61, %v3090_v59 }
 0x2ca   :  { %v4471_v21 = vor.u32 %v3386_v62, %v3170_v44 }
 0x2cb   :  { %v4342_v53 = vpack.c.bf16 %v969_v47, %v966_v45  ;;  %1757 = vmatpush.bf16.msra.mxu0 %v4291_v22  ;;  %v4416_v45 = vor.u32 %v3372_v48, %v3124_v50  ;;  %v3375_v47 = vld [vmem:[#allocation7 + $0x64] sm:$0xf]  ;;  %1530 = vmatpush.bf16.msrb.mxu1 %v4414_v42  ;;  %v3138_v50 = vld [vmem:[#allocation7 + $0x68] sm:$0xf] }
 0x2cc   :  { %v4425_v63 = vor.u32 %v3375_v47, %v3132_v54  ;;  %v3374_v54 = vld [vmem:[#allocation7 + $0x54] sm:$0xf0] }
 0x2cd   :  { %1203 = vmatmul.bf16.gmra.mxu1 %v4342_v53  ;;  %1269 = vmatmul.bf16.gmra.mxu3 %v4342_v53 }
 0x2ce   :  { %1302 = vmatmul.bf16.gmra.mxu0 %v4342_v53  ;;  %1558 = vmatpush.bf16.msrb.mxu3 %v4416_v45 }
 0x2cf   :  { %1758 = vmatpush.bf16.msra.mxu0 %v4295_v24  ;;  %1531 = vmatpush.bf16.msrb.mxu1 %v4425_v63 }
 0x2d0   :  { %v970_v15 = vpop.f32.mrf.mxu0 }
 0x2d1   :  { %v971_v30 = vadd.f32 %v4308_v37, %v970_v15  ;;  %v3202_v15 = vld [vmem:[#allocation7 + $0xe8] sm:$0xf] }
 0x2d2   :  { %1559 = vmatpush.bf16.msrb.mxu3 %v4428_v26  ;;  %v4447_v28 = vor.u32 %v3394_v19, %v3202_v15 }
 0x2d3   :  { %1759 = vmatpush.bf16.msra.mxu0 %v4299_v29  ;;  %1532 = vmatpush.bf16.msrb.mxu1 %v4431_v25 }
 0x2d6   :  { %1560 = vmatpush.bf16.msrb.mxu3 %v4434_v5 }
 0x2d7   :  { %1760 = vmatpush.bf16.msra.mxu0 %v4302_v34  ;;  %1533 = vmatpush.bf16.msrb.mxu1 %v4444_v20 }
 0x2da   :  { %1673 = vmatpush.bf16.msra.mxu3 %v4355_v60 }
 0x2db   :  { %1761 = vmatpush.bf16.msra.mxu0 %v4314_v38 }
 0x2dd   :  { %v973_v41 = vpop.f32.mrf.mxu3  ;;  %1522 = vmatmul.bf16.vlgmr.msra.gmra.mxu1 %v3751_v0 }
 0x2de   :  { %v974_v31 = vadd.f32 %v4308_v37, %v973_v41  ;;  %v3084_v41 = vld [vmem:[#allocation7 + $0x10] sm:$0xf0]  ;;  %1674 = vmatpush.bf16.msra.mxu3 %v4365_v52 }
 0x2df   :  { %v4451_v36 = vor.u32 %v3363_v17, %v3084_v41 }
 0x2e0   :  { %v4395_v35 = vpack.c.bf16 %v974_v31, %v971_v30  ;;  %v3186_v30 = vld [vmem:[#allocation7 + $0xc8] sm:$0xf]  ;;  %v3390_v31 = vld [vmem:[#allocation7 + $0xd4] sm:$0xf0] }
 0x2e1   :  { %v4454_v13 = vor.u32 %v3390_v31, %v3186_v30  ;;  %1534 = vmatpush.bf16.msrb.mxu1 %v4451_v36 }
 0x2e2   :  { %1208 = vmatmul.bf16.vlgmr.msrb.gmra.mxu2 %v4395_v35  ;;  %1274 = vmatmul.bf16.gmra.mxu3 %v4395_v35 }
 0x2e3   :  { %1307 = vmatmul.bf16.gmra.mxu0 %v4395_v35  ;;  %1540 = vmatpush.bf16.msrb.mxu2 %v4447_v28 }
 0x2e4   :  { %1675 = vmatpush.bf16.msra.mxu3 %v4377_v8 }
 0x2e5   :  { %v975_v51 = vpop.f32.mrf.mxu3  ;;  %1647 = vmatpush.bf16.msra.mxu1 %v4375_v32 }
 0x2e6   :  { %v976_v6 = vadd.f32 %v4308_v37, %v975_v51  ;;  %v3378_v51 = vld [vmem:[#allocation7 + $0x74] sm:$0xf0] }
 0x2e7   :  { %1541 = vmatpush.bf16.msrb.mxu2 %v4454_v13  ;;  %v4493_v47 = vor.u32 %v3378_v51, %v3138_v50 }
 0x2e8   :  { %1676 = vmatpush.bf16.msra.mxu3 %v4390_v23 }
 0x2e9   :  { %1648 = vmatpush.bf16.msra.mxu1 %v4388_v27 }
 0x2eb   :  { %1542 = vmatpush.bf16.msrb.mxu2 %v4471_v21 }
 0x2ec   :  { %1677 = vmatpush.bf16.msra.mxu3 %v4404_v49 }
 0x2ed   :  { %v978_v33 = vpop.f32.mrf.mxu3  ;;  %1535 = vmatmul.bf16.vlgmr.msrb.gmra.mxu1 %v3751_v0 }
 0x2ee   :  { %v979_v7 = vadd.f32 %v4308_v37, %v978_v33  ;;  %1649 = vmatpush.bf16.msra.mxu1 %v4401_v40 }
 0x2f0   :  { %v4438_v9 = vpack.c.bf16 %v979_v7, %v976_v6  ;;  %1678 = vmatpush.bf16.msra.mxu3 %v4416_v45 }
 0x2f2   :  { %1213 = vmatmul.bf16.gmra.mxu2 %v4438_v9  ;;  %1279 = vmatmul.bf16.gmra.mxu3 %v4438_v9 }
 0x2f3   :  { %1312 = vmatmul.bf16.gmra.mxu0 %v4438_v9  ;;  %1650 = vmatpush.bf16.msra.mxu1 %v4414_v42 }
 0x2f4   :  { %1679 = vmatpush.bf16.msra.mxu3 %v4428_v26 }
 0x2f5   :  { %v980_v39 = vpop.f32.mrf.mxu3 }
 0x2f6   :  { %v981_v57 = vadd.f32 %v4308_v37, %v980_v39  ;;  %v3382_v37 = vld [vmem:[#allocation7 + $0x94] sm:$0xf0] }
 0x2f7   :  { %v4475_v48 = vor.u32 %v3382_v37, %v3154_v46  ;;  %1651 = vmatpush.bf16.msra.mxu1 %v4425_v63 }
 0x2f8   :  { %v4465_v43 = vpack.c.bf16 %v981_v57, %v981_v57  ;;  %1680 = vmatpush.bf16.msra.mxu3 %v4434_v5 }
 0x2f9   :  { %1543 = vmatpush.bf16.msrb.mxu2 %v4475_v48 }
 0x2fb   :  { %1652 = vmatpush.bf16.msra.mxu1 %v4431_v25 }
 0x2fd   :  { %1544 = vmatpush.bf16.msrb.mxu2 %v4493_v47 }
 0x2ff   :  { %1653 = vmatpush.bf16.msra.mxu1 %v4444_v20 }
 0x302   :  { %1218 = vmatmul.bf16.gmra.mxu2 %v4465_v43  ;;  %1284 = vmatmul.bf16.gmra.mxu3 %v4465_v43 }
 0x303   :  { %1317 = vmatmul.bf16.gmra.mxu0 %v4465_v43  ;;  %1654 = vmatpush.bf16.msra.mxu1 %v4451_v36 }
 0x307   :  { %1767 = vmatpush.bf16.msrb.mxu1 %v4375_v32 }
 0x30b   :  { %1768 = vmatpush.bf16.msrb.mxu1 %v4388_v27 }
 0x30f   :  { %1769 = vmatpush.bf16.msrb.mxu1 %v4401_v40 }
 0x312   :  { %1231 = vmatmul.bf16.vlgmr.msra.gmra.mxu2 %v4318_v18  ;;  %1561 = vmatmul.bf16.vlgmr.msrb.gmra.mxu3 %v3751_v0  ;;  %v3122_v18 = vld [vmem:[#allocation7 + $0x48] sm:$0xf] }
 0x313   :  { %1793 = vmatpush.bf16.msrb.mxu3 %v4355_v60  ;;  %1770 = vmatpush.bf16.msrb.mxu1 %v4414_v42  ;;  %v4501_v55 = vor.u32 %v3374_v54, %v3122_v18 }
 0x315   :  { %1545 = vmatpush.bf16.msrb.mxu2 %v4501_v55 }
 0x317   :  { %1794 = vmatpush.bf16.msrb.mxu3 %v4365_v52  ;;  %1771 = vmatpush.bf16.msrb.mxu1 %v4425_v63 }
 0x31b   :  { %1795 = vmatpush.bf16.msrb.mxu3 %v4377_v8  ;;  %1772 = vmatpush.bf16.msrb.mxu1 %v4431_v25 }
 0x31f   :  { %1796 = vmatpush.bf16.msrb.mxu3 %v4390_v23  ;;  %1773 = vmatpush.bf16.msrb.mxu1 %v4444_v20 }
 0x322   :  { %1236 = vmatmul.bf16.gmra.mxu2 %v4342_v53  ;;  %v3370_v53 = vld [vmem:[#allocation7 + $0x34] sm:$0xf0] }
 0x323   :  { %1797 = vmatpush.bf16.msrb.mxu3 %v4404_v49  ;;  %v4508_v58 = vor.u32 %v3370_v53, %v3106_v56  ;;  %1774 = vmatpush.bf16.msrb.mxu1 %v4451_v36 }
 0x325   :  { %1546 = vmatpush.bf16.msrb.mxu2 %v4508_v58 }
 0x327   :  { %1798 = vmatpush.bf16.msrb.mxu3 %v4416_v45 }
 0x329   :  { %1547 = vmatpush.bf16.msrb.mxu2 %v4515_v2 }
 0x32b   :  { %1799 = vmatpush.bf16.msrb.mxu3 %v4428_v26 }
 0x32d   :  { %1660 = vmatpush.bf16.msra.mxu2 %v4447_v28 }
 0x32f   :  { %1800 = vmatpush.bf16.msrb.mxu3 %v4434_v5 }
 0x331   :  { %1661 = vmatpush.bf16.msra.mxu2 %v4454_v13 }
 0x332   :  { %1241 = vmatmul.bf16.gmra.mxu2 %v4395_v35 }
 0x335   :  { %1662 = vmatpush.bf16.msra.mxu2 %v4471_v21 }
 0x339   :  { %1663 = vmatpush.bf16.msra.mxu2 %v4475_v48 }
 0x33a   :  { %v1199_v1 = vpop.f32.mrf.mxu1 }
 0x33b   :  { %v4517_v3 = vpop.f32.mrf.mxu0 }
 0x33d   :  { %1664 = vmatpush.bf16.msra.mxu2 %v4493_v47 }
 0x340   :  { %v4521_v4 = vpop.f32.mrf.mxu3 }
 0x341   :  { %1665 = vmatpush.bf16.msra.mxu2 %v4501_v55 }
 0x342   :  { %v4524_v33 = vpop.f32.mrf.mxu1  ;;  %1246 = vmatmul.bf16.gmra.mxu2 %v4438_v9  ;;  %v4542_v9 = vld [vmem:[%s5072_s14] sm:$0xf] }
 0x343   :  { %v4527_v35 = vpop.f32.mrf.mxu0  ;;  %v4550_v19 = vperm.slane %v4542_v9, 0 }
 0x345   :  { %1666 = vmatpush.bf16.msra.mxu2 %v4508_v58  ;;  %v1200_v41 = vadd.f32 %v1199_v1, %v4550_v19 }
 0x348   :  { %v4530_v6 = vpop.f32.mrf.mxu3 }
 0x349   :  { %1667 = vmatpush.bf16.msra.mxu2 %v4515_v2 }
 0x34a   :  { %v4533_v7 = vpop.f32.mrf.mxu1 }
 0x34b   :  { %v4536_v11 = vpop.f32.mrf.mxu0 }
 0x34c   :  { %5093 = vst [vmem:[#allocation13_spill] sm:$0xff] %v4536_v11 }
 0x350   :  { %v4547_v15 = vpop.f32.mrf.mxu3 }
 0x352   :  { %v4544_v12 = vpop.f32.mrf.mxu1  ;;  %1251 = vmatmul.bf16.gmra.mxu2 %v4465_v43 }
 0x353   :  { %5094 = vst [vmem:[#allocation14_spill] sm:$0xff] %v4544_v12  ;;  %v4553_v17 = vpop.f32.mrf.mxu0 }
 0x354   :  { %5095 = vst [vmem:[#allocation15_spill] sm:$0xff] %v4553_v17 }
 0x358   :  { %v4557_v39 = vpop.f32.mrf.mxu3 }
 0x359   :  { %5096 = vst [vmem:[#allocation16_spill] sm:$0xff] %v4557_v39 }
 0x35a   :  { %v1523_v30 = vpop.f32.mrf.mxu1 }
 0x35b   :  { %v1566_v31 = vadd.f32 %v1523_v30, %v1200_v41 }
 0x35d   :  { %v3208_v51 = vmul.f32 -1.442695, %v1566_v31 }
 0x35f   :  { %3470 = vpow2.f32 %v3208_v51 }
 0x360   :  { %v4559_v57 = vpop.f32.mrf.mxu0 }
 0x361   :  { %5097 = vst [vmem:[#allocation17_spill] sm:$0xff] %v4559_v57 }
 0x362   :  { %1548 = vmatmul.bf16.vlgmr.msrb.gmra.mxu2 %v3751_v0  ;;  %v1525_v43 = vpop.f32.mrf.mxu1 }
 0x363   :  { %1780 = vmatpush.bf16.msrb.mxu2 %v4447_v28 }
 0x365   :  { %v4563_v44 = vpop.f32.mrf.mxu2  ;;  %v4565_v62 = vpop.f32.mrf.mxu3 }
 0x366   :  { %5098 = vst [vmem:[#allocation18_spill] sm:$0xff] %v4563_v44  ;;  %v3471_v59 = vpop.eup %3470 }
 0x367   :  { %5099 = vst [vmem:[#allocation19_spill] sm:$0xff] %v4565_v62  ;;  %1781 = vmatpush.bf16.msrb.mxu2 %v4454_v13  ;;  %v1579_v41 = vadd.f32 1.0, %v3471_v59  ;;  %v4602_v59 = vperm.slane %v4542_v9, 1 }
 0x368   :  { %v4568_v46 = vpop.f32.mrf.mxu0 }
 0x369   :  { %5100 = vst [vmem:[#allocation20_spill] sm:$0xff] %v4568_v46  ;;  %3472 = vrcp.f32 %v1579_v41  ;;  %vm1587_vm13 = vweird.f32 %v1579_v41 }
 0x36a   :  { %v1536_v53 = vpop.f32.mrf.mxu1  ;;  %5112 = vst [vmem:[#allocation32_spill] sm:$0xff] %v4602_v59 }
 0x36b   :  { %1782 = vmatpush.bf16.msrb.mxu2 %v4471_v21 }
 0x36d   :  { %v4571_v37 = vpop.f32.mrf.mxu2  ;;  %v4573_v50 = vpop.f32.mrf.mxu3 }
 0x36e   :  { %5101 = vst [vmem:[#allocation21_spill] sm:$0xff] %v4571_v37 }
 0x36f   :  { %5102 = vst [vmem:[#allocation22_spill] sm:$0xff] %v4573_v50  ;;  %1783 = vmatpush.bf16.msrb.mxu2 %v4475_v48 }
 0x370   :  { %v4576_v0 = vpop.f32.mrf.mxu0 }
 0x371   :  { %5103 = vst [vmem:[#allocation23_spill] sm:$0xff] %v4576_v0 }
 0x372   :  { %v1538_v31 = vpop.f32.mrf.mxu1 }
 0x373   :  { %1784 = vmatpush.bf16.msrb.mxu2 %v4493_v47 }
 0x375   :  { %v4579_v18 = vpop.f32.mrf.mxu2  ;;  %v4581_v54 = vpop.f32.mrf.mxu3 }
 0x376   :  { %5104 = vst [vmem:[#allocation24_spill] sm:$0xff] %v4579_v18 }
 0x377   :  { %5105 = vst [vmem:[#allocation25_spill] sm:$0xff] %v4581_v54  ;;  %1785 = vmatpush.bf16.msrb.mxu2 %v4501_v55 }
 0x378   :  { %v4584_v56 = vpop.f32.mrf.mxu0 }
 0x379   :  { %5106 = vst [vmem:[#allocation26_spill] sm:$0xff] %v4584_v56  ;;  %v3473_v56 = vpop.eup %3472 }
 0x37a   :  { %v1583_v54 = vmul.f32 %v3473_v56, %v1579_v41  ;;  %vm1588_vm12 = vweird.f32 %v3473_v56 }
 0x37b   :  { %1786 = vmatpush.bf16.msrb.mxu2 %v4508_v58  ;;  %vm1589_vm14 = vmor %vm1587_vm13, %vm1588_vm12 }
 0x37c   :  { %v1584_v50 = vsub.f32 1.0, %v1583_v54  ;;  %v1591_v54 = vand.u32 2147483647, %v1579_v41 }
 0x37d   :  { %v4587_v61 = vpop.f32.mrf.mxu2  ;;  %v4589_v1 = vpop.f32.mrf.mxu3 }
 0x37e   :  { %5107 = vst [vmem:[#allocation27_spill] sm:$0xff] %v4587_v61  ;;  %v4599_v61 = vperm.slane %v4542_v9, 3  ;;  %vm1592_vm15 = vcmp.eq.f32.partialorder %v1591_v54, 8.507059e+37 }
 0x37f   :  { %5108 = vst [vmem:[#allocation28_spill] sm:$0xff] %v4589_v1  ;;  %1787 = vmatpush.bf16.msrb.mxu2 %v4515_v2  ;;  %v1585_v1 = vmul.f32 %v3473_v56, %v1584_v50 }
 0x380   :  { %v4592_v30 = vpop.f32.mrf.mxu0  ;;  %v1299_v31 = vadd.f32 %v4517_v3, %v4599_v61 }
 0x381   :  { %5109 = vst [vmem:[#allocation29_spill] sm:$0xff] %v4592_v30 }
 0x385   :  { %v4594_v43 = vpop.f32.mrf.mxu2  ;;  %v4596_v51 = vpop.f32.mrf.mxu3 }
 0x386   :  { %5110 = vst [vmem:[#allocation30_spill] sm:$0xff] %v4594_v43 }
 0x387   :  { %5111 = vst [vmem:[#allocation31_spill] sm:$0xff] %v4596_v51 }
 0x388   :  { %v1320_v0 = vpop.f32.mrf.mxu0 }
 0x389   :  { %v1586_v0 = vadd.f32 %v3473_v56, %v1585_v1 }
 0x38b   :  { %v1590_v62 = vsel %vm1589_vm14, %v3473_v56, %v1586_v0 }
 0x38d   :  { %v1221_v18 = vpop.f32.mrf.mxu2  ;;  %v1287_v46 = vpop.f32.mrf.mxu3 }
 0x38e   :  { %v1593_v18 = vand.u32 2147483648, %v1579_v41 }
 0x390   :  { %v1594_v44 = vor.u32 1.1754944e-38, %v1593_v18 }
 0x392   :  { %v1595_v39 = vsel %vm1592_vm15, %v1594_v44, %v1590_v62 }
 0x395   :  { %v1232_v30 = vpop.f32.mrf.mxu2  ;;  %v1562_v43 = vpop.f32.mrf.mxu3 }
 0x396   :  { %v1233_v51 = vadd.f32 %v1232_v30, %v4602_v59  ;;  %v1569_v37 = vadd.f32 %v1562_v43, %v1299_v31 }
 0x398   :  { %3474 = vtanh.f32 %v1569_v37  ;;  %v1567_v46 = vadd.f32 %v1536_v53, %v1233_v51 }
 0x39a   :  { %v3209_v57 = vmul.f32 -1.442695, %v1567_v46 }
 0x39c   :  { %3476 = vpow2.f32 %v3209_v57 }
 0x39d   :  { %v4607_v50 = vpop.f32.mrf.mxu2  ;;  %v1564_v3 = vpop.f32.mrf.mxu3 }
 0x39e   :  { %v3475_v17 = vpop.eup %3474 }
 0x39f   :  { %v1629_v30 = vmul.f32 %v3475_v17, %v1595_v39 }
 0x3a2   :  { %v3477_v43 = vpop.eup %3476 }
 0x3a3   :  { %v1580_v1 = vadd.f32 1.0, %v3477_v43 }
 0x3a5   :  { %3478 = vrcp.f32 %v1580_v1  ;;  %v1237_v31 = vpop.f32.mrf.mxu2  ;;  %v1608_v57 = vand.u32 2147483648, %v1580_v1  ;;  %v1606_v18 = vand.u32 2147483647, %v1580_v1  ;;  %vm1602_vm1 = vweird.f32 %v1580_v1 }
 0x3a6   :  { %v4610_v37 = vadd.f32 %v1237_v31, %v4602_v59 }
 0x3a7   :  { %v1609_v17 = vor.u32 1.1754944e-38, %v1608_v57  ;;  %vm1607_vm3 = vcmp.eq.f32.partialorder %v1606_v18, 8.507059e+37 }
 0x3ab   :  { %v3479_v53 = vpop.eup %3478 }
 0x3ac   :  { %v1598_v41 = vmul.f32 %v3479_v53, %v1580_v1  ;;  %vm1603_vm0 = vweird.f32 %v3479_v53 }
 0x3ad   :  { %v4612_v51 = vpop.f32.mrf.mxu2  ;;  %vm1604_vm2 = vmor %vm1602_vm1, %vm1603_vm0 }
 0x3ae   :  { %5113 = vst [vmem:[#allocation33_spill] sm:$0xff] %v4612_v51  ;;  %v1599_v56 = vsub.f32 1.0, %v1598_v41 }
 0x3b0   :  { %v1600_v0 = vmul.f32 %v3479_v53, %v1599_v56 }
 0x3b2   :  { %v1601_v46 = vadd.f32 %v3479_v53, %v1600_v0 }
 0x3b4   :  { %v1605_v39 = vsel %vm1604_vm2, %v3479_v53, %v1601_v46 }
 0x3b5   :  { %v1610_v44 = vsel %vm1607_vm3, %v1609_v17, %v1605_v39  ;;  %v1242_v62 = vpop.f32.mrf.mxu2 }
 0x3b6   :  { %v1628_v54 = vmul.f32 0.0, %v1610_v44  ;;  %v4615_v3 = vadd.f32 %v1242_v62, %v4602_v59 }
 0x3b8   :  { %5114 = vst [vmem:[#allocation34_spill] sm:$0xff] %v4615_v3  ;;  %v4617_v43 = vadd.f32 %v1629_v30, %v1628_v54  ;;  %v4632_v30 = vperm.slane %v4542_v9, 2 }
 0x3ba   :  { %v1266_v17 = vadd.f32 %v4521_v4, %v4632_v30 }
 0x3bd   :  { %v1244_v31 = vpop.f32.mrf.mxu2 }
 0x3be   :  { %v4620_v41 = vadd.f32 %v1244_v31, %v4602_v59 }
 0x3c0   :  { %5115 = vst [vmem:[#allocation35_spill] sm:$0xff] %v4620_v41 }
 0x3c5   :  { %v1247_v56 = vpop.f32.mrf.mxu2 }
 0x3c6   :  { %v4623_v0 = vadd.f32 %v1247_v56, %v4602_v59 }
 0x3c8   :  { %5116 = vst [vmem:[#allocation36_spill] sm:$0xff] %v4623_v0 }
 0x3cd   :  { %v1249_v1 = vpop.f32.mrf.mxu2 }
 0x3ce   :  { %v4626_v53 = vadd.f32 %v1249_v1, %v4602_v59 }
 0x3d0   :  { %5117 = vst [vmem:[#allocation37_spill] sm:$0xff] %v4626_v53 }
 0x3d5   :  { %v1252_v57 = vpop.f32.mrf.mxu2 }
 0x3d6   :  { %v4629_v18 = vadd.f32 %v1252_v57, %v4602_v59 }
 0x3d8   :  { %5118 = vst [vmem:[#allocation38_spill] sm:$0xff] %v4629_v18 }
 0x3dd   :  { %v1254_v46 = vpop.f32.mrf.mxu2 }
 0x3e5   :  { %v1549_v39 = vpop.f32.mrf.mxu2 }
 0x3e6   :  { %v1568_v44 = vadd.f32 %v1549_v39, %v1266_v17 }
 0x3e8   :  { %v3210_v62 = vmul.f32 -1.442695, %v1568_v44 }
 0x3ea   :  { %3480 = vpow2.f32 %v3210_v62 }
 0x3ed   :  { %v1551_v54 = vpop.f32.mrf.mxu2 }
 0x3f0   :  { %v3481_v31 = vpop.eup %3480 }
 0x3f1   :  { %v1581_v56 = vadd.f32 1.0, %v3481_v31 }
 0x3f3   :  { %3482 = vrcp.f32 %v1581_v56  ;;  %v1623_v57 = vand.u32 2147483648, %v1581_v56  ;;  %v1621_v9 = vand.u32 2147483647, %v1581_v56  ;;  %vm1617_vm5 = vweird.f32 %v1581_v56 }
 0x3f4   :  { %3484 = vtanh.f32 %v4617_v43 }
 0x3f5   :  { %v1624_v4 = vor.u32 1.1754944e-38, %v1623_v57  ;;  %vm1622_vm7 = vcmp.eq.f32.partialorder %v1621_v9, 8.507059e+37  ;;  %v1268_v9 = vadd.f32 %v4530_v6, %v4632_v30  ;;  %v1301_v6 = vadd.f32 %v4527_v35, %v4599_v61 }
 0x3f9   :  { %v3483_v1 = vpop.eup %3482 }
 0x3fa   :  { %v1613_v53 = vmul.f32 %v3483_v1, %v1581_v56  ;;  %vm1618_vm4 = vweird.f32 %v3483_v1  ;;  %v3485_v39 = vpop.eup %3484 }
 0x3fb   :  { %vm1619_vm6 = vmor %vm1617_vm5, %vm1618_vm4 }
 0x3fc   :  { %v1614_v0 = vsub.f32 1.0, %v1613_v53  ;;  %v1235_v53 = vadd.f32 %v4607_v50, %v4602_v59 }
 0x3fe   :  { %v1615_v46 = vmul.f32 %v3483_v1, %v1614_v0  ;;  %v1202_v0 = vadd.f32 %v4524_v33, %v4550_v19 }
 0x400   :  { %v1616_v18 = vadd.f32 %v3483_v1, %v1615_v46 }
 0x402   :  { %v1620_v17 = vsel %vm1619_vm6, %v3483_v1, %v1616_v18 }
 0x403   :  { %v1625_v44 = vsel %vm1622_vm7, %v1624_v4, %v1620_v17 }
 0x404   :  { %v4637_v62 = vmul.f32 %v3485_v39, %v1625_v44 }
 0x406   :  { %5119 = vst [vmem:[#allocation39_spill] sm:$0xff] %v4637_v62  ;;  %v1633_v54 = vpack.c.bf16 %v4637_v62, %v4637_v62 }
 0x408   :  { %1642 = vmatmul.bf16.vlgmr.msrb.gmra.mxu0 %v1633_v54  ;;  %1655 = vmatmul.bf16.vlgmr.msra.gmra.mxu1 %v1633_v54 }
 0x409   :  { %1668 = vmatmul.bf16.vlgmr.msra.gmra.mxu2 %v1633_v54  ;;  %1681 = vmatmul.bf16.vlgmr.msra.gmra.mxu3 %v1633_v54 }
 0x40a   :  { %1874 = vmatpush.bf16.msrb.mxu0 %v4279_v10  ;;  %1887 = vmatpush.bf16.msra.mxu1 %v4375_v32 }
 0x40b   :  { %1900 = vmatpush.bf16.msra.mxu2 %v4447_v28  ;;  %1913 = vmatpush.bf16.msra.mxu3 %v4355_v60 }
 0x40e   :  { %1875 = vmatpush.bf16.msrb.mxu0 %v4283_v14  ;;  %1888 = vmatpush.bf16.msra.mxu1 %v4388_v27 }
 0x40f   :  { %1901 = vmatpush.bf16.msra.mxu2 %v4454_v13  ;;  %1914 = vmatpush.bf16.msra.mxu3 %v4365_v52 }
 0x412   :  { %1876 = vmatpush.bf16.msrb.mxu0 %v4286_v16  ;;  %1889 = vmatpush.bf16.msra.mxu1 %v4401_v40 }
 0x413   :  { %1902 = vmatpush.bf16.msra.mxu2 %v4471_v21  ;;  %1915 = vmatpush.bf16.msra.mxu3 %v4377_v8 }
 0x416   :  { %1877 = vmatpush.bf16.msrb.mxu0 %v4291_v22  ;;  %1890 = vmatpush.bf16.msra.mxu1 %v4414_v42 }
 0x417   :  { %1903 = vmatpush.bf16.msra.mxu2 %v4475_v48  ;;  %1916 = vmatpush.bf16.msra.mxu3 %v4390_v23 }
 0x41a   :  { %1878 = vmatpush.bf16.msrb.mxu0 %v4295_v24  ;;  %1891 = vmatpush.bf16.msra.mxu1 %v4425_v63 }
 0x41b   :  { %1904 = vmatpush.bf16.msra.mxu2 %v4493_v47  ;;  %1917 = vmatpush.bf16.msra.mxu3 %v4404_v49 }
 0x41e   :  { %1879 = vmatpush.bf16.msrb.mxu0 %v4299_v29  ;;  %1892 = vmatpush.bf16.msra.mxu1 %v4431_v25 }
 0x41f   :  { %1905 = vmatpush.bf16.msra.mxu2 %v4501_v55  ;;  %1918 = vmatpush.bf16.msra.mxu3 %v4416_v45 }
 0x422   :  { %1880 = vmatpush.bf16.msrb.mxu0 %v4302_v34  ;;  %1893 = vmatpush.bf16.msra.mxu1 %v4444_v20 }
 0x423   :  { %1906 = vmatpush.bf16.msra.mxu2 %v4508_v58  ;;  %1919 = vmatpush.bf16.msra.mxu3 %v4428_v26 }
 0x426   :  { %1881 = vmatpush.bf16.msrb.mxu0 %v4314_v38  ;;  %1894 = vmatpush.bf16.msra.mxu1 %v4451_v36 }
 0x427   :  { %1907 = vmatpush.bf16.msra.mxu2 %v4515_v2  ;;  %1920 = vmatpush.bf16.msra.mxu3 %v4434_v5 }
 0x485   :  { %v1643_v18 = vpop.f32.mrf.mxu0  ;;  %v1656_v31 = vpop.f32.mrf.mxu1 }
 0x486   :  { %v1686_v56 = vadd.f32 %v1643_v18, %v1202_v0  ;;  %v1687_v1 = vadd.f32 %v1656_v31, %v1235_v53 }
 0x488   :  { %v3211_v57 = vmul.f32 -1.442695, %v1686_v56  ;;  %v3212_v46 = vmul.f32 -1.442695, %v1687_v1 }
 0x48a   :  { %3486 = vpow2.f32 %v3211_v57 }
 0x48b   :  { %3488 = vpow2.f32 %v3212_v46 }
 0x48c   :  { %v1669_v4 = vpop.f32.mrf.mxu2  ;;  %v1682_v17 = vpop.f32.mrf.mxu3 }
 0x48d   :  { %v1688_v39 = vadd.f32 %v1669_v4, %v1268_v9  ;;  %v1645_v44 = vpop.f32.mrf.mxu0  ;;  %v1658_v54 = vpop.f32.mrf.mxu1  ;;  %v1689_v1 = vadd.f32 %v1682_v17, %v1301_v6 }
 0x48f   :  { %v3213_v33 = vmul.f32 -1.442695, %v1688_v39 }
 0x490   :  { %v3487_v62 = vpop.eup %3486 }
 0x491   :  { %v3489_v41 = vpop.eup %3488  ;;  %v1699_v50 = vadd.f32 1.0, %v3487_v62  ;;  %3490 = vpow2.f32 %v3213_v33 }
 0x492   :  { %v1700_v3 = vadd.f32 1.0, %v3489_v41 }
 0x493   :  { %3492 = vrcp.f32 %v1699_v50  ;;  %v1713_v62 = vand.u32 2147483648, %v1699_v50  ;;  %v1711_v54 = vand.u32 2147483647, %v1699_v50  ;;  %vm1707_vm10 = vweird.f32 %v1699_v50 }
 0x494   :  { %3494 = vrcp.f32 %v1700_v3  ;;  %v1671_v0 = vpop.f32.mrf.mxu2  ;;  %v1684_v53 = vpop.f32.mrf.mxu3  ;;  %v1728_v41 = vand.u32 2147483648, %v1700_v3  ;;  %vm1722_vm11 = vweird.f32 %v1700_v3 }
 0x495   :  { %v1726_v0 = vand.u32 2147483647, %v1700_v3  ;;  %vm1712_vm14 = vcmp.eq.f32.partialorder %v1711_v54, 8.507059e+37 }
 0x497   :  { %v3491_v18 = vpop.eup %3490  ;;  %vm1727_vm15 = vcmp.eq.f32.partialorder %v1726_v0, 8.507059e+37 }
 0x498   :  { %v1701_v31 = vadd.f32 1.0, %v3491_v18  ;;  %v1714_v18 = vor.u32 1.1754944e-38, %v1713_v62 }
 0x499   :  { %v3493_v56 = vpop.eup %3492 }
 0x49a   :  { %v3495_v57 = vpop.eup %3494  ;;  %v1703_v46 = vmul.f32 %v3493_v56, %v1699_v50  ;;  %3496 = vrcp.f32 %v1701_v31  ;;  %vm1708_vm8 = vweird.f32 %v3493_v56  ;;  %v1743_v62 = vand.u32 2147483648, %v1701_v31 }
 0x49b   :  { %v1718_v9 = vmul.f32 %v3495_v57, %v1700_v3  ;;  %3498 = vtanh.f32 %v1689_v1  ;;  %vm1723_vm9 = vweird.f32 %v3495_v57  ;;  %vm1709_vm12 = vmor %vm1707_vm10, %vm1708_vm8  ;;  %vm1737_vm1 = vweird.f32 %v1701_v31 }
 0x49c   :  { %v1704_v4 = vsub.f32 1.0, %v1703_v46  ;;  %vm1724_vm13 = vmor %vm1722_vm11, %vm1723_vm9  ;;  %v1729_v46 = vor.u32 1.1754944e-38, %v1728_v41  ;;  %v1744_v54 = vor.u32 1.1754944e-38, %v1743_v62 }
 0x49d   :  { %v1719_v39 = vsub.f32 1.0, %v1718_v9 }
 0x49e   :  { %v1705_v44 = vmul.f32 %v3493_v56, %v1704_v4 }
 0x49f   :  { %v1720_v33 = vmul.f32 %v3495_v57, %v1719_v39 }
 0x4a0   :  { %v3497_v53 = vpop.eup %3496  ;;  %v1706_v35 = vadd.f32 %v3493_v56, %v1705_v44 }
 0x4a1   :  { %v1733_v17 = vmul.f32 %v3497_v53, %v1701_v31  ;;  %v1721_v6 = vadd.f32 %v3495_v57, %v1720_v33  ;;  %v3499_v1 = vpop.eup %3498  ;;  %vm1738_vm0 = vweird.f32 %v3497_v53 }
 0x4a2   :  { %v1710_v9 = vsel %vm1709_vm12, %v3493_v56, %v1706_v35  ;;  %v1741_v56 = vand.u32 2147483647, %v1701_v31  ;;  %vm1739_vm2 = vmor %vm1737_vm1, %vm1738_vm0 }
 0x4a3   :  { %v1734_v51 = vsub.f32 1.0, %v1733_v17  ;;  %v1715_v4 = vsel %vm1712_vm14, %v1714_v18, %v1710_v9  ;;  %v1725_v59 = vsel %vm1724_vm13, %v3495_v57, %v1721_v6  ;;  %v1271_v17 = vadd.f32 %v4547_v15, %v4632_v30 }
 0x4a4   :  { %v1730_v39 = vsel %vm1727_vm15, %v1729_v46, %v1725_v59  ;;  %v1749_v12 = vmul.f32 %v3499_v1, %v1715_v4  ;;  %vm1742_vm3 = vcmp.eq.f32.partialorder %v1741_v56, 8.507059e+37 }
 0x4a5   :  { %v1735_v11 = vmul.f32 %v3497_v53, %v1734_v51  ;;  %v1748_v44 = vmul.f32 %v1730_v39, %v4617_v43 }
 0x4a7   :  { %v4682_v50 = vadd.f32 %v1749_v12, %v1748_v44  ;;  %v1736_v3 = vadd.f32 %v3497_v53, %v1735_v11  ;;  %v1205_v11 = vadd.f32 %v4533_v7, %v4550_v19 }
 0x4a9   :  { %3500 = vtanh.f32 %v4682_v50  ;;  %v1740_v41 = vsel %vm1739_vm2, %v3497_v53, %v1736_v3 }
 0x4aa   :  { %v1745_v33 = vsel %vm1742_vm3, %v1744_v54, %v1740_v41  ;;  %v5120_v41 = vld [vmem:[#allocation13_spill] sm:$0xff] }
 0x4ab   :  { %v1304_v15 = vadd.f32 %v5120_v41, %v4599_v61 }
 0x4af   :  { %v3501_v57 = vpop.eup %3500 }
 0x4b0   :  { %v4685_v59 = vmul.f32 %v3501_v57, %v1745_v33 }
 0x4b2   :  { %v1753_v51 = vpack.c.bf16 %v4685_v59, %v4685_v59 }
 0x4b4   :  { %1762 = vmatmul.bf16.vlgmr.msra.gmra.mxu0 %v1753_v51  ;;  %1775 = vmatmul.bf16.vlgmr.msrb.gmra.mxu1 %v1753_v51 }
 0x4b5   :  { %1788 = vmatmul.bf16.vlgmr.msrb.gmra.mxu2 %v1753_v51  ;;  %1801 = vmatmul.bf16.vlgmr.msrb.gmra.mxu3 %v1753_v51 }
 0x4b6   :  { %1994 = vmatpush.bf16.msra.mxu0 %v4279_v10  ;;  %2007 = vmatpush.bf16.msrb.mxu1 %v4375_v32 }
 0x4b7   :  { %2020 = vmatpush.bf16.msrb.mxu2 %v4447_v28  ;;  %2033 = vmatpush.bf16.msrb.mxu3 %v4355_v60 }
 0x4ba   :  { %1995 = vmatpush.bf16.msra.mxu0 %v4283_v14  ;;  %2008 = vmatpush.bf16.msrb.mxu1 %v4388_v27 }
 0x4bb   :  { %2021 = vmatpush.bf16.msrb.mxu2 %v4454_v13  ;;  %2034 = vmatpush.bf16.msrb.mxu3 %v4365_v52 }
 0x4be   :  { %1996 = vmatpush.bf16.msra.mxu0 %v4286_v16  ;;  %2009 = vmatpush.bf16.msrb.mxu1 %v4401_v40 }
 0x4bf   :  { %2022 = vmatpush.bf16.msrb.mxu2 %v4471_v21  ;;  %2035 = vmatpush.bf16.msrb.mxu3 %v4377_v8 }
 0x4c2   :  { %1997 = vmatpush.bf16.msra.mxu0 %v4291_v22  ;;  %2010 = vmatpush.bf16.msrb.mxu1 %v4414_v42 }
 0x4c3   :  { %2023 = vmatpush.bf16.msrb.mxu2 %v4475_v48  ;;  %2036 = vmatpush.bf16.msrb.mxu3 %v4390_v23 }
 0x4c6   :  { %1998 = vmatpush.bf16.msra.mxu0 %v4295_v24  ;;  %2011 = vmatpush.bf16.msrb.mxu1 %v4425_v63 }
 0x4c7   :  { %2024 = vmatpush.bf16.msrb.mxu2 %v4493_v47  ;;  %2037 = vmatpush.bf16.msrb.mxu3 %v4404_v49 }
 0x4ca   :  { %1999 = vmatpush.bf16.msra.mxu0 %v4299_v29  ;;  %2012 = vmatpush.bf16.msrb.mxu1 %v4431_v25 }
 0x4cb   :  { %2025 = vmatpush.bf16.msrb.mxu2 %v4501_v55  ;;  %2038 = vmatpush.bf16.msrb.mxu3 %v4416_v45 }
 0x4ce   :  { %2000 = vmatpush.bf16.msra.mxu0 %v4302_v34  ;;  %2013 = vmatpush.bf16.msrb.mxu1 %v4444_v20 }
 0x4cf   :  { %2026 = vmatpush.bf16.msrb.mxu2 %v4508_v58  ;;  %2039 = vmatpush.bf16.msrb.mxu3 %v4428_v26 }
 0x4d2   :  { %2001 = vmatpush.bf16.msra.mxu0 %v4314_v38  ;;  %2014 = vmatpush.bf16.msrb.mxu1 %v4451_v36 }
 0x4d3   :  { %2027 = vmatpush.bf16.msrb.mxu2 %v4515_v2  ;;  %2040 = vmatpush.bf16.msrb.mxu3 %v4434_v5 }
 0x531   :  { %v1763_v12 = vpop.f32.mrf.mxu0  ;;  %v1776_v43 = vpop.f32.mrf.mxu1 }
 0x532   :  { %v1806_v31 = vadd.f32 %v1763_v12, %v1205_v11  ;;  %v1807_v0 = vadd.f32 %v1776_v43, %v4610_v37 }
 0x534   :  { %v3214_v53 = vmul.f32 -1.442695, %v1806_v31  ;;  %v3215_v35 = vmul.f32 -1.442695, %v1807_v0 }
 0x536   :  { %3502 = vpow2.f32 %v3214_v53 }
 0x537   :  { %3504 = vpow2.f32 %v3215_v35 }
 0x538   :  { %v1789_v18 = vpop.f32.mrf.mxu2  ;;  %v1802_v6 = vpop.f32.mrf.mxu3 }
 0x539   :  { %v1808_v46 = vadd.f32 %v1789_v18, %v1271_v17  ;;  %v1765_v9 = vpop.f32.mrf.mxu0  ;;  %v1778_v1 = vpop.f32.mrf.mxu1  ;;  %v1809_v33 = vadd.f32 %v1802_v6, %v1304_v15 }
 0x53b   :  { %v3216_v4 = vmul.f32 -1.442695, %v1808_v46 }
 0x53c   :  { %v3503_v39 = vpop.eup %3502 }
 0x53d   :  { %v3505_v7 = vpop.eup %3504  ;;  %v1819_v44 = vadd.f32 1.0, %v3503_v39  ;;  %3506 = vpow2.f32 %v3216_v4 }
 0x53e   :  { %v1820_v3 = vadd.f32 1.0, %v3505_v7 }
 0x53f   :  { %3508 = vrcp.f32 %v1819_v44  ;;  %v1833_v0 = vand.u32 2147483648, %v1819_v44  ;;  %v1831_v17 = vand.u32 2147483647, %v1819_v44  ;;  %vm1827_vm6 = vweird.f32 %v1819_v44 }
 0x540   :  { %3510 = vrcp.f32 %v1820_v3  ;;  %v1791_v37 = vpop.f32.mrf.mxu2  ;;  %v1804_v62 = vpop.f32.mrf.mxu3  ;;  %v1848_v53 = vand.u32 2147483648, %v1820_v3  ;;  %v1846_v46 = vand.u32 2147483647, %v1820_v3  ;;  %vm1842_vm7 = vweird.f32 %v1820_v3 }
 0x541   :  { %v1834_v4 = vor.u32 1.1754944e-38, %v1833_v0  ;;  %vm1832_vm10 = vcmp.eq.f32.partialorder %v1831_v17, 8.507059e+37 }
 0x542   :  { %v1849_v7 = vor.u32 1.1754944e-38, %v1848_v53  ;;  %vm1847_vm11 = vcmp.eq.f32.partialorder %v1846_v46, 8.507059e+37  ;;  %v5122_v46 = vld [vmem:[#allocation32_spill] sm:$0xff] }
 0x543   :  { %v3507_v56 = vpop.eup %3506 }
 0x544   :  { %v1821_v54 = vadd.f32 1.0, %v3507_v56 }
 0x545   :  { %v3509_v57 = vpop.eup %3508 }
 0x546   :  { %v3511_v51 = vpop.eup %3510  ;;  %v1823_v11 = vmul.f32 %v3509_v57, %v1819_v44  ;;  %3512 = vrcp.f32 %v1821_v54  ;;  %vm1828_vm4 = vweird.f32 %v3509_v57  ;;  %vm1857_vm13 = vweird.f32 %v1821_v54 }
 0x547   :  { %v1838_v12 = vmul.f32 %v3511_v51, %v1820_v3  ;;  %3514 = vtanh.f32 %v1809_v33  ;;  %vm1843_vm5 = vweird.f32 %v3511_v51  ;;  %vm1829_vm8 = vmor %vm1827_vm6, %vm1828_vm4 }
 0x548   :  { %v1824_v43 = vsub.f32 1.0, %v1823_v11  ;;  %vm1844_vm9 = vmor %vm1842_vm7, %vm1843_vm5 }
 0x549   :  { %v1839_v31 = vsub.f32 1.0, %v1838_v12 }
 0x54a   :  { %v1825_v35 = vmul.f32 %v3509_v57, %v1824_v43 }
 0x54b   :  { %v1840_v18 = vmul.f32 %v3511_v51, %v1839_v31  ;;  %v1863_v31 = vand.u32 2147483648, %v1821_v54 }
 0x54c   :  { %v3513_v9 = vpop.eup %3512  ;;  %v1826_v1 = vadd.f32 %v3509_v57, %v1825_v35 }
 0x54d   :  { %v1853_v6 = vmul.f32 %v3513_v9, %v1821_v54  ;;  %v1841_v39 = vadd.f32 %v3511_v51, %v1840_v18  ;;  %v3515_v62 = vpop.eup %3514  ;;  %vm1858_vm12 = vweird.f32 %v3513_v9  ;;  %v1864_v53 = vor.u32 1.1754944e-38, %v1863_v31 }
 0x54e   :  { %v1830_v37 = vsel %vm1829_vm8, %v3509_v57, %v1826_v1  ;;  %v1861_v57 = vand.u32 2147483647, %v1821_v54  ;;  %vm1859_vm14 = vmor %vm1857_vm13, %vm1858_vm12  ;;  %v5121_v54 = vld [vmem:[#allocation14_spill] sm:$0xff] }
 0x54f   :  { %v1854_v56 = vsub.f32 1.0, %v1853_v6  ;;  %v1835_v41 = vsel %vm1832_vm10, %v1834_v4, %v1830_v37  ;;  %v1845_v15 = vsel %vm1844_vm9, %v3511_v51, %v1841_v39  ;;  %v1207_v18 = vadd.f32 %v5121_v54, %v4550_v19  ;;  %v5125_v54 = vld [vmem:[#allocation15_spill] sm:$0xff] }
 0x550   :  { %v1850_v33 = vsel %vm1847_vm11, %v1849_v7, %v1845_v15  ;;  %v1869_v11 = vmul.f32 %v3515_v62, %v1835_v41  ;;  %vm1862_vm15 = vcmp.eq.f32.partialorder %v1861_v57, 8.507059e+37 }
 0x551   :  { %v1855_v12 = vmul.f32 %v3513_v9, %v1854_v56  ;;  %v1868_v43 = vmul.f32 %v1850_v33, %v4682_v50  ;;  %v5124_v56 = vld [vmem:[#allocation16_spill] sm:$0xff] }
 0x552   :  { %v1273_v41 = vadd.f32 %v5124_v56, %v4632_v30 }
 0x553   :  { %v4729_v44 = vadd.f32 %v1869_v11, %v1868_v43  ;;  %v1856_v3 = vadd.f32 %v3513_v9, %v1855_v12 }
 0x555   :  { %3516 = vtanh.f32 %v4729_v44  ;;  %v1860_v0 = vsel %vm1859_vm14, %v3513_v9, %v1856_v3  ;;  %v5123_v9 = vld [vmem:[#allocation33_spill] sm:$0xff] }
 0x556   :  { %v1865_v35 = vsel %vm1862_vm15, %v1864_v53, %v1860_v0  ;;  %v1240_v1 = vadd.f32 %v5123_v9, %v5122_v46 }
 0x55b   :  { %v3517_v51 = vpop.eup %3516 }
 0x55c   :  { %v4732_v17 = vmul.f32 %v3517_v51, %v1865_v35 }
 0x55e   :  { %v1873_v50 = vpack.c.bf16 %v4732_v17, %v4732_v17 }
 0x560   :  { %1882 = vmatmul.bf16.vlgmr.msrb.gmra.mxu0 %v1873_v50  ;;  %1895 = vmatmul.bf16.vlgmr.msra.gmra.mxu1 %v1873_v50 }
 0x561   :  { %1908 = vmatmul.bf16.vlgmr.msra.gmra.mxu2 %v1873_v50  ;;  %1921 = vmatmul.bf16.vlgmr.msra.gmra.mxu3 %v1873_v50 }
 0x562   :  { %2114 = vmatpush.bf16.msrb.mxu0 %v4279_v10  ;;  %2127 = vmatpush.bf16.msra.mxu1 %v4375_v32 }
 0x563   :  { %2140 = vmatpush.bf16.msra.mxu2 %v4447_v28  ;;  %2153 = vmatpush.bf16.msra.mxu3 %v4355_v60 }
 0x566   :  { %2115 = vmatpush.bf16.msrb.mxu0 %v4283_v14  ;;  %2128 = vmatpush.bf16.msra.mxu1 %v4388_v27 }
 0x567   :  { %2141 = vmatpush.bf16.msra.mxu2 %v4454_v13  ;;  %2154 = vmatpush.bf16.msra.mxu3 %v4365_v52 }
 0x56a   :  { %2116 = vmatpush.bf16.msrb.mxu0 %v4286_v16  ;;  %2129 = vmatpush.bf16.msra.mxu1 %v4401_v40 }
 0x56b   :  { %2142 = vmatpush.bf16.msra.mxu2 %v4471_v21  ;;  %2155 = vmatpush.bf16.msra.mxu3 %v4377_v8 }
 0x56e   :  { %2117 = vmatpush.bf16.msrb.mxu0 %v4291_v22  ;;  %2130 = vmatpush.bf16.msra.mxu1 %v4414_v42 }
 0x56f   :  { %2143 = vmatpush.bf16.msra.mxu2 %v4475_v48  ;;  %2156 = vmatpush.bf16.msra.mxu3 %v4390_v23 }
 0x572   :  { %2118 = vmatpush.bf16.msrb.mxu0 %v4295_v24  ;;  %2131 = vmatpush.bf16.msra.mxu1 %v4425_v63 }
 0x573   :  { %2144 = vmatpush.bf16.msra.mxu2 %v4493_v47  ;;  %2157 = vmatpush.bf16.msra.mxu3 %v4404_v49 }
 0x576   :  { %2119 = vmatpush.bf16.msrb.mxu0 %v4299_v29  ;;  %2132 = vmatpush.bf16.msra.mxu1 %v4431_v25 }
 0x577   :  { %2145 = vmatpush.bf16.msra.mxu2 %v4501_v55  ;;  %2158 = vmatpush.bf16.msra.mxu3 %v4416_v45 }
 0x57a   :  { %2120 = vmatpush.bf16.msrb.mxu0 %v4302_v34  ;;  %2133 = vmatpush.bf16.msra.mxu1 %v4444_v20 }
 0x57b   :  { %2146 = vmatpush.bf16.msra.mxu2 %v4508_v58  ;;  %2159 = vmatpush.bf16.msra.mxu3 %v4428_v26 }
 0x57e   :  { %2121 = vmatpush.bf16.msrb.mxu0 %v4314_v38  ;;  %2134 = vmatpush.bf16.msra.mxu1 %v4451_v36 }
 0x57f   :  { %2147 = vmatpush.bf16.msra.mxu2 %v4515_v2  ;;  %2160 = vmatpush.bf16.msra.mxu3 %v4434_v5 }
 0x5dd   :  { %v1883_v6 = vpop.f32.mrf.mxu0  ;;  %v1896_v4 = vpop.f32.mrf.mxu1 }
 0x5de   :  { %v1926_v39 = vadd.f32 %v1883_v6, %v1207_v18  ;;  %v1927_v7 = vadd.f32 %v1896_v4, %v1240_v1  ;;  %v1306_v18 = vadd.f32 %v5125_v54, %v4599_v61 }
 0x5e0   :  { %v3217_v37 = vmul.f32 -1.442695, %v1926_v39  ;;  %v3218_v62 = vmul.f32 -1.442695, %v1927_v7 }
 0x5e2   :  { %3518 = vpow2.f32 %v3217_v37 }
 0x5e3   :  { %3520 = vpow2.f32 %v3218_v62 }
 0x5e4   :  { %v1909_v15 = vpop.f32.mrf.mxu2  ;;  %v1922_v33 = vpop.f32.mrf.mxu3 }
 0x5e5   :  { %v1928_v11 = vadd.f32 %v1909_v15, %v1273_v41  ;;  %v1885_v12 = vpop.f32.mrf.mxu0  ;;  %v1898_v43 = vpop.f32.mrf.mxu1  ;;  %v1929_v1 = vadd.f32 %v1922_v33, %v1306_v18 }
 0x5e7   :  { %v3219_v3 = vmul.f32 -1.442695, %v1928_v11 }
 0x5e8   :  { %v3519_v31 = vpop.eup %3518 }
 0x5e9   :  { %v3521_v57 = vpop.eup %3520  ;;  %v1939_v0 = vadd.f32 1.0, %v3519_v31  ;;  %3522 = vpow2.f32 %v3219_v3 }
 0x5ea   :  { %v1940_v53 = vadd.f32 1.0, %v3521_v57 }
 0x5eb   :  { %3524 = vrcp.f32 %v1939_v0  ;;  %v1953_v62 = vand.u32 2147483648, %v1939_v0  ;;  %v1951_v15 = vand.u32 2147483647, %v1939_v0  ;;  %vm1947_vm2 = vweird.f32 %v1939_v0 }
 0x5ec   :  { %3526 = vrcp.f32 %v1940_v53  ;;  %v1911_v51 = vpop.f32.mrf.mxu2  ;;  %v1924_v35 = vpop.f32.mrf.mxu3  ;;  %v1968_v56 = vand.u32 2147483648, %v1940_v53  ;;  %v1966_v12 = vand.u32 2147483647, %v1940_v53  ;;  %vm1962_vm3 = vweird.f32 %v1940_v53 }
 0x5ed   :  { %v1954_v31 = vor.u32 1.1754944e-38, %v1953_v62  ;;  %vm1952_vm6 = vcmp.eq.f32.partialorder %v1951_v15, 8.507059e+37 }
 0x5ee   :  { %v1969_v51 = vor.u32 1.1754944e-38, %v1968_v56  ;;  %vm1967_vm7 = vcmp.eq.f32.partialorder %v1966_v12, 8.507059e+37 }
 0x5ef   :  { %v3523_v50 = vpop.eup %3522 }
 0x5f0   :  { %v1941_v46 = vadd.f32 1.0, %v3523_v50 }
 0x5f1   :  { %v3525_v9 = vpop.eup %3524 }
 0x5f2   :  { %v3527_v6 = vpop.eup %3526  ;;  %v1943_v4 = vmul.f32 %v3525_v9, %v1939_v0  ;;  %3528 = vrcp.f32 %v1941_v46  ;;  %vm1948_vm0 = vweird.f32 %v3525_v9  ;;  %v1983_v62 = vand.u32 2147483648, %v1941_v46 }
 0x5f3   :  { %v1958_v39 = vmul.f32 %v3527_v6, %v1940_v53  ;;  %3530 = vtanh.f32 %v1929_v1  ;;  %vm1963_vm1 = vweird.f32 %v3527_v6  ;;  %vm1949_vm4 = vmor %vm1947_vm2, %vm1948_vm0  ;;  %vm1977_vm9 = vweird.f32 %v1941_v46 }
 0x5f4   :  { %v1944_v7 = vsub.f32 1.0, %v1943_v4  ;;  %vm1964_vm5 = vmor %vm1962_vm3, %vm1963_vm1 }
 0x5f5   :  { %v1959_v37 = vsub.f32 1.0, %v1958_v39 }
 0x5f6   :  { %v1945_v41 = vmul.f32 %v3525_v9, %v1944_v7 }
 0x5f7   :  { %v1960_v11 = vmul.f32 %v3527_v6, %v1959_v37 }
 0x5f8   :  { %v3529_v43 = vpop.eup %3528  ;;  %v1946_v3 = vadd.f32 %v3525_v9, %v1945_v41  ;;  %v1984_v41 = vor.u32 1.1754944e-38, %v1983_v62 }
 0x5f9   :  { %v1973_v33 = vmul.f32 %v3529_v43, %v1941_v46  ;;  %v1961_v57 = vadd.f32 %v3527_v6, %v1960_v11  ;;  %v3531_v50 = vpop.eup %3530  ;;  %vm1978_vm8 = vweird.f32 %v3529_v43 }
 0x5fa   :  { %v1950_v35 = vsel %vm1949_vm4, %v3525_v9, %v1946_v3  ;;  %v1981_v9 = vand.u32 2147483647, %v1941_v46  ;;  %vm1979_vm10 = vmor %vm1977_vm9, %vm1978_vm8  ;;  %v5126_v46 = vld [vmem:[#allocation18_spill] sm:$0xff] }
 0x5fb   :  { %v1974_v54 = vsub.f32 1.0, %v1973_v33  ;;  %v1955_v18 = vsel %vm1952_vm6, %v1954_v31, %v1950_v35  ;;  %v1965_v1 = vsel %vm1964_vm5, %v3527_v6, %v1961_v57  ;;  %v1210_v12 = vadd.f32 %v5126_v46, %v4550_v19  ;;  %v5127_v31 = vld [vmem:[#allocation34_spill] sm:$0xff] }
 0x5fc   :  { %v1970_v4 = vsel %vm1967_vm7, %v1969_v51, %v1965_v1  ;;  %v1989_v39 = vmul.f32 %v3531_v50, %v1955_v18  ;;  %vm1982_vm11 = vcmp.eq.f32.partialorder %v1981_v9, 8.507059e+37  ;;  %v5128_v50 = vld [vmem:[#allocation19_spill] sm:$0xff] }
 0x5fd   :  { %v1975_v7 = vmul.f32 %v3529_v43, %v1974_v54  ;;  %v1988_v37 = vmul.f32 %v1970_v4, %v4729_v44  ;;  %v1276_v54 = vadd.f32 %v5128_v50, %v4632_v30 }
 0x5ff   :  { %v4777_v0 = vadd.f32 %v1989_v39, %v1988_v37  ;;  %v1976_v53 = vadd.f32 %v3529_v43, %v1975_v7 }
 0x601   :  { %3532 = vtanh.f32 %v4777_v0  ;;  %v1980_v56 = vsel %vm1979_vm10, %v3529_v43, %v1976_v53 }
 0x602   :  { %v1985_v15 = vsel %vm1982_vm11, %v1984_v41, %v1980_v56 }
 0x607   :  { %v3533_v6 = vpop.eup %3532 }
 0x608   :  { %v4780_v11 = vmul.f32 %v3533_v6, %v1985_v15 }
 0x60a   :  { %v1993_v44 = vpack.c.bf16 %v4780_v11, %v4780_v11 }
 0x60c   :  { %2002 = vmatmul.bf16.vlgmr.msra.gmra.mxu0 %v1993_v44  ;;  %2015 = vmatmul.bf16.vlgmr.msrb.gmra.mxu1 %v1993_v44 }
 0x60d   :  { %2028 = vmatmul.bf16.vlgmr.msrb.gmra.mxu2 %v1993_v44  ;;  %2041 = vmatmul.bf16.vlgmr.msrb.gmra.mxu3 %v1993_v44  ;;  %v5129_v44 = vld [vmem:[#allocation17_spill] sm:$0xff] }
 0x60e   :  { %2234 = vmatpush.bf16.msra.mxu0 %v4279_v10  ;;  %2247 = vmatpush.bf16.msrb.mxu1 %v4375_v32  ;;  %v1309_v46 = vadd.f32 %v5129_v44, %v4599_v61 }
 0x60f   :  { %2260 = vmatpush.bf16.msrb.mxu2 %v4447_v28  ;;  %2273 = vmatpush.bf16.msrb.mxu3 %v4355_v60 }
 0x612   :  { %2235 = vmatpush.bf16.msra.mxu0 %v4283_v14  ;;  %2248 = vmatpush.bf16.msrb.mxu1 %v4388_v27 }
 0x613   :  { %2261 = vmatpush.bf16.msrb.mxu2 %v4454_v13  ;;  %2274 = vmatpush.bf16.msrb.mxu3 %v4365_v52 }
 0x616   :  { %2236 = vmatpush.bf16.msra.mxu0 %v4286_v16  ;;  %2249 = vmatpush.bf16.msrb.mxu1 %v4401_v40 }
 0x617   :  { %2262 = vmatpush.bf16.msrb.mxu2 %v4471_v21  ;;  %2275 = vmatpush.bf16.msrb.mxu3 %v4377_v8 }
 0x61a   :  { %2237 = vmatpush.bf16.msra.mxu0 %v4291_v22  ;;  %2250 = vmatpush.bf16.msrb.mxu1 %v4414_v42 }
 0x61b   :  { %2263 = vmatpush.bf16.msrb.mxu2 %v4475_v48  ;;  %2276 = vmatpush.bf16.msrb.mxu3 %v4390_v23 }
 0x61e   :  { %2238 = vmatpush.bf16.msra.mxu0 %v4295_v24  ;;  %2251 = vmatpush.bf16.msrb.mxu1 %v4425_v63 }
 0x61f   :  { %2264 = vmatpush.bf16.msrb.mxu2 %v4493_v47  ;;  %2277 = vmatpush.bf16.msrb.mxu3 %v4404_v49 }
 0x622   :  { %2239 = vmatpush.bf16.msra.mxu0 %v4299_v29  ;;  %2252 = vmatpush.bf16.msrb.mxu1 %v4431_v25 }
 0x623   :  { %2265 = vmatpush.bf16.msrb.mxu2 %v4501_v55  ;;  %2278 = vmatpush.bf16.msrb.mxu3 %v4416_v45 }
 0x626   :  { %2240 = vmatpush.bf16.msra.mxu0 %v4302_v34  ;;  %2253 = vmatpush.bf16.msrb.mxu1 %v4444_v20 }
 0x627   :  { %2266 = vmatpush.bf16.msrb.mxu2 %v4508_v58  ;;  %2279 = vmatpush.bf16.msrb.mxu3 %v4428_v26 }
 0x62a   :  { %2241 = vmatpush.bf16.msra.mxu0 %v4314_v38  ;;  %2254 = vmatpush.bf16.msrb.mxu1 %v4451_v36 }
 0x62b   :  { %2267 = vmatpush.bf16.msrb.mxu2 %v4515_v2  ;;  %2280 = vmatpush.bf16.msrb.mxu3 %v4434_v5 }
 0x689   :  { %v2003_v43 = vpop.f32.mrf.mxu0  ;;  %v2016_v3 = vpop.f32.mrf.mxu1 }
 0x68a   :  { %v2046_v33 = vadd.f32 %v2003_v43, %v1210_v12  ;;  %v2047_v57 = vadd.f32 %v2016_v3, %v5127_v31 }
 0x68c   :  { %v3220_v51 = vmul.f32 -1.442695, %v2046_v33  ;;  %v3221_v35 = vmul.f32 -1.442695, %v2047_v57 }
 0x68e   :  { %3534 = vpow2.f32 %v3220_v51 }
 0x68f   :  { %3536 = vpow2.f32 %v3221_v35 }
 0x690   :  { %v2029_v18 = vpop.f32.mrf.mxu2  ;;  %v2042_v1 = vpop.f32.mrf.mxu3 }
 0x691   :  { %v2048_v4 = vadd.f32 %v2029_v18, %v1276_v54  ;;  %v2005_v39 = vpop.f32.mrf.mxu0  ;;  %v2018_v7 = vpop.f32.mrf.mxu1  ;;  %v2049_v3 = vadd.f32 %v2042_v1, %v1309_v46 }
 0x693   :  { %v3222_v37 = vmul.f32 -1.442695, %v2048_v4 }
 0x694   :  { %v3535_v53 = vpop.eup %3534 }
 0x695   :  { %v3537_v62 = vpop.eup %3536  ;;  %v2059_v9 = vadd.f32 1.0, %v3535_v53  ;;  %3538 = vpow2.f32 %v3222_v37 }
 0x696   :  { %v2060_v56 = vadd.f32 1.0, %v3537_v62 }
 0x697   :  { %3540 = vrcp.f32 %v2059_v9  ;;  %v2073_v50 = vand.u32 2147483648, %v2059_v9  ;;  %v2071_v4 = vand.u32 2147483647, %v2059_v9  ;;  %vm2067_vm14 = vweird.f32 %v2059_v9 }
 0x698   :  { %3542 = vrcp.f32 %v2060_v56  ;;  %v2031_v41 = vpop.f32.mrf.mxu2  ;;  %v2044_v6 = vpop.f32.mrf.mxu3  ;;  %v2088_v54 = vand.u32 2147483648, %v2060_v56  ;;  %v2086_v7 = vand.u32 2147483647, %v2060_v56  ;;  %vm2082_vm15 = vweird.f32 %v2060_v56 }
 0x699   :  { %v2074_v62 = vor.u32 1.1754944e-38, %v2073_v50  ;;  %vm2072_vm2 = vcmp.eq.f32.partialorder %v2071_v4, 8.507059e+37 }
 0x69a   :  { %v2089_v6 = vor.u32 1.1754944e-38, %v2088_v54  ;;  %vm2087_vm3 = vcmp.eq.f32.partialorder %v2086_v7, 8.507059e+37 }
 0x69b   :  { %v3539_v15 = vpop.eup %3538 }
 0x69c   :  { %v2061_v12 = vadd.f32 1.0, %v3539_v15 }
 0x69d   :  { %v3541_v43 = vpop.eup %3540 }
 0x69e   :  { %v3543_v33 = vpop.eup %3542  ;;  %v2063_v31 = vmul.f32 %v3541_v43, %v2059_v9  ;;  %3544 = vrcp.f32 %v2061_v12  ;;  %vm2068_vm12 = vweird.f32 %v3541_v43  ;;  %v2103_v50 = vand.u32 2147483648, %v2061_v12 }
 0x69f   :  { %v2078_v57 = vmul.f32 %v3543_v33, %v2060_v56  ;;  %3546 = vtanh.f32 %v2049_v3  ;;  %vm2083_vm13 = vweird.f32 %v3543_v33  ;;  %vm2069_vm0 = vmor %vm2067_vm14, %vm2068_vm12  ;;  %vm2097_vm5 = vweird.f32 %v2061_v12 }
 0x6a0   :  { %v2064_v51 = vsub.f32 1.0, %v2063_v31  ;;  %vm2084_vm1 = vmor %vm2082_vm15, %vm2083_vm13  ;;  %v2104_v4 = vor.u32 1.1754944e-38, %v2103_v50 }
 0x6a1   :  { %v2079_v35 = vsub.f32 1.0, %v2078_v57 }
 0x6a2   :  { %v2065_v18 = vmul.f32 %v3541_v43, %v2064_v51 }
 0x6a3   :  { %v2080_v39 = vmul.f32 %v3543_v33, %v2079_v35 }
 0x6a4   :  { %v3545_v37 = vpop.eup %3544  ;;  %v2066_v53 = vadd.f32 %v3541_v43, %v2065_v18 }
 0x6a5   :  { %v2093_v1 = vmul.f32 %v3545_v37, %v2061_v12  ;;  %v2081_v41 = vadd.f32 %v3543_v33, %v2080_v39  ;;  %v3547_v44 = vpop.eup %3546  ;;  %vm2098_vm4 = vweird.f32 %v3545_v37 }
 0x6a6   :  { %v2070_v15 = vsel %vm2069_vm0, %v3541_v43, %v2066_v53  ;;  %v2101_v43 = vand.u32 2147483647, %v2061_v12  ;;  %vm2099_vm6 = vmor %vm2097_vm5, %vm2098_vm4  ;;  %v5131_v12 = vld [vmem:[#allocation21_spill] sm:$0xff] }
 0x6a7   :  { %v2094_v46 = vsub.f32 1.0, %v2093_v1  ;;  %v2075_v3 = vsel %vm2072_vm2, %v2074_v62, %v2070_v15  ;;  %v2085_v31 = vsel %vm2084_vm1, %v3543_v33, %v2081_v41  ;;  %v5132_v41 = vld [vmem:[#allocation35_spill] sm:$0xff] }
 0x6a8   :  { %v2090_v57 = vsel %vm2087_vm3, %v2089_v6, %v2085_v31  ;;  %v2109_v51 = vmul.f32 %v3547_v44, %v2075_v3  ;;  %vm2102_vm7 = vcmp.eq.f32.partialorder %v2101_v43, 8.507059e+37 }
 0x6a9   :  { %v2095_v35 = vmul.f32 %v3545_v37, %v2094_v46  ;;  %v2108_v18 = vmul.f32 %v2090_v57, %v4777_v0  ;;  %v5133_v46 = vld [vmem:[#allocation22_spill] sm:$0xff] }
 0x6aa   :  { %v1278_v3 = vadd.f32 %v5133_v46, %v4632_v30 }
 0x6ab   :  { %v4824_v9 = vadd.f32 %v2109_v51, %v2108_v18  ;;  %v2096_v56 = vadd.f32 %v3545_v37, %v2095_v35 }
 0x6ad   :  { %3548 = vtanh.f32 %v4824_v9  ;;  %v2100_v54 = vsel %vm2099_vm6, %v3545_v37, %v2096_v56  ;;  %v1212_v37 = vadd.f32 %v5131_v12, %v4550_v19  ;;  %v5134_v12 = vld [vmem:[#allocation20_spill] sm:$0xff] }
 0x6ae   :  { %v2105_v39 = vsel %vm2102_vm7, %v2104_v4, %v2100_v54 }
 0x6b3   :  { %v3549_v33 = vpop.eup %3548 }
 0x6b4   :  { %v4827_v7 = vmul.f32 %v3549_v33, %v2105_v39 }
 0x6b6   :  { %5130 = vst [vmem:[#allocation13_spill] sm:$0xff] %v4827_v7  ;;  %v2113_v0 = vpack.c.bf16 %v4827_v7, %v4827_v7 }
 0x6b8   :  { %2122 = vmatmul.bf16.vlgmr.msrb.gmra.mxu0 %v2113_v0  ;;  %2135 = vmatmul.bf16.vlgmr.msra.gmra.mxu1 %v2113_v0 }
 0x6b9   :  { %2148 = vmatmul.bf16.vlgmr.msra.gmra.mxu2 %v2113_v0  ;;  %2161 = vmatmul.bf16.vlgmr.msra.gmra.mxu3 %v2113_v0 }
 0x6ba   :  { %2354 = vmatpush.bf16.msrb.mxu0 %v4279_v10  ;;  %2367 = vmatpush.bf16.msra.mxu1 %v4375_v32 }
 0x6bb   :  { %2380 = vmatpush.bf16.msra.mxu2 %v4447_v28  ;;  %2393 = vmatpush.bf16.msra.mxu3 %v4355_v60 }
 0x6be   :  { %2355 = vmatpush.bf16.msrb.mxu0 %v4283_v14  ;;  %2368 = vmatpush.bf16.msra.mxu1 %v4388_v27 }
 0x6bf   :  { %2381 = vmatpush.bf16.msra.mxu2 %v4454_v13  ;;  %2394 = vmatpush.bf16.msra.mxu3 %v4365_v52 }
 0x6c2   :  { %2356 = vmatpush.bf16.msrb.mxu0 %v4286_v16  ;;  %2369 = vmatpush.bf16.msra.mxu1 %v4401_v40 }
 0x6c3   :  { %2382 = vmatpush.bf16.msra.mxu2 %v4471_v21  ;;  %2395 = vmatpush.bf16.msra.mxu3 %v4377_v8 }
 0x6c6   :  { %2357 = vmatpush.bf16.msrb.mxu0 %v4291_v22  ;;  %2370 = vmatpush.bf16.msra.mxu1 %v4414_v42 }
 0x6c7   :  { %2383 = vmatpush.bf16.msra.mxu2 %v4475_v48  ;;  %2396 = vmatpush.bf16.msra.mxu3 %v4390_v23 }
 0x6ca   :  { %2358 = vmatpush.bf16.msrb.mxu0 %v4295_v24  ;;  %2371 = vmatpush.bf16.msra.mxu1 %v4425_v63 }
 0x6cb   :  { %2384 = vmatpush.bf16.msra.mxu2 %v4493_v47  ;;  %2397 = vmatpush.bf16.msra.mxu3 %v4404_v49 }
 0x6ce   :  { %2359 = vmatpush.bf16.msrb.mxu0 %v4299_v29  ;;  %2372 = vmatpush.bf16.msra.mxu1 %v4431_v25 }
 0x6cf   :  { %2385 = vmatpush.bf16.msra.mxu2 %v4501_v55  ;;  %2398 = vmatpush.bf16.msra.mxu3 %v4416_v45 }
 0x6d2   :  { %2360 = vmatpush.bf16.msrb.mxu0 %v4302_v34  ;;  %2373 = vmatpush.bf16.msra.mxu1 %v4444_v20 }
 0x6d3   :  { %2386 = vmatpush.bf16.msra.mxu2 %v4508_v58  ;;  %2399 = vmatpush.bf16.msra.mxu3 %v4428_v26 }
 0x6d6   :  { %2361 = vmatpush.bf16.msrb.mxu0 %v4314_v38  ;;  %2374 = vmatpush.bf16.msra.mxu1 %v4451_v36 }
 0x6d7   :  { %2387 = vmatpush.bf16.msra.mxu2 %v4515_v2  ;;  %2400 = vmatpush.bf16.msra.mxu3 %v4434_v5 }
 0x735   :  { %v2123_v53 = vpop.f32.mrf.mxu0  ;;  %v2136_v1 = vpop.f32.mrf.mxu1 }
 0x736   :  { %v2166_v62 = vadd.f32 %v2123_v53, %v1212_v37  ;;  %v2167_v6 = vadd.f32 %v2136_v1, %v5132_v41  ;;  %v1311_v37 = vadd.f32 %v5134_v12, %v4599_v61 }
 0x738   :  { %v3223_v15 = vmul.f32 -1.442695, %v2166_v62  ;;  %v3224_v44 = vmul.f32 -1.442695, %v2167_v6 }
 0x73a   :  { %3550 = vpow2.f32 %v3223_v15 }
 0x73b   :  { %3552 = vpow2.f32 %v3224_v44 }
 0x73c   :  { %v2149_v31 = vpop.f32.mrf.mxu2  ;;  %v2162_v57 = vpop.f32.mrf.mxu3 }
 0x73d   :  { %v2168_v51 = vadd.f32 %v2149_v31, %v1278_v3  ;;  %v2125_v35 = vpop.f32.mrf.mxu0  ;;  %v2138_v18 = vpop.f32.mrf.mxu1  ;;  %v2169_v62 = vadd.f32 %v2162_v57, %v1311_v37 }
 0x73f   :  { %v3225_v56 = vmul.f32 -1.442695, %v2168_v51 }
 0x740   :  { %v3551_v50 = vpop.eup %3550 }
 0x741   :  { %v3553_v43 = vpop.eup %3552  ;;  %v2179_v54 = vadd.f32 1.0, %v3551_v50  ;;  %3554 = vpow2.f32 %v3225_v56 }
 0x742   :  { %v2180_v4 = vadd.f32 1.0, %v3553_v43 }
 0x743   :  { %3556 = vrcp.f32 %v2179_v54  ;;  %v2193_v3 = vand.u32 2147483648, %v2179_v54  ;;  %v2191_v35 = vand.u32 2147483647, %v2179_v54  ;;  %vm2187_vm10 = vweird.f32 %v2179_v54 }
 0x744   :  { %3558 = vrcp.f32 %v2180_v4  ;;  %v2151_v33 = vpop.f32.mrf.mxu2  ;;  %v2164_v39 = vpop.f32.mrf.mxu3  ;;  %v2208_v31 = vand.u32 2147483648, %v2180_v4  ;;  %v2206_v56 = vand.u32 2147483647, %v2180_v4  ;;  %vm2202_vm11 = vweird.f32 %v2180_v4 }
 0x745   :  { %v2194_v33 = vor.u32 1.1754944e-38, %v2193_v3  ;;  %vm2192_vm14 = vcmp.eq.f32.partialorder %v2191_v35, 8.507059e+37 }
 0x746   :  { %vm2207_vm15 = vcmp.eq.f32.partialorder %v2206_v56, 8.507059e+37 }
 0x747   :  { %v3555_v0 = vpop.eup %3554 }
 0x748   :  { %v2181_v53 = vadd.f32 1.0, %v3555_v0  ;;  %v2209_v0 = vor.u32 1.1754944e-38, %v2208_v31 }
 0x749   :  { %v3557_v1 = vpop.eup %3556 }
 0x74a   :  { %v3559_v41 = vpop.eup %3558  ;;  %v2183_v6 = vmul.f32 %v3557_v1, %v2179_v54  ;;  %3560 = vrcp.f32 %v2181_v53  ;;  %vm2188_vm8 = vweird.f32 %v3557_v1  ;;  %v2223_v3 = vand.u32 2147483648, %v2181_v53 }
 0x74b   :  { %v2198_v15 = vmul.f32 %v3559_v41, %v2180_v4  ;;  %3562 = vtanh.f32 %v2169_v62  ;;  %vm2203_vm9 = vweird.f32 %v3559_v41  ;;  %vm2189_vm12 = vmor %vm2187_vm10, %vm2188_vm8  ;;  %vm2217_vm1 = vweird.f32 %v2181_v53 }
 0x74c   :  { %v2184_v44 = vsub.f32 1.0, %v2183_v6  ;;  %vm2204_vm13 = vmor %vm2202_vm11, %vm2203_vm9  ;;  %v2224_v35 = vor.u32 1.1754944e-38, %v2223_v3 }
 0x74d   :  { %v2199_v46 = vsub.f32 1.0, %v2198_v15 }
 0x74e   :  { %v2185_v51 = vmul.f32 %v3557_v1, %v2184_v44 }
 0x74f   :  { %v2200_v18 = vmul.f32 %v3559_v41, %v2199_v46 }
 0x750   :  { %v3561_v50 = vpop.eup %3560  ;;  %v2186_v43 = vadd.f32 %v3557_v1, %v2185_v51 }
 0x751   :  { %v2213_v57 = vmul.f32 %v3561_v50, %v2181_v53  ;;  %v2201_v39 = vadd.f32 %v3559_v41, %v2200_v18  ;;  %v3563_v37 = vpop.eup %3562  ;;  %vm2218_vm0 = vweird.f32 %v3561_v50 }
 0x752   :  { %v2190_v12 = vsel %vm2189_vm12, %v3557_v1, %v2186_v43  ;;  %v2221_v1 = vand.u32 2147483647, %v2181_v53  ;;  %vm2219_vm2 = vmor %vm2217_vm1, %vm2218_vm0 }
 0x753   :  { %v2214_v62 = vsub.f32 1.0, %v2213_v57  ;;  %v2195_v6 = vsel %vm2192_vm14, %v2194_v33, %v2190_v12  ;;  %v2205_v15 = vsel %vm2204_vm13, %v3559_v41, %v2201_v39 }
 0x754   :  { %v2210_v44 = vsel %vm2207_vm15, %v2209_v0, %v2205_v15  ;;  %v2229_v46 = vmul.f32 %v3563_v37, %v2195_v6  ;;  %vm2222_vm3 = vcmp.eq.f32.partialorder %v2221_v1, 8.507059e+37 }
 0x755   :  { %v2215_v7 = vmul.f32 %v3561_v50, %v2214_v62  ;;  %v2228_v51 = vmul.f32 %v2210_v44, %v4824_v9 }
 0x757   :  { %v4871_v54 = vadd.f32 %v2229_v46, %v2228_v51  ;;  %v2216_v4 = vadd.f32 %v3561_v50, %v2215_v7 }
 0x759   :  { %3564 = vtanh.f32 %v4871_v54  ;;  %v2220_v31 = vsel %vm2219_vm2, %v3561_v50, %v2216_v4 }
 0x75a   :  { %v2225_v18 = vsel %vm2222_vm3, %v2224_v35, %v2220_v31 }
 0x75f   :  { %v3565_v41 = vpop.eup %3564 }
 0x760   :  { %v4874_v56 = vmul.f32 %v3565_v41, %v2225_v18 }
 0x762   :  { %v2233_v9 = vpack.c.bf16 %v4874_v56, %v4874_v56 }
 0x764   :  { %2242 = vmatmul.bf16.vlgmr.msra.gmra.mxu0 %v2233_v9  ;;  %2255 = vmatmul.bf16.vlgmr.msrb.gmra.mxu1 %v2233_v9 }
 0x765   :  { %2268 = vmatmul.bf16.vlgmr.msrb.gmra.mxu2 %v2233_v9  ;;  %2281 = vmatmul.bf16.vlgmr.msrb.gmra.mxu3 %v2233_v9 }
 0x766   :  { %2474 = vmatpush.bf16.msra.mxu0 %v4279_v10  ;;  %2487 = vmatpush.bf16.msrb.mxu1 %v4375_v32  ;;  %v5135_v10 = vld [vmem:[#allocation24_spill] sm:$0xff]  ;;  %v5137_v32 = vld [vmem:[#allocation25_spill] sm:$0xff] }
 0x767   :  { %2500 = vmatpush.bf16.msrb.mxu2 %v4447_v28  ;;  %2513 = vmatpush.bf16.msrb.mxu3 %v4355_v60 }
 0x76a   :  { %2475 = vmatpush.bf16.msra.mxu0 %v4283_v14  ;;  %2488 = vmatpush.bf16.msrb.mxu1 %v4388_v27  ;;  %v1215_v14 = vadd.f32 %v5135_v10, %v4550_v19 }
 0x76b   :  { %2501 = vmatpush.bf16.msrb.mxu2 %v4454_v13  ;;  %2514 = vmatpush.bf16.msrb.mxu3 %v4365_v52 }
 0x76e   :  { %2476 = vmatpush.bf16.msra.mxu0 %v4286_v16  ;;  %2489 = vmatpush.bf16.msrb.mxu1 %v4401_v40 }
 0x76f   :  { %2502 = vmatpush.bf16.msrb.mxu2 %v4471_v21  ;;  %2515 = vmatpush.bf16.msrb.mxu3 %v4377_v8 }
 0x772   :  { %2477 = vmatpush.bf16.msra.mxu0 %v4291_v22  ;;  %2490 = vmatpush.bf16.msrb.mxu1 %v4414_v42 }
 0x773   :  { %2503 = vmatpush.bf16.msrb.mxu2 %v4475_v48  ;;  %2516 = vmatpush.bf16.msrb.mxu3 %v4390_v23 }
 0x776   :  { %2478 = vmatpush.bf16.msra.mxu0 %v4295_v24  ;;  %2491 = vmatpush.bf16.msrb.mxu1 %v4425_v63 }
 0x777   :  { %2504 = vmatpush.bf16.msrb.mxu2 %v4493_v47  ;;  %2517 = vmatpush.bf16.msrb.mxu3 %v4404_v49 }
 0x77a   :  { %2479 = vmatpush.bf16.msra.mxu0 %v4299_v29  ;;  %2492 = vmatpush.bf16.msrb.mxu1 %v4431_v25  ;;  %v5136_v29 = vld [vmem:[#allocation36_spill] sm:$0xff] }
 0x77b   :  { %2505 = vmatpush.bf16.msrb.mxu2 %v4501_v55  ;;  %2518 = vmatpush.bf16.msrb.mxu3 %v4416_v45 }
 0x77e   :  { %2480 = vmatpush.bf16.msra.mxu0 %v4302_v34  ;;  %2493 = vmatpush.bf16.msrb.mxu1 %v4444_v20 }
 0x77f   :  { %2506 = vmatpush.bf16.msrb.mxu2 %v4508_v58  ;;  %2519 = vmatpush.bf16.msrb.mxu3 %v4428_v26 }
 0x782   :  { %2481 = vmatpush.bf16.msra.mxu0 %v4314_v38  ;;  %2494 = vmatpush.bf16.msrb.mxu1 %v4451_v36  ;;  %v1281_v38 = vadd.f32 %v5137_v32, %v4632_v30  ;;  %v5138_v36 = vld [vmem:[#allocation23_spill] sm:$0xff]  ;;  %v3410_v32 = vld [vmem:[#allocation9 + $0x74] sm:$0xf0] }
 0x783   :  { %2507 = vmatpush.bf16.msrb.mxu2 %v4515_v2  ;;  %2520 = vmatpush.bf16.msrb.mxu3 %v4434_v5  ;;  %v1314_v13 = vadd.f32 %v5138_v36, %v4599_v61 }
 0x7e1   :  { %v2243_v16 = vpop.f32.mrf.mxu0  ;;  %v2256_v22 = vpop.f32.mrf.mxu1 }
 0x7e2   :  { %v2286_v24 = vadd.f32 %v2243_v16, %v1215_v14  ;;  %v2287_v34 = vadd.f32 %v2256_v22, %v5136_v29 }
 0x7e4   :  { %v3226_v60 = vmul.f32 -1.442695, %v2286_v24  ;;  %v3227_v52 = vmul.f32 -1.442695, %v2287_v34 }
 0x7e6   :  { %3566 = vpow2.f32 %v3226_v60 }
 0x7e7   :  { %3568 = vpow2.f32 %v3227_v52  ;;  %v3293_v52 = vld [vmem:[#allocation9 + $0x70] sm:$0xf] }
 0x7e8   :  { %v2269_v8 = vpop.f32.mrf.mxu2  ;;  %v2282_v27 = vpop.f32.mrf.mxu3 }
 0x7e9   :  { %v2288_v23 = vadd.f32 %v2269_v8, %v1281_v38  ;;  %v2245_v40 = vpop.f32.mrf.mxu0  ;;  %v2258_v49 = vpop.f32.mrf.mxu1  ;;  %v2289_v47 = vadd.f32 %v2282_v27, %v1314_v13  ;;  %v3409_v38 = vld [vmem:[#allocation9 + $0x74] sm:$0xf] }
 0x7ea   :  { %v5139_v8 = vld [vmem:[#allocation27_spill] sm:$0xff]  ;;  %v3295_v40 = vld [vmem:[#allocation9 + $0x78] sm:$0xf0] }
 0x7eb   :  { %v3228_v42 = vmul.f32 -1.442695, %v2288_v23  ;;  %v1217_v27 = vadd.f32 %v5139_v8, %v4550_v19  ;;  %v3294_v23 = vor.u32 %v3410_v32, %v3293_v52  ;;  %v5142_v32 = vld [vmem:[#allocation26_spill] sm:$0xff] }
 0x7ec   :  { %v3567_v45 = vpop.eup %3566 }
 0x7ed   :  { %v3569_v63 = vpop.eup %3568  ;;  %v2299_v26 = vadd.f32 1.0, %v3567_v45  ;;  %3570 = vpow2.f32 %v3228_v42  ;;  %v3298_v45 = vor.u32 %v3409_v38, %v3295_v40  ;;  %v1316_v38 = vadd.f32 %v5142_v32, %v4599_v61 }
 0x7ee   :  { %v2300_v25 = vadd.f32 1.0, %v3569_v63 }
 0x7ef   :  { %3572 = vrcp.f32 %v2299_v26  ;;  %v2313_v50 = vand.u32 2147483648, %v2299_v26  ;;  %v2311_v33 = vand.u32 2147483647, %v2299_v26  ;;  %vm2307_vm6 = vweird.f32 %v2299_v26 }
 0x7f0   :  { %3574 = vrcp.f32 %v2300_v25  ;;  %v2271_v5 = vpop.f32.mrf.mxu2  ;;  %v2284_v20 = vpop.f32.mrf.mxu3  ;;  %v2328_v43 = vand.u32 2147483648, %v2300_v25  ;;  %v2326_v0 = vand.u32 2147483647, %v2300_v25  ;;  %vm2322_vm7 = vweird.f32 %v2300_v25 }
 0x7f1   :  { %v2314_v6 = vor.u32 1.1754944e-38, %v2313_v50  ;;  %vm2312_vm10 = vcmp.eq.f32.partialorder %v2311_v33, 8.507059e+37  ;;  %v3285_v5 = vld [vmem:[#allocation9 + $0x60] sm:$0xf]  ;;  %v3408_v20 = vld [vmem:[#allocation9 + $0x64] sm:$0xf0] }
 0x7f2   :  { %v2329_v44 = vor.u32 1.1754944e-38, %v2328_v43  ;;  %vm2327_vm11 = vcmp.eq.f32.partialorder %v2326_v0, 8.507059e+37  ;;  %v5141_v50 = vld [vmem:[#allocation28_spill] sm:$0xff]  ;;  %v3269_v33 = vld [vmem:[#allocation9 + $0x40] sm:$0xf] }
 0x7f3   :  { %v3571_v28 = vpop.eup %3570  ;;  %v1283_v43 = vadd.f32 %v5141_v50, %v4632_v30 }
 0x7f4   :  { %v2301_v21 = vadd.f32 1.0, %v3571_v28  ;;  %v3407_v28 = vld [vmem:[#allocation9 + $0x64] sm:$0xf] }
 0x7f5   :  { %v3573_v48 = vpop.eup %3572 }
 0x7f6   :  { %v3575_v55 = vpop.eup %3574  ;;  %v2303_v58 = vmul.f32 %v3573_v48, %v2299_v26  ;;  %3576 = vrcp.f32 %v2301_v21  ;;  %vm2308_vm4 = vweird.f32 %v3573_v48  ;;  %v2343_v14 = vand.u32 2147483648, %v2301_v21  ;;  %v5140_v26 = vld [vmem:[#allocation37_spill] sm:$0xff] }
 0x7f7   :  { %v2318_v2 = vmul.f32 %v3575_v55, %v2300_v25  ;;  %3578 = vtanh.f32 %v2289_v47  ;;  %vm2323_vm5 = vweird.f32 %v3575_v55  ;;  %vm2309_vm8 = vmor %vm2307_vm6, %vm2308_vm4  ;;  %vm2337_vm13 = vweird.f32 %v2301_v21 }
 0x7f8   :  { %v2304_v7 = vsub.f32 1.0, %v2303_v58  ;;  %vm2324_vm9 = vmor %vm2322_vm7, %vm2323_vm5  ;;  %v2341_v16 = vand.u32 2147483647, %v2301_v21  ;;  %v2344_v24 = vor.u32 1.1754944e-38, %v2343_v14  ;;  %v3406_v58 = vld [vmem:[#allocation9 + $0x54] sm:$0xf0] }
 0x7f9   :  { %v2319_v53 = vsub.f32 1.0, %v2318_v2  ;;  %v3405_v2 = vld [vmem:[#allocation9 + $0x54] sm:$0xf]  ;;  %v3402_v14 = vld [vmem:[#allocation9 + $0x34] sm:$0xf0] }
 0x7fa   :  { %v2305_v57 = vmul.f32 %v3573_v48, %v2304_v7  ;;  %vm2342_vm15 = vcmp.eq.f32.partialorder %v2341_v16, 8.507059e+37 }
 0x7fb   :  { %v2320_v39 = vmul.f32 %v3575_v55, %v2319_v53  ;;  %v3279_v53 = vld [vmem:[#allocation9 + $0x58] sm:$0xf0] }
 0x7fc   :  { %v3577_v12 = vpop.eup %3576  ;;  %v2306_v37 = vadd.f32 %v3573_v48, %v2305_v57  ;;  %v3282_v57 = vor.u32 %v3405_v2, %v3279_v53  ;;  %v3239_v53 = vld [vmem:[#allocation9 + $0x8] sm:$0xf0] }
 0x7fd   :  { %v2333_v62 = vmul.f32 %v3577_v12, %v2301_v21  ;;  %v2321_v15 = vadd.f32 %v3575_v55, %v2320_v39  ;;  %v3579_v51 = vpop.eup %3578  ;;  %vm2338_vm12 = vweird.f32 %v3577_v12  ;;  %v3286_v21 = vor.u32 %v3408_v20, %v3285_v5  ;;  %v3404_v39 = vld [vmem:[#allocation9 + $0x44] sm:$0xf0]  ;;  %v3247_v5 = vld [vmem:[#allocation9 + $0x18] sm:$0xf0] }
 0x7fe   :  { %v2310_v46 = vsel %vm2309_vm8, %v3573_v48, %v2306_v37  ;;  %vm2339_vm14 = vmor %vm2337_vm13, %vm2338_vm12  ;;  %v3287_v48 = vld [vmem:[#allocation9 + $0x68] sm:$0xf0]  ;;  %v3403_v37 = vld [vmem:[#allocation9 + $0x44] sm:$0xf] }
 0x7ff   :  { %v2334_v4 = vsub.f32 1.0, %v2333_v62  ;;  %v2315_v3 = vsel %vm2312_vm10, %v2314_v6, %v2310_v46  ;;  %v2325_v1 = vsel %vm2324_vm9, %v3575_v55, %v2321_v15  ;;  %v3290_v47 = vor.u32 %v3407_v28, %v3287_v48  ;;  %v3277_v55 = vld [vmem:[#allocation9 + $0x50] sm:$0xf]  ;;  %v3271_v62 = vld [vmem:[#allocation9 + $0x48] sm:$0xf0] }
 0x800   :  { %v2330_v31 = vsel %vm2327_vm11, %v2329_v44, %v2325_v1  ;;  %v2349_v35 = vmul.f32 %v3579_v51, %v2315_v3  ;;  %v3278_v7 = vor.u32 %v3406_v58, %v3277_v55  ;;  %v3270_v46 = vor.u32 %v3404_v39, %v3269_v33  ;;  %v3396_v55 = vld [vmem:[#allocation9 + $0x4] sm:$0xf0] }
 0x801   :  { %v2335_v41 = vmul.f32 %v3577_v12, %v2334_v4  ;;  %v2348_v18 = vmul.f32 %v2330_v31, %v4871_v54  ;;  %v3274_v4 = vor.u32 %v3403_v37, %v3271_v62 }
 0x803   :  { %v4918_v9 = vadd.f32 %v2349_v35, %v2348_v18  ;;  %v2336_v10 = vadd.f32 %v3577_v12, %v2335_v41  ;;  %v3261_v41 = vld [vmem:[#allocation9 + $0x30] sm:$0xf] }
 0x804   :  { %v3262_v16 = vor.u32 %v3402_v14, %v3261_v41 }
 0x805   :  { %3580 = vtanh.f32 %v4918_v9  ;;  %v2340_v22 = vsel %vm2339_vm14, %v3577_v12, %v2336_v10 }
 0x806   :  { %v2345_v34 = vsel %vm2342_vm15, %v2344_v24, %v2340_v22  ;;  %v3401_v22 = vld [vmem:[#allocation9 + $0x34] sm:$0xf]  ;;  %v3263_v24 = vld [vmem:[#allocation9 + $0x38] sm:$0xf0] }
 0x80b   :  { %v3581_v29 = vpop.eup %3580 }
 0x80c   :  { %v4921_v60 = vmul.f32 %v3581_v29, %v2345_v34  ;;  %v3266_v29 = vor.u32 %v3401_v22, %v3263_v24  ;;  %v3253_v34 = vld [vmem:[#allocation9 + $0x20] sm:$0xf] }
 0x80e   :  { %v2353_v54 = vpack.c.bf16 %v4921_v60, %v4921_v60 }
 0x810   :  { %2362 = vmatmul.bf16.vlgmr.msrb.gmra.mxu0 %v2353_v54  ;;  %2375 = vmatmul.bf16.vlgmr.msra.gmra.mxu1 %v2353_v54 }
 0x811   :  { %2388 = vmatmul.bf16.vlgmr.msra.gmra.mxu2 %v2353_v54  ;;  %2401 = vmatmul.bf16.vlgmr.msra.gmra.mxu3 %v2353_v54  ;;  %v3400_v54 = vld [vmem:[#allocation9 + $0x24] sm:$0xf0] }
 0x812   :  { %2700 = vmatpush.bf16.msrb.mxu0 %v3294_v23  ;;  %2733 = vmatpush.bf16.msra.mxu1 %v3298_v45  ;;  %v3254_v8 = vor.u32 %v3400_v54, %v3253_v34  ;;  %v3255_v23 = vld [vmem:[#allocation9 + $0x28] sm:$0xf0]  ;;  %v3398_v45 = vld [vmem:[#allocation9 + $0x14] sm:$0xf0] }
 0x816   :  { %2701 = vmatpush.bf16.msrb.mxu0 %v3286_v21  ;;  %2734 = vmatpush.bf16.msra.mxu1 %v3290_v47  ;;  %v3237_v47 = vld [vmem:[#allocation9] sm:$0xf] }
 0x81a   :  { %2702 = vmatpush.bf16.msrb.mxu0 %v3278_v7  ;;  %2735 = vmatpush.bf16.msra.mxu1 %v3282_v57  ;;  %v3395_v7 = vld [vmem:[#allocation9 + $0x4] sm:$0xf] }
 0x81b   :  { %v3242_v62 = vor.u32 %v3395_v7, %v3239_v53 }
 0x81e   :  { %2703 = vmatpush.bf16.msrb.mxu0 %v3270_v46  ;;  %2736 = vmatpush.bf16.msra.mxu1 %v3274_v4 }
 0x822   :  { %2704 = vmatpush.bf16.msrb.mxu0 %v3262_v16  ;;  %2737 = vmatpush.bf16.msra.mxu1 %v3266_v29 }
 0x826   :  { %2705 = vmatpush.bf16.msrb.mxu0 %v3254_v8 }
 0x88d   :  { %v2363_v49 = vpop.f32.mrf.mxu0  ;;  %v2376_v42 = vpop.f32.mrf.mxu1 }
 0x88e   :  { %v2406_v63 = vadd.f32 %v2363_v49, %v1217_v27  ;;  %v2407_v25 = vadd.f32 %v2376_v42, %v5140_v26  ;;  %v3399_v27 = vld [vmem:[#allocation9 + $0x24] sm:$0xf]  ;;  %v3245_v42 = vld [vmem:[#allocation9 + $0x10] sm:$0xf] }
 0x88f   :  { %v3258_v49 = vor.u32 %v3399_v27, %v3255_v23  ;;  %v2610_v27 = vpack.c.bf16 %v4780_v11, %v4732_v17  ;;  %v5144_v23 = vld [vmem:[#allocation13_spill] sm:$0xff] }
 0x890   :  { %v3229_v36 = vmul.f32 -1.442695, %v2406_v63  ;;  %v3230_v13 = vmul.f32 -1.442695, %v2407_v25  ;;  %v3397_v25 = vld [vmem:[#allocation9 + $0x14] sm:$0xf] }
 0x891   :  { %2738 = vmatpush.bf16.msra.mxu1 %v3258_v49  ;;  %v3250_v48 = vor.u32 %v3397_v25, %v3247_v5  ;;  %v5146_v25 = vld [vmem:[#allocation38_spill] sm:$0xff] }
 0x892   :  { %3582 = vpow2.f32 %v3229_v36 }
 0x893   :  { %3584 = vpow2.f32 %v3230_v13  ;;  %v3246_v13 = vor.u32 %v3398_v45, %v3245_v42  ;;  %v5145_v42 = vld [vmem:[#allocation30_spill] sm:$0xff] }
 0x894   :  { %v2389_v0 = vpop.f32.mrf.mxu2  ;;  %v2402_v12 = vpop.f32.mrf.mxu3  ;;  %v1220_v45 = vadd.f32 %v5145_v42, %v4550_v19  ;;  %v2614_v19 = vld [vmem:[%s5074_s16] sm:$0x3] }
 0x895   :  { %v2408_v6 = vadd.f32 %v2389_v0, %v1283_v43  ;;  %v2365_v15 = vpop.f32.mrf.mxu0  ;;  %v2378_v44 = vpop.f32.mrf.mxu1  ;;  %v2409_v26 = vadd.f32 %v2402_v12, %v1316_v38  ;;  %2706 = vmatpush.bf16.msrb.mxu0 %v3246_v13  ;;  %v3238_v0 = vor.u32 %v3396_v55, %v3237_v47  ;;  %2739 = vmatpush.bf16.msra.mxu1 %v3250_v48  ;;  %v5143_v38 = vld [vmem:[#allocation39_spill] sm:$0xff]  ;;  %v4972_v7 = vperm.slane %v2614_v19, 0 }
 0x896   :  { %v2609_v8 = vpack.c.bf16 %v4685_v59, %v5143_v38  ;;  %v4974_v53 = vperm.slane %v2614_v19, 1 }
 0x897   :  { %v3231_v51 = vmul.f32 -1.442695, %v2408_v6 }
 0x898   :  { %v3583_v3 = vpop.eup %3582 }
 0x899   :  { %v3585_v1 = vpop.eup %3584  ;;  %v4930_v31 = vadd.f32 1.0, %v3583_v3  ;;  %3586 = vpow2.f32 %v3231_v51  ;;  %2707 = vmatpush.bf16.msrb.mxu0 %v3238_v0  ;;  %2740 = vmatpush.bf16.msra.mxu1 %v3242_v62 }
 0x89a   :  { %v4932_v35 = vadd.f32 1.0, %v3585_v1 }
 0x89b   :  { %3588 = vrcp.f32 %v4930_v31  ;;  %v2433_v2 = vand.u32 2147483648, %v4930_v31  ;;  %v2431_v57 = vand.u32 2147483647, %v4930_v31  ;;  %vm2427_vm2 = vweird.f32 %v4930_v31 }
 0x89c   :  { %3590 = vrcp.f32 %v4932_v35  ;;  %v2391_v18 = vpop.f32.mrf.mxu2  ;;  %v2404_v10 = vpop.f32.mrf.mxu3  ;;  %v2448_v50 = vand.u32 2147483648, %v4932_v35  ;;  %v2446_v39 = vand.u32 2147483647, %v4932_v35  ;;  %vm2442_vm3 = vweird.f32 %v4932_v35 }
 0x89d   :  { %v2434_v15 = vor.u32 1.1754944e-38, %v2433_v2  ;;  %vm2432_vm6 = vcmp.eq.f32.partialorder %v2431_v57, 8.507059e+37 }
 0x89e   :  { %v2449_v46 = vor.u32 1.1754944e-38, %v2448_v50  ;;  %vm2447_vm7 = vcmp.eq.f32.partialorder %v2446_v39, 8.507059e+37 }
 0x89f   :  { %v3587_v52 = vpop.eup %3586 }
 0x8a0   :  { %v4938_v40 = vadd.f32 1.0, %v3587_v52 }
 0x8a1   :  { %v3589_v63 = vpop.eup %3588 }
 0x8a2   :  { %v3591_v20 = vpop.eup %3590  ;;  %v2423_v28 = vmul.f32 %v3589_v63, %v4930_v31  ;;  %3592 = vrcp.f32 %v4938_v40  ;;  %vm2428_vm0 = vweird.f32 %v3589_v63  ;;  %v2463_v22 = vand.u32 2147483648, %v4938_v40 }
 0x8a3   :  { %v2438_v36 = vmul.f32 %v3591_v20, %v4932_v35  ;;  %3594 = vtanh.f32 %v2409_v26  ;;  %vm2443_vm1 = vweird.f32 %v3591_v20  ;;  %vm2429_vm4 = vmor %vm2427_vm2, %vm2428_vm0  ;;  %vm2457_vm9 = vweird.f32 %v4938_v40 }
 0x8a4   :  { %v2424_v21 = vsub.f32 1.0, %v2423_v28  ;;  %vm2444_vm5 = vmor %vm2442_vm3, %vm2443_vm1  ;;  %v2461_v24 = vand.u32 2147483647, %v4938_v40  ;;  %v2464_v34 = vor.u32 1.1754944e-38, %v2463_v22 }
 0x8a5   :  { %v2439_v58 = vsub.f32 1.0, %v2438_v36 }
 0x8a6   :  { %v2425_v43 = vmul.f32 %v3589_v63, %v2424_v21  ;;  %vm2462_vm11 = vcmp.eq.f32.partialorder %v2461_v24, 8.507059e+37 }
 0x8a7   :  { %v2440_v33 = vmul.f32 %v3591_v20, %v2439_v58 }
 0x8a8   :  { %v3593_v12 = vpop.eup %3592  ;;  %v2426_v37 = vadd.f32 %v3589_v63, %v2425_v43 }
 0x8a9   :  { %v2453_v6 = vmul.f32 %v3593_v12, %v4938_v40  ;;  %v2441_v44 = vadd.f32 %v3591_v20, %v2440_v33  ;;  %v3595_v4 = vpop.eup %3594  ;;  %vm2458_vm8 = vweird.f32 %v3593_v12  ;;  %v2611_v40 = vpack.c.bf16 %v4874_v56, %v5144_v23  ;;  %v5148_v33 = vld [vmem:[#allocation29_spill] sm:$0xff] }
 0x8aa   :  { %v2430_v51 = vsel %vm2429_vm4, %v3589_v63, %v2426_v37  ;;  %vm2459_vm10 = vmor %vm2457_vm9, %vm2458_vm8  ;;  %v1319_v39 = vadd.f32 %v5148_v33, %v4599_v61 }
 0x8ab   :  { %v2454_v3 = vsub.f32 1.0, %v2453_v6  ;;  %v2435_v1 = vsel %vm2432_vm6, %v2434_v15, %v2430_v51  ;;  %v2445_v41 = vsel %vm2444_vm5, %v3591_v20, %v2441_v44  ;;  %v5147_v20 = vld [vmem:[#allocation31_spill] sm:$0xff] }
 0x8ac   :  { %v2450_v31 = vsel %vm2447_vm7, %v2449_v46, %v2445_v41  ;;  %v2469_v18 = vmul.f32 %v3595_v4, %v2435_v1  ;;  %v1286_v56 = vadd.f32 %v5147_v20, %v4632_v30 }
 0x8ad   :  { %v2455_v10 = vmul.f32 %v3593_v12, %v2454_v3  ;;  %v2468_v35 = vmul.f32 %v2450_v31, %v4918_v9 }
 0x8af   :  { %v4951_v14 = vadd.f32 %v2469_v18, %v2468_v35  ;;  %v2456_v16 = vadd.f32 %v3593_v12, %v2455_v10 }
 0x8b1   :  { %3596 = vtanh.f32 %v4951_v14  ;;  %v2460_v29 = vsel %vm2459_vm10, %v3593_v12, %v2456_v16 }
 0x8b2   :  { %v2465_v52 = vsel %vm2462_vm11, %v2464_v34, %v2460_v29 }
 0x8b7   :  { %v3597_v54 = vpop.eup %3596 }
 0x8b8   :  { %v2472_v32 = vmul.f32 %v3597_v54, %v2465_v52 }
 0x8ba   :  { %v2473_v9 = vpack.c.bf16 %v2472_v32, %v2472_v32  ;;  %v2612_v49 = vpack.c.bf16 %v2472_v32, %v4921_v60 }
 0x8bc   :  { %2482 = vmatmul.bf16.vlgmr.msra.gmra.mxu0 %v2473_v9  ;;  %2495 = vmatmul.bf16.vlgmr.msrb.gmra.mxu1 %v2473_v9 }
 0x8bd   :  { %2508 = vmatmul.bf16.vlgmr.msrb.gmra.mxu2 %v2473_v9  ;;  %2521 = vmatmul.bf16.vlgmr.msrb.gmra.mxu3 %v2473_v9 }
 0x8cc   :  { %2708 = vmatmul.bf16.vlgmr.msrb.gmra.mxu0 %v2609_v8  ;;  %2741 = vmatmul.bf16.vlgmr.msra.gmra.mxu1 %v2609_v8 }
 0x8dc   :  { %2713 = vmatmul.bf16.gmra.mxu0 %v2610_v27  ;;  %2746 = vmatmul.bf16.gmra.mxu1 %v2610_v27 }
 0x8ec   :  { %2718 = vmatmul.bf16.gmra.mxu0 %v2611_v40  ;;  %2751 = vmatmul.bf16.gmra.mxu1 %v2611_v40 }
 0x8fc   :  { %2723 = vmatmul.bf16.gmra.mxu0 %v2612_v49  ;;  %2756 = vmatmul.bf16.gmra.mxu1 %v2612_v49 }
 0x939   :  { %v2483_v59 = vpop.f32.mrf.mxu0  ;;  %v2496_v63 = vpop.f32.mrf.mxu1 }
 0x93a   :  { %v2526_v26 = vadd.f32 %v2483_v59, %v1220_v45  ;;  %v2527_v5 = vadd.f32 %v2496_v63, %v5146_v25 }
 0x93c   :  { %v3232_v17 = vmul.f32 -1.442695, %v2526_v26  ;;  %v3233_v11 = vmul.f32 -1.442695, %v2527_v5 }
 0x93e   :  { %3598 = vpow2.f32 %v3232_v17 }
 0x93f   :  { %3600 = vpow2.f32 %v3233_v11 }
 0x940   :  { %v2509_v28 = vpop.f32.mrf.mxu2  ;;  %v2522_v36 = vpop.f32.mrf.mxu3 }
 0x941   :  { %v2528_v60 = vadd.f32 %v2509_v28, %v1286_v56  ;;  %v2485_v13 = vpop.f32.mrf.mxu0  ;;  %v2498_v21 = vpop.f32.mrf.mxu1  ;;  %v2529_v6 = vadd.f32 %v2522_v36, %v1319_v39 }
 0x943   :  { %v3234_v48 = vmul.f32 -1.442695, %v2528_v60 }
 0x944   :  { %v3599_v47 = vpop.eup %3598 }
 0x945   :  { %v3601_v55 = vpop.eup %3600  ;;  %v2539_v58 = vadd.f32 1.0, %v3599_v47  ;;  %3602 = vpow2.f32 %v3234_v48 }
 0x946   :  { %v2540_v2 = vadd.f32 1.0, %v3601_v55 }
 0x947   :  { %3604 = vrcp.f32 %v2539_v58  ;;  %v2551_v1 = vand.u32 2147483647, %v2539_v58  ;;  %v2553_v41 = vand.u32 2147483648, %v2539_v58  ;;  %vm2547_vm14 = vweird.f32 %v2539_v58 }
 0x948   :  { %3606 = vrcp.f32 %v2540_v2  ;;  %v2511_v30 = vpop.f32.mrf.mxu2  ;;  %v2524_v50 = vpop.f32.mrf.mxu3  ;;  %v2568_v3 = vand.u32 2147483648, %v2540_v2  ;;  %v2566_v24 = vand.u32 2147483647, %v2540_v2  ;;  %vm2562_vm15 = vweird.f32 %v2540_v2 }
 0x949   :  { %v2709_v43 = vpop.f32.mrf.mxu0  ;;  %v2742_v57 = vpop.f32.mrf.mxu1  ;;  %v2554_v52 = vor.u32 1.1754944e-38, %v2553_v41  ;;  %vm2552_vm2 = vcmp.eq.f32.partialorder %v2551_v1, 8.507059e+37 }
 0x94a   :  { %v2710_v0 = vadd.f32 %v2709_v43, %v4972_v7  ;;  %v2743_v12 = vadd.f32 %v2742_v57, %v4974_v53  ;;  %v2569_v38 = vor.u32 1.1754944e-38, %v2568_v3  ;;  %vm2567_vm3 = vcmp.eq.f32.partialorder %v2566_v24, 8.507059e+37 }
 0x94b   :  { %v3603_v37 = vpop.eup %3602 }
 0x94c   :  { %v4980_v62 = vadd.f32 1.0, %v3603_v37  ;;  %2766 = vst [vmem:[%s5075_s17] sm:$0xff] %v2710_v0 }
 0x94d   :  { %v3605_v15 = vpop.eup %3604  ;;  %2767 = vst [vmem:[%s5075_s17 + $0x8] sm:$0xff] %v2743_v12 }
 0x94e   :  { %v3607_v44 = vpop.eup %3606  ;;  %v2543_v46 = vmul.f32 %v3605_v15, %v2539_v58  ;;  %3608 = vrcp.f32 %v4980_v62  ;;  %vm2548_vm12 = vweird.f32 %v3605_v15  ;;  %vm2577_vm5 = vweird.f32 %v4980_v62 }
 0x94f   :  { %v2558_v61 = vmul.f32 %v3607_v44, %v2540_v2  ;;  %3610 = vtanh.f32 %v2529_v6  ;;  %vm2563_vm13 = vweird.f32 %v3607_v44  ;;  %vm2549_vm0 = vmor %vm2547_vm14, %vm2548_vm12  ;;  %v2581_v20 = vand.u32 2147483647, %v4980_v62 }
 0x950   :  { %v2544_v51 = vsub.f32 1.0, %v2543_v46  ;;  %vm2564_vm1 = vmor %vm2562_vm15, %vm2563_vm13 }
 0x951   :  { %v2559_v4 = vsub.f32 1.0, %v2558_v61  ;;  %v2711_v31 = vpop.f32.mrf.mxu0  ;;  %v2744_v18 = vpop.f32.mrf.mxu1  ;;  %vm2582_vm7 = vcmp.eq.f32.partialorder %v2581_v20, 8.507059e+37 }
 0x952   :  { %v2545_v10 = vmul.f32 %v3605_v15, %v2544_v51  ;;  %v2712_v35 = vadd.f32 %v2711_v31, %v4972_v7  ;;  %v2745_v16 = vadd.f32 %v2744_v18, %v4974_v53 }
 0x953   :  { %v2560_v22 = vmul.f32 %v3607_v44, %v2559_v4 }
 0x954   :  { %v3609_v29 = vpop.eup %3608  ;;  %v2546_v34 = vadd.f32 %v3605_v15, %v2545_v10  ;;  %2768 = vst [vmem:[%s5075_s17 + $0x10] sm:$0xff] %v2712_v35 }
 0x955   :  { %v2573_v54 = vmul.f32 %v3609_v29, %v4980_v62  ;;  %v2561_v32 = vadd.f32 %v3607_v44, %v2560_v22  ;;  %2769 = vst [vmem:[%s5075_s17 + $0x18] sm:$0xff] %v2745_v16  ;;  %v3611_v9 = vpop.eup %3610  ;;  %vm2578_vm4 = vweird.f32 %v3609_v29 }
 0x956   :  { %v2550_v8 = vsel %vm2549_vm0, %v3605_v15, %v2546_v34  ;;  %vm2579_vm6 = vmor %vm2577_vm5, %vm2578_vm4 }
 0x957   :  { %v2555_v27 = vsel %vm2552_vm2, %v2554_v52, %v2550_v8  ;;  %v2565_v23 = vsel %vm2564_vm1, %v3607_v44, %v2561_v32  ;;  %v2574_v40 = vsub.f32 1.0, %v2573_v54 }
 0x958   :  { %v2570_v49 = vsel %vm2567_vm3, %v2569_v38, %v2565_v23  ;;  %v2589_v42 = vmul.f32 %v3611_v9, %v2555_v27 }
 0x959   :  { %v2588_v45 = vmul.f32 %v2570_v49, %v4951_v14  ;;  %v2714_v59 = vpop.f32.mrf.mxu0  ;;  %v2747_v63 = vpop.f32.mrf.mxu1  ;;  %v2575_v26 = vmul.f32 %v3609_v29, %v2574_v40  ;;  %v2583_v14 = vand.u32 2147483648, %v4980_v62 }
 0x95a   :  { %v2715_v25 = vadd.f32 %v2714_v59, %v4972_v7  ;;  %v2748_v5 = vadd.f32 %v2747_v63, %v4974_v53 }
 0x95b   :  { %v2590_v17 = vadd.f32 %v2589_v42, %v2588_v45  ;;  %v2576_v11 = vadd.f32 %v3609_v29, %v2575_v26  ;;  %v2584_v60 = vor.u32 1.1754944e-38, %v2583_v14 }
 0x95c   :  { %2770 = vst [vmem:[%s5075_s17 + $0x20] sm:$0xff] %v2715_v25 }
 0x95d   :  { %3612 = vtanh.f32 %v2590_v17  ;;  %2771 = vst [vmem:[%s5075_s17 + $0x28] sm:$0xff] %v2748_v5  ;;  %v2580_v56 = vsel %vm2579_vm6, %v3609_v29, %v2576_v11 }
 0x95e   :  { %v2585_v19 = vsel %vm2582_vm7, %v2584_v60, %v2580_v56 }
 0x961   :  { %v2716_v28 = vpop.f32.mrf.mxu0  ;;  %v2749_v36 = vpop.f32.mrf.mxu1 }
 0x962   :  { %v2717_v13 = vadd.f32 %v2716_v28, %v4972_v7  ;;  %v2750_v21 = vadd.f32 %v2749_v36, %v4974_v53 }
 0x963   :  { %v3613_v48 = vpop.eup %3612 }
 0x964   :  { %2772 = vst [vmem:[%s5075_s17 + $0x30] sm:$0xff] %v2717_v13  ;;  %v2592_v47 = vmul.f32 %v3613_v48, %v2585_v19 }
 0x965   :  { %2773 = vst [vmem:[%s5075_s17 + $0x38] sm:$0xff] %v2750_v21 }
 0x966   :  { %v2613_v55 = vpack.c.bf16 %v2592_v47, %v2592_v47 }
 0x968   :  { %2728 = vmatmul.bf16.gmra.mxu0 %v2613_v55  ;;  %2761 = vmatmul.bf16.gmra.mxu1 %v2613_v55 }
 0x969   :  { %v2719_v58 = vpop.f32.mrf.mxu0  ;;  %v2752_v2 = vpop.f32.mrf.mxu1 }
 0x96a   :  { %v2720_v30 = vadd.f32 %v2719_v58, %v4972_v7  ;;  %v2753_v50 = vadd.f32 %v2752_v2, %v4974_v53 }
 0x96c   :  { %2774 = vst [vmem:[%s5075_s17 + $0x40] sm:$0xff] %v2720_v30 }
 0x96d   :  { %2775 = vst [vmem:[%s5075_s17 + $0x48] sm:$0xff] %v2753_v50 }
 0x971   :  { %v2721_v43 = vpop.f32.mrf.mxu0  ;;  %v2754_v57 = vpop.f32.mrf.mxu1 }
 0x972   :  { %v2722_v33 = vadd.f32 %v2721_v43, %v4972_v7  ;;  %v2755_v39 = vadd.f32 %v2754_v57, %v4974_v53 }
 0x974   :  { %2776 = vst [vmem:[%s5075_s17 + $0x50] sm:$0xff] %v2722_v33 }
 0x975   :  { %2777 = vst [vmem:[%s5075_s17 + $0x58] sm:$0xff] %v2755_v39 }
 0x979   :  { %v2724_v0 = vpop.f32.mrf.mxu0  ;;  %v2757_v12 = vpop.f32.mrf.mxu1 }
 0x97a   :  { %v2725_v37 = vadd.f32 %v2724_v0, %v4972_v7  ;;  %v2758_v62 = vadd.f32 %v2757_v12, %v4974_v53 }
 0x97c   :  { %2778 = vst [vmem:[%s5075_s17 + $0x60] sm:$0xff] %v2725_v37 }
 0x97d   :  { %2779 = vst [vmem:[%s5075_s17 + $0x68] sm:$0xff] %v2758_v62 }
 0x981   :  { %v2726_v6 = vpop.f32.mrf.mxu0  ;;  %v2759_v15 = vpop.f32.mrf.mxu1 }
 0x982   :  { %v2727_v44 = vadd.f32 %v2726_v6, %v4972_v7  ;;  %v2760_v46 = vadd.f32 %v2759_v15, %v4974_v53 }
 0x984   :  { %2780 = vst [vmem:[%s5075_s17 + $0x70] sm:$0xff] %v2727_v44 }
 0x985   :  { %2781 = vst [vmem:[%s5075_s17 + $0x78] sm:$0xff] %v2760_v46 }
 0x9e5   :  { %v2729_v61 = vpop.f32.mrf.mxu0  ;;  %v2762_v51 = vpop.f32.mrf.mxu1 }
 0x9e6   :  { %v2730_v4 = vadd.f32 %v2729_v61, %v4972_v7  ;;  %v2763_v3 = vadd.f32 %v2762_v51, %v4974_v53 }
 0x9e8   :  { %2782 = vst [vmem:[%s5075_s17 + $0x80] sm:$0xff] %v2730_v4 }
 0x9e9   :  { %2783 = vst [vmem:[%s5075_s17 + $0x88] sm:$0xff] %v2763_v3 }
 0x9ed   :  { %v2731_v1 = vpop.f32.mrf.mxu0  ;;  %v2764_v41 = vpop.f32.mrf.mxu1 }
 0x9ee   :  { %2788 = vsyncpa [#allocation3], 1 }
 0x9ef   :  { %2789 = vsyncpa [#allocation5], 1 }
 0x9f0   :  { %2790 = vsyncpa [#allocation8], 1 }

</bundles_post_ra>
